<compile_context>
chip_gen: v7x
topology: tpu7x:2x2x1
jax: 0.10.0
libtpu: 0.0.40
codegen_flags: <defaults>
</compile_context>

<pallas_src>
import numpy as np
import jax
import jax.numpy as jnp
from jax.experimental import pallas as pl
from jax.experimental.pallas import tpu as pltpu

# ---------------- configuration (small shapes implied by the module) --------
BATCH = 2
PARA_H = PARA_W = 16          # env.tagger.get_para_shape()
N_FILTERS = 4                 # args.cnn_flt_n
FILTER_SIZE = 3               # args.cnn_flt_size
STRIDE = 1                    # args.cnn_stride
RNN_HIDDEN = 32               # args.rnn_hidden
EMBED = 8                     # env.dataloader.get_embed_size()
SEQ_LEN = 8
BN_EPS = 1e-5
ROW = PARA_W                  # flat-spatial row stride (16) at every layer


def conv2d_size_out(size, kernel_size=FILTER_SIZE, stride=STRIDE):
    return (size - (kernel_size - 1) - 1) // stride + 1


V1 = conv2d_size_out(PARA_W)            # 14
V2 = conv2d_size_out(V1)                # 12
V3 = conv2d_size_out(V2)                # 10
LINEAR_INPUT = V3 * V3 * N_FILTERS * 2  # 800

C1 = N_FILTERS                          # 4
C2 = 2 * N_FILTERS                      # 8
C3 = 2 * N_FILTERS                      # 8

SPAD = PARA_H * PARA_W                  # 256: per-batch lane segment (mult of 128)
TOT = BATCH * SPAD                      # 512: lane width of every activation
SLAB_ROWS = 9 * C2 + 1                  # 73: largest im2col slab (+ ones row)

# --- row layout of the consolidated small-weight buffer (70 x 128, f32) -----
ROW_W1 = 0        # conv1 packed weight+bias col   (C1, 9*1 + 1)
ROW_W2 = 8        # conv2 packed weight+bias col   (C2, 9*C1 + 1)
ROW_W3 = 16       # conv3 packed weight+bias col   (C3, 9*C2 + 1)
ROW_WIH = 24      # LSTM W_ih^T                    (EMBED, 4H)
ROW_WHH = 32      # LSTM W_hh^T                    (H, 4H)
ROW_BL = 64       # LSTM b_ih + b_hh               (1, 4H)
ROW_BFC1 = 65     # fc1 bias                       (1, H)
ROW_WFC2 = 66     # fc2 weight (row)               (1, H)
ROW_BFC2 = 67     # fc2 bias                       (1, H)
ROW_WFC = 68      # fc weight (row)                (1, H)
ROW_BFC = 69      # fc bias                        (1, 1)
WSMALL_ROWS = 70
WSMALL_COLS = 4 * RNN_HIDDEN            # 128


# ---------------------------- fused Pallas kernel ----------------------------
def _fused_forward_kernel(x0_ref, seq_ref, budget_ref, wsmall_ref, wfc1_hbm,
                          out_ref, slab_ref, wfc1_vmem, dma_sem):
    f32 = jnp.float32
    H = RNN_HIDDEN

    # Kick off the only large weight transfer (fc1, 256 KB) now; it is consumed
    # only after the convs + LSTM, so the DMA is hidden behind compute.
    wfc1_copy = pltpu.make_async_copy(wfc1_hbm, wfc1_vmem, dma_sem)
    wfc1_copy.start()

    # Keep every slab lane finite: garbage lanes later meet zero fc1 weights,
    # and 0 * inf would be NaN, so never leave uninitialized VMEM in the flow.
    slab_ref[...] = jnp.zeros((SLAB_ROWS, TOT), f32)
    ones_row = jnp.ones((1, TOT), f32)

    # ---- convs: im2col slab + ONE MXU dot per layer (both batches at once) --
    # slab row t*cin+ci holds channel ci shifted left by the tap offset
    # s0 = kh*16 + kw; row 9*cin is all ones and carries the folded BN bias.
    def conv_layer(src, cin, wrow0, cout):
        for kh in range(FILTER_SIZE):
            for kw in range(FILTER_SIZE):
                t = kh * FILTER_SIZE + kw
                s0 = kh * ROW + kw
                if s0 == 0:
                    slab_ref[t * cin:(t + 1) * cin, :] = src
                else:
                    slab_ref[t * cin:(t + 1) * cin, 0:TOT - s0] = src[:, s0:TOT]
        slab_ref[9 * cin:9 * cin + 1, :] = ones_row
        w = wsmall_ref[wrow0:wrow0 + cout, 0:9 * cin + 1]        # (cout, 9cin+1)
        y = jnp.dot(w, slab_ref[0:9 * cin + 1, :],
                    preferred_element_type=f32)                   # (cout, TOT)
        return jnp.maximum(y, 0.0)                                # conv+BN+bias+ReLU

    a1 = conv_layer(x0_ref[...], 1, ROW_W1, C1)                   # (4, 512)
    a2 = conv_layer(a1, C1, ROW_W2, C2)                           # (8, 512)
    y3 = conv_layer(a2, C2, ROW_W3, C3)                           # (8, 512)

    # ---- LSTM: input projections hoisted out of the recurrence --------------
    wih = wsmall_ref[ROW_WIH:ROW_WIH + EMBED, :]                  # (E, 4H)
    whh = wsmall_ref[ROW_WHH:ROW_WHH + H, :]                      # (H, 4H)
    bl = wsmall_ref[ROW_BL:ROW_BL + 1, :]                         # (1, 4H)
    xproj = jnp.dot(seq_ref[...], wih,
                    preferred_element_type=f32) + bl              # (T*B, 4H)
    h = jnp.zeros((BATCH, H), f32)
    c = jnp.zeros((BATCH, H), f32)
    for t in range(SEQ_LEN):
        gates = xproj[t * BATCH:(t + 1) * BATCH, :] + jnp.dot(
            h, whh, preferred_element_type=f32)                   # (B, 4H)
        sg = jax.nn.sigmoid(gates)
        tg = jnp.tanh(gates)
        i = sg[:, 0 * H:1 * H]
        f = sg[:, 1 * H:2 * H]
        g = tg[:, 2 * H:3 * H]
        o = sg[:, 3 * H:4 * H]
        c = f * c + i * g
        h = o * jnp.tanh(c)

    # ---- fc1: batch in the LHS rows, one dot per channel, weight read once --
    wfc1_copy.wait()                                              # needed from here on
    acc = None
    for cc in range(C3):
        lhs = jnp.concatenate(
            [y3[cc:cc + 1, b * SPAD:(b + 1) * SPAD] for b in range(BATCH)],
            axis=0)                                               # (B, 256)
        w_c = wfc1_vmem[cc * SPAD:(cc + 1) * SPAD, :]             # (256, H)
        term = jnp.dot(lhs, w_c, preferred_element_type=f32)
        acc = term if acc is None else acc + term
    x1 = jnp.maximum(acc + wsmall_ref[ROW_BFC1:ROW_BFC1 + 1, 0:H], 0.0)  # (B, H)

    # ---- head: x = relu(fc1) + h_T + relu(fc2(budget)); out = fc(x) ---------
    x3 = jnp.maximum(budget_ref[...] * wsmall_ref[ROW_WFC2:ROW_WFC2 + 1, 0:H]
                     + wsmall_ref[ROW_BFC2:ROW_BFC2 + 1, 0:H], 0.0)       # (B, H)
    x = x1 + h + x3
    wfc_row = wsmall_ref[ROW_WFC:ROW_WFC + 1, 0:H]                # (1, H)
    out_ref[...] = (jnp.sum(x * wfc_row, axis=-1, keepdims=True)
                    + wsmall_ref[ROW_BFC:ROW_BFC + 1, 0:1])


# ----------------------- one-time host-side param packing --------------------
def pack_params(p):
    """Fold BN, permute fc1, consolidate small params.  Call ONCE, not per call.

    Returns:
      wsmall: (70, 128) f32 -- all small weights/biases; conv weights carry the
              BN scale and an extra bias column (pairs with the slab ones row).
      wfc1p:  (C3*256, 32) f32 -- fc1 weight permuted from PyTorch's NCHW
              flatten order to the (channel, h*16+w) flat-spatial layout; zero
              on lanes that hold conv garbage.
    """
    H = RNN_HIDDEN
    wsmall = np.zeros((WSMALL_ROWS, WSMALL_COLS), np.float32)

    for li, cin, row0 in ((1, 1, ROW_W1), (2, C1, ROW_W2), (3, C2, ROW_W3)):
        w = np.asarray(p[f'conv{li}_w'], np.float32)              # (cout,cin,3,3)
        cout = w.shape[0]
        scale = (np.asarray(p[f'bn{li}_gamma'], np.float32)
                 / np.sqrt(np.asarray(p[f'bn{li}_var'], np.float32) + BN_EPS))
        w9 = w.transpose(0, 2, 3, 1).reshape(cout, 9 * cin) * scale[:, None]
        bias = (np.asarray(p[f'bn{li}_beta'], np.float32)
                + (np.asarray(p[f'conv{li}_b'], np.float32)
                   - np.asarray(p[f'bn{li}_mean'], np.float32)) * scale)
        wsmall[row0:row0 + cout, 0:9 * cin] = w9
        wsmall[row0:row0 + cout, 9 * cin] = bias

    wsmall[ROW_WIH:ROW_WIH + EMBED, :4 * H] = np.asarray(p['lstm_w_ih']).T
    wsmall[ROW_WHH:ROW_WHH + H, :4 * H] = np.asarray(p['lstm_w_hh']).T
    wsmall[ROW_BL, :4 * H] = (np.asarray(p['lstm_b_ih'])
                              + np.asarray(p['lstm_b_hh']))
    wsmall[ROW_BFC1, :H] = np.asarray(p['fc1_b'])
    wsmall[ROW_WFC2, :H] = np.asarray(p['fc2_w'])[:, 0]
    wsmall[ROW_BFC2, :H] = np.asarray(p['fc2_b'])
    wsmall[ROW_WFC, :H] = np.asarray(p['fc_w'])[0, :]
    wsmall[ROW_BFC, 0] = np.asarray(p['fc_b'])[0]

    wt = np.asarray(p['fc1_w'], np.float32).T                     # (800, H)
    wfc1p = np.zeros((C3 * SPAD, H), np.float32)
    for cc in range(C3):
        for oh in range(V3):
            for ow in range(V3):
                src = cc * (V3 * V3) + oh * V3 + ow
                dst = cc * SPAD + oh * ROW + ow
                wfc1p[dst, :] = wt[src, :]
    return jnp.asarray(wsmall), jnp.asarray(wfc1p)


# ------------------------------ jitted forward --------------------------------
@jax.jit
def forward_pallas(tagger_x, seq_x, budget, wsmall, wfc1p):
    """tagger_x: (B,1,16,16) NCHW, seq_x: (B,T,E), budget: (B,1) -> (B,1)."""
    x0 = tagger_x.reshape(1, TOT)                       # batch segments of 256 lanes
    seq_tm = jnp.transpose(seq_x, (1, 0, 2)).reshape(SEQ_LEN * BATCH, EMBED)

    return pl.pallas_call(
        _fused_forward_kernel,
        out_shape=jax.ShapeDtypeStruct((BATCH, 1), jnp.float32),
        in_specs=[
            pl.BlockSpec(memory_space=pltpu.MemorySpace.VMEM),    # x0
            pl.BlockSpec(memory_space=pltpu.MemorySpace.VMEM),    # seq (T*B, E)
            pl.BlockSpec(memory_space=pltpu.MemorySpace.VMEM),    # budget
            pl.BlockSpec(memory_space=pltpu.MemorySpace.VMEM),    # consolidated weights
            pl.BlockSpec(memory_space=pl.ANY),                    # fc1 weight (HBM)
        ],
        out_specs=pl.BlockSpec(memory_space=pltpu.MemorySpace.VMEM),
        scratch_shapes=[
            pltpu.VMEM((SLAB_ROWS, TOT), jnp.float32),            # im2col slab
            pltpu.VMEM((C3 * SPAD, RNN_HIDDEN), jnp.float32),     # fc1 weight buffer
            pltpu.SemaphoreType.DMA,                              # its DMA semaphore
        ],
        cost_estimate=pl.CostEstimate(
            flops=1_500_000, transcendentals=5_000, bytes_accessed=400_000),
    )(x0, seq_tm, budget, wsmall, wfc1p)


# -------------------------- pure-JAX reference ------------------------------
def forward_reference(tagger_x, seq_x, budget, p):
    x = tagger_x
    for li in range(1, 4):
        w = p[f'conv{li}_w']
        y = jax.lax.conv_general_dilated(
            x, w, (STRIDE, STRIDE), 'VALID',
            dimension_numbers=('NCHW', 'OIHW', 'NCHW'))
        y = y + p[f'conv{li}_b'][None, :, None, None]
        scale = p[f'bn{li}_gamma'] / jnp.sqrt(p[f'bn{li}_var'] + BN_EPS)
        y = ((y - p[f'bn{li}_mean'][None, :, None, None])
             * scale[None, :, None, None] + p[f'bn{li}_beta'][None, :, None, None])
        x = jnp.maximum(y, 0.0)
    feat = x.reshape(x.shape[0], -1)
    x1 = jnp.maximum(feat @ p['fc1_w'].T + p['fc1_b'], 0.0)

    H = RNN_HIDDEN
    w_ih, w_hh = p['lstm_w_ih'], p['lstm_w_hh']
    b = p['lstm_b_ih'] + p['lstm_b_hh']

    def step(carry, x_t):
        hh, cc = carry
        gates = x_t @ w_ih.T + hh @ w_hh.T + b
        i = jax.nn.sigmoid(gates[:, :H])
        f = jax.nn.sigmoid(gates[:, H:2 * H])
        g = jnp.tanh(gates[:, 2 * H:3 * H])
        o = jax.nn.sigmoid(gates[:, 3 * H:])
        cc = f * cc + i * g
        hh = o * jnp.tanh(cc)
        return (hh, cc), None

    B = seq_x.shape[0]
    (hT, _), _ = jax.lax.scan(step,
                              (jnp.zeros((B, H)), jnp.zeros((B, H))),
                              jnp.transpose(seq_x, (1, 0, 2)))
    x3 = jnp.maximum(budget @ p['fc2_w'].T + p['fc2_b'], 0.0)
    xsum = x1 + hT + x3
    return xsum @ p['fc_w'].T + p['fc_b']


# --------------------------- deterministic init ------------------------------
def init_params(key):
    keys = iter(jax.random.split(key, 32))

    def u(shape, scale=0.2):
        return jax.random.uniform(next(keys), shape, jnp.float32, -scale, scale)

    p = {}
    chans = [(1, N_FILTERS), (N_FILTERS, 2 * N_FILTERS),
             (2 * N_FILTERS, 2 * N_FILTERS)]
    for li, (cin, cout) in enumerate(chans, start=1):
        p[f'conv{li}_w'] = u((cout, cin, FILTER_SIZE, FILTER_SIZE))
        p[f'conv{li}_b'] = u((cout,))
        p[f'bn{li}_gamma'] = 1.0 + u((cout,))
        p[f'bn{li}_beta'] = u((cout,))
        p[f'bn{li}_mean'] = u((cout,))
        p[f'bn{li}_var'] = 1.0 + jnp.abs(u((cout,)))
    p['fc1_w'] = u((RNN_HIDDEN, LINEAR_INPUT))
    p['fc1_b'] = u((RNN_HIDDEN,))
    p['fc2_w'] = u((RNN_HIDDEN, 1))
    p['fc2_b'] = u((RNN_HIDDEN,))
    p['lstm_w_ih'] = u((4 * RNN_HIDDEN, EMBED))
    p['lstm_w_hh'] = u((4 * RNN_HIDDEN, RNN_HIDDEN))
    p['lstm_b_ih'] = u((4 * RNN_HIDDEN,))
    p['lstm_b_hh'] = u((4 * RNN_HIDDEN,))
    p['fc_w'] = u((1, RNN_HIDDEN))
    p['fc_b'] = u((1,))
    return p


# ---------------------------------- main -------------------------------------
if __name__ == "__main__":
    key = jax.random.PRNGKey(0)
    k_param, k_tag, k_seq, k_bud = jax.random.split(key, 4)
    params = init_params(k_param)

    # One-time packing (BN fold, fc1 permutation, consolidation) -- NOT per call.
    wsmall, wfc1p = pack_params(params)

    tagger_x = jax.random.normal(k_tag, (BATCH, 1, PARA_H, PARA_W), jnp.float32)
    seq_x = jax.random.normal(k_seq, (BATCH, SEQ_LEN, EMBED), jnp.float32)
    budget = jax.random.uniform(k_bud, (BATCH, 1), jnp.float32)

    out = jax.block_until_ready(
        forward_pallas(tagger_x, seq_x, budget, wsmall, wfc1p))

    with jax.default_matmul_precision("highest"):
        ref = jax.block_until_ready(
            forward_reference(tagger_x, seq_x, budget, params))

    np.testing.assert_allclose(np.asarray(out), np.asarray(ref),
                               atol=2e-3, rtol=2e-3)
    # TODO(synk): get_action's epsilon-greedy candidate loop is host-side
    # control flow around repeated forward calls and is intentionally not
    # implemented as kernel work.
    print("KERNEL_OK")
</pallas_src>

<mosaic_0001>
module attributes {stable_mosaic.version = 11 : i64} {
  func.func @_fused_forward_kernel(%arg0: memref<1x512xf32, #tpu.memory_space<vmem>>, %arg1: memref<16x8xf32, #tpu.memory_space<vmem>>, %arg2: memref<2x1xf32, #tpu.memory_space<vmem>>, %arg3: memref<70x128xf32, #tpu.memory_space<vmem>>, %arg4: memref<2048x32xf32, #tpu.memory_space<any>>, %arg5: memref<2x1xf32, #tpu.memory_space<vmem>>, %arg6: memref<73x512xf32, #tpu.memory_space<vmem>>, %arg7: memref<2048x32xf32, #tpu.memory_space<vmem>>, %arg8: memref<!tpu.dma_semaphore, #tpu.memory_space<semaphore_mem>>) attributes {dimension_semantics = [], scalar_prefetch = 0 : i64, scratch_operands = 3 : i64, tpu.core_type = #tpu.core_type<tc>} {
    tpu.enqueue_dma source(%arg4 : memref<2048x32xf32, #tpu.memory_space<any>>) target(%arg7 : memref<2048x32xf32, #tpu.memory_space<vmem>>) target_semaphore(%arg8 : memref<!tpu.dma_semaphore, #tpu.memory_space<semaphore_mem>>)
    %cst = arith.constant 0.000000e+00 : f32
    %0 = vector.broadcast %cst : f32 to vector<73x512xf32>
    %c0 = arith.constant 0 : index
    %c0_0 = arith.constant 0 : index
    %1 = vector.load %arg6[%c0, %c0_0] : memref<73x512xf32, #tpu.memory_space<vmem>>, vector<73x512xf32>
    tpu.vector_store %arg6[%c0, %c0_0], %0 {strides = array<i32>} : memref<73x512xf32, #tpu.memory_space<vmem>>, vector<73x512xf32>,
    %cst_1 = arith.constant 1.000000e+00 : f32
    %2 = vector.broadcast %cst_1 : f32 to vector<1x512xf32>
    %c0_2 = arith.constant 0 : index
    %c0_3 = arith.constant 0 : index
    %3 = vector.load %arg0[%c0_2, %c0_3] : memref<1x512xf32, #tpu.memory_space<vmem>>, vector<1x512xf32>
    %c0_4 = arith.constant 0 : index
    %c0_5 = arith.constant 0 : index
    %4 = vector.load %arg6[%c0_4, %c0_5] : memref<73x512xf32, #tpu.memory_space<vmem>>, vector<1x512xf32>
    tpu.vector_store %arg6[%c0_4, %c0_5], %3 {strides = array<i32>} : memref<73x512xf32, #tpu.memory_space<vmem>>, vector<1x512xf32>,
    %5 = vector.extract_strided_slice %3 {offsets = [0, 1], sizes = [1, 511], strides = [1, 1]} : vector<1x512xf32> to vector<1x511xf32>
    %c1 = arith.constant 1 : index
    %c0_6 = arith.constant 0 : index
    %6 = vector.load %arg6[%c1, %c0_6] : memref<73x512xf32, #tpu.memory_space<vmem>>, vector<1x511xf32>
    tpu.vector_store %arg6[%c1, %c0_6], %5 {strides = array<i32>} : memref<73x512xf32, #tpu.memory_space<vmem>>, vector<1x511xf32>,
    %7 = vector.extract_strided_slice %3 {offsets = [0, 2], sizes = [1, 510], strides = [1, 1]} : vector<1x512xf32> to vector<1x510xf32>
    %c2 = arith.constant 2 : index
    %c0_7 = arith.constant 0 : index
    %8 = vector.load %arg6[%c2, %c0_7] : memref<73x512xf32, #tpu.memory_space<vmem>>, vector<1x510xf32>
    tpu.vector_store %arg6[%c2, %c0_7], %7 {strides = array<i32>} : memref<73x512xf32, #tpu.memory_space<vmem>>, vector<1x510xf32>,
    %9 = vector.extract_strided_slice %3 {offsets = [0, 16], sizes = [1, 496], strides = [1, 1]} : vector<1x512xf32> to vector<1x496xf32>
    %c3 = arith.constant 3 : index
    %c0_8 = arith.constant 0 : index
    %10 = vector.load %arg6[%c3, %c0_8] : memref<73x512xf32, #tpu.memory_space<vmem>>, vector<1x496xf32>
    tpu.vector_store %arg6[%c3, %c0_8], %9 {strides = array<i32>} : memref<73x512xf32, #tpu.memory_space<vmem>>, vector<1x496xf32>,
    %11 = vector.extract_strided_slice %3 {offsets = [0, 17], sizes = [1, 495], strides = [1, 1]} : vector<1x512xf32> to vector<1x495xf32>
    %c4 = arith.constant 4 : index
    %c0_9 = arith.constant 0 : index
    %12 = vector.load %arg6[%c4, %c0_9] : memref<73x512xf32, #tpu.memory_space<vmem>>, vector<1x495xf32>
    tpu.vector_store %arg6[%c4, %c0_9], %11 {strides = array<i32>} : memref<73x512xf32, #tpu.memory_space<vmem>>, vector<1x495xf32>,
    %13 = vector.extract_strided_slice %3 {offsets = [0, 18], sizes = [1, 494], strides = [1, 1]} : vector<1x512xf32> to vector<1x494xf32>
    %c5 = arith.constant 5 : index
    %c0_10 = arith.constant 0 : index
    %14 = vector.load %arg6[%c5, %c0_10] : memref<73x512xf32, #tpu.memory_space<vmem>>, vector<1x494xf32>
    tpu.vector_store %arg6[%c5, %c0_10], %13 {strides = array<i32>} : memref<73x512xf32, #tpu.memory_space<vmem>>, vector<1x494xf32>,
    %15 = vector.extract_strided_slice %3 {offsets = [0, 32], sizes = [1, 480], strides = [1, 1]} : vector<1x512xf32> to vector<1x480xf32>
    %c6 = arith.constant 6 : index
    %c0_11 = arith.constant 0 : index
    %16 = vector.load %arg6[%c6, %c0_11] : memref<73x512xf32, #tpu.memory_space<vmem>>, vector<1x480xf32>
    tpu.vector_store %arg6[%c6, %c0_11], %15 {strides = array<i32>} : memref<73x512xf32, #tpu.memory_space<vmem>>, vector<1x480xf32>,
    %17 = vector.extract_strided_slice %3 {offsets = [0, 33], sizes = [1, 479], strides = [1, 1]} : vector<1x512xf32> to vector<1x479xf32>
    %c7 = arith.constant 7 : index
    %c0_12 = arith.constant 0 : index
    %18 = vector.load %arg6[%c7, %c0_12] : memref<73x512xf32, #tpu.memory_space<vmem>>, vector<1x479xf32>
    tpu.vector_store %arg6[%c7, %c0_12], %17 {strides = array<i32>} : memref<73x512xf32, #tpu.memory_space<vmem>>, vector<1x479xf32>,
    %19 = vector.extract_strided_slice %3 {offsets = [0, 34], sizes = [1, 478], strides = [1, 1]} : vector<1x512xf32> to vector<1x478xf32>
    %c8 = arith.constant 8 : index
    %c0_13 = arith.constant 0 : index
    %20 = vector.load %arg6[%c8, %c0_13] : memref<73x512xf32, #tpu.memory_space<vmem>>, vector<1x478xf32>
    tpu.vector_store %arg6[%c8, %c0_13], %19 {strides = array<i32>} : memref<73x512xf32, #tpu.memory_space<vmem>>, vector<1x478xf32>,
    %c9 = arith.constant 9 : index
    %c0_14 = arith.constant 0 : index
    %21 = vector.load %arg6[%c9, %c0_14] : memref<73x512xf32, #tpu.memory_space<vmem>>, vector<1x512xf32>
    tpu.vector_store %arg6[%c9, %c0_14], %2 {strides = array<i32>} : memref<73x512xf32, #tpu.memory_space<vmem>>, vector<1x512xf32>,
    %c0_15 = arith.constant 0 : index
    %c0_16 = arith.constant 0 : index
    %22 = vector.load %arg3[%c0_15, %c0_16] : memref<70x128xf32, #tpu.memory_space<vmem>>, vector<4x10xf32>
    %c0_17 = arith.constant 0 : index
    %c0_18 = arith.constant 0 : index
    %23 = vector.load %arg6[%c0_17, %c0_18] : memref<73x512xf32, #tpu.memory_space<vmem>>, vector<10x512xf32>
    %cst_19 = arith.constant dense<0.000000e+00> : vector<4x512xf32>
    %24 = tpu.matmul %22, %23, %cst_19 {dimension_numbers = #tpu.dot_dimension_numbers<[1], [0], [0], [1], [0, 0, 1, 1], [], []>} : vector<4x10xf32>, vector<10x512xf32>, vector<4x512xf32> -> vector<4x512xf32>
    %cst_20 = arith.constant 0.000000e+00 : f32
    %25 = vector.broadcast %cst_20 : f32 to vector<4x512xf32>
    %26 = arith.maximumf %24, %25 : vector<4x512xf32>
    %c0_21 = arith.constant 0 : index
    %c0_22 = arith.constant 0 : index
    %27 = vector.load %arg6[%c0_21, %c0_22] : memref<73x512xf32, #tpu.memory_space<vmem>>, vector<4x512xf32>
    tpu.vector_store %arg6[%c0_21, %c0_22], %26 {strides = array<i32>} : memref<73x512xf32, #tpu.memory_space<vmem>>, vector<4x512xf32>,
    %28 = vector.extract_strided_slice %26 {offsets = [0, 1], sizes = [4, 511], strides = [1, 1]} : vector<4x512xf32> to vector<4x511xf32>
    %c4_23 = arith.constant 4 : index
    %c0_24 = arith.constant 0 : index
    %29 = vector.load %arg6[%c4_23, %c0_24] : memref<73x512xf32, #tpu.memory_space<vmem>>, vector<4x511xf32>
    tpu.vector_store %arg6[%c4_23, %c0_24], %28 {strides = array<i32>} : memref<73x512xf32, #tpu.memory_space<vmem>>, vector<4x511xf32>,
    %30 = vector.extract_strided_slice %26 {offsets = [0, 2], sizes = [4, 510], strides = [1, 1]} : vector<4x512xf32> to vector<4x510xf32>
    %c8_25 = arith.constant 8 : index
    %c0_26 = arith.constant 0 : index
    %31 = vector.load %arg6[%c8_25, %c0_26] : memref<73x512xf32, #tpu.memory_space<vmem>>, vector<4x510xf32>
    tpu.vector_store %arg6[%c8_25, %c0_26], %30 {strides = array<i32>} : memref<73x512xf32, #tpu.memory_space<vmem>>, vector<4x510xf32>,
    %32 = vector.extract_strided_slice %26 {offsets = [0, 16], sizes = [4, 496], strides = [1, 1]} : vector<4x512xf32> to vector<4x496xf32>
    %c12 = arith.constant 12 : index
    %c0_27 = arith.constant 0 : index
    %33 = vector.load %arg6[%c12, %c0_27] : memref<73x512xf32, #tpu.memory_space<vmem>>, vector<4x496xf32>
    tpu.vector_store %arg6[%c12, %c0_27], %32 {strides = array<i32>} : memref<73x512xf32, #tpu.memory_space<vmem>>, vector<4x496xf32>,
    %34 = vector.extract_strided_slice %26 {offsets = [0, 17], sizes = [4, 495], strides = [1, 1]} : vector<4x512xf32> to vector<4x495xf32>
    %c16 = arith.constant 16 : index
    %c0_28 = arith.constant 0 : index
    %35 = vector.load %arg6[%c16, %c0_28] : memref<73x512xf32, #tpu.memory_space<vmem>>, vector<4x495xf32>
    tpu.vector_store %arg6[%c16, %c0_28], %34 {strides = array<i32>} : memref<73x512xf32, #tpu.memory_space<vmem>>, vector<4x495xf32>,
    %36 = vector.extract_strided_slice %26 {offsets = [0, 18], sizes = [4, 494], strides = [1, 1]} : vector<4x512xf32> to vector<4x494xf32>
    %c20 = arith.constant 20 : index
    %c0_29 = arith.constant 0 : index
    %37 = vector.load %arg6[%c20, %c0_29] : memref<73x512xf32, #tpu.memory_space<vmem>>, vector<4x494xf32>
    tpu.vector_store %arg6[%c20, %c0_29], %36 {strides = array<i32>} : memref<73x512xf32, #tpu.memory_space<vmem>>, vector<4x494xf32>,
    %38 = vector.extract_strided_slice %26 {offsets = [0, 32], sizes = [4, 480], strides = [1, 1]} : vector<4x512xf32> to vector<4x480xf32>
    %c24 = arith.constant 24 : index
    %c0_30 = arith.constant 0 : index
    %39 = vector.load %arg6[%c24, %c0_30] : memref<73x512xf32, #tpu.memory_space<vmem>>, vector<4x480xf32>
    tpu.vector_store %arg6[%c24, %c0_30], %38 {strides = array<i32>} : memref<73x512xf32, #tpu.memory_space<vmem>>, vector<4x480xf32>,
    %40 = vector.extract_strided_slice %26 {offsets = [0, 33], sizes = [4, 479], strides = [1, 1]} : vector<4x512xf32> to vector<4x479xf32>
    %c28 = arith.constant 28 : index
    %c0_31 = arith.constant 0 : index
    %41 = vector.load %arg6[%c28, %c0_31] : memref<73x512xf32, #tpu.memory_space<vmem>>, vector<4x479xf32>
    tpu.vector_store %arg6[%c28, %c0_31], %40 {strides = array<i32>} : memref<73x512xf32, #tpu.memory_space<vmem>>, vector<4x479xf32>,
    %42 = vector.extract_strided_slice %26 {offsets = [0, 34], sizes = [4, 478], strides = [1, 1]} : vector<4x512xf32> to vector<4x478xf32>
    %c32 = arith.constant 32 : index
    %c0_32 = arith.constant 0 : index
    %43 = vector.load %arg6[%c32, %c0_32] : memref<73x512xf32, #tpu.memory_space<vmem>>, vector<4x478xf32>
    tpu.vector_store %arg6[%c32, %c0_32], %42 {strides = array<i32>} : memref<73x512xf32, #tpu.memory_space<vmem>>, vector<4x478xf32>,
    %c36 = arith.constant 36 : index
    %c0_33 = arith.constant 0 : index
    %44 = vector.load %arg6[%c36, %c0_33] : memref<73x512xf32, #tpu.memory_space<vmem>>, vector<1x512xf32>
    tpu.vector_store %arg6[%c36, %c0_33], %2 {strides = array<i32>} : memref<73x512xf32, #tpu.memory_space<vmem>>, vector<1x512xf32>,
    %c8_34 = arith.constant 8 : index
    %c0_35 = arith.constant 0 : index
    %45 = vector.load %arg3[%c8_34, %c0_35] : memref<70x128xf32, #tpu.memory_space<vmem>>, vector<8x37xf32>
    %c0_36 = arith.constant 0 : index
    %c0_37 = arith.constant 0 : index
    %46 = vector.load %arg6[%c0_36, %c0_37] : memref<73x512xf32, #tpu.memory_space<vmem>>, vector<37x512xf32>
    %cst_38 = arith.constant dense<0.000000e+00> : vector<8x512xf32>
    %47 = tpu.matmul %45, %46, %cst_38 {dimension_numbers = #tpu.dot_dimension_numbers<[1], [0], [0], [1], [0, 0, 1, 1], [], []>} : vector<8x37xf32>, vector<37x512xf32>, vector<8x512xf32> -> vector<8x512xf32>
    %cst_39 = arith.constant 0.000000e+00 : f32
    %48 = vector.broadcast %cst_39 : f32 to vector<8x512xf32>
    %49 = arith.maximumf %47, %48 : vector<8x512xf32>
    %c0_40 = arith.constant 0 : index
    %c0_41 = arith.constant 0 : index
    %50 = vector.load %arg6[%c0_40, %c0_41] : memref<73x512xf32, #tpu.memory_space<vmem>>, vector<8x512xf32>
    tpu.vector_store %arg6[%c0_40, %c0_41], %49 {strides = array<i32>} : memref<73x512xf32, #tpu.memory_space<vmem>>, vector<8x512xf32>,
    %51 = vector.extract_strided_slice %49 {offsets = [0, 1], sizes = [8, 511], strides = [1, 1]} : vector<8x512xf32> to vector<8x511xf32>
    %c8_42 = arith.constant 8 : index
    %c0_43 = arith.constant 0 : index
    %52 = vector.load %arg6[%c8_42, %c0_43] : memref<73x512xf32, #tpu.memory_space<vmem>>, vector<8x511xf32>
    tpu.vector_store %arg6[%c8_42, %c0_43], %51 {strides = array<i32>} : memref<73x512xf32, #tpu.memory_space<vmem>>, vector<8x511xf32>,
    %53 = vector.extract_strided_slice %49 {offsets = [0, 2], sizes = [8, 510], strides = [1, 1]} : vector<8x512xf32> to vector<8x510xf32>
    %c16_44 = arith.constant 16 : index
    %c0_45 = arith.constant 0 : index
    %54 = vector.load %arg6[%c16_44, %c0_45] : memref<73x512xf32, #tpu.memory_space<vmem>>, vector<8x510xf32>
    tpu.vector_store %arg6[%c16_44, %c0_45], %53 {strides = array<i32>} : memref<73x512xf32, #tpu.memory_space<vmem>>, vector<8x510xf32>,
    %55 = vector.extract_strided_slice %49 {offsets = [0, 16], sizes = [8, 496], strides = [1, 1]} : vector<8x512xf32> to vector<8x496xf32>
    %c24_46 = arith.constant 24 : index
    %c0_47 = arith.constant 0 : index
    %56 = vector.load %arg6[%c24_46, %c0_47] : memref<73x512xf32, #tpu.memory_space<vmem>>, vector<8x496xf32>
    tpu.vector_store %arg6[%c24_46, %c0_47], %55 {strides = array<i32>} : memref<73x512xf32, #tpu.memory_space<vmem>>, vector<8x496xf32>,
    %57 = vector.extract_strided_slice %49 {offsets = [0, 17], sizes = [8, 495], strides = [1, 1]} : vector<8x512xf32> to vector<8x495xf32>
    %c32_48 = arith.constant 32 : index
    %c0_49 = arith.constant 0 : index
    %58 = vector.load %arg6[%c32_48, %c0_49] : memref<73x512xf32, #tpu.memory_space<vmem>>, vector<8x495xf32>
    tpu.vector_store %arg6[%c32_48, %c0_49], %57 {strides = array<i32>} : memref<73x512xf32, #tpu.memory_space<vmem>>, vector<8x495xf32>,
    %59 = vector.extract_strided_slice %49 {offsets = [0, 18], sizes = [8, 494], strides = [1, 1]} : vector<8x512xf32> to vector<8x494xf32>
    %c40 = arith.constant 40 : index
    %c0_50 = arith.constant 0 : index
    %60 = vector.load %arg6[%c40, %c0_50] : memref<73x512xf32, #tpu.memory_space<vmem>>, vector<8x494xf32>
    tpu.vector_store %arg6[%c40, %c0_50], %59 {strides = array<i32>} : memref<73x512xf32, #tpu.memory_space<vmem>>, vector<8x494xf32>,
    %61 = vector.extract_strided_slice %49 {offsets = [0, 32], sizes = [8, 480], strides = [1, 1]} : vector<8x512xf32> to vector<8x480xf32>
    %c48 = arith.constant 48 : index
    %c0_51 = arith.constant 0 : index
    %62 = vector.load %arg6[%c48, %c0_51] : memref<73x512xf32, #tpu.memory_space<vmem>>, vector<8x480xf32>
    tpu.vector_store %arg6[%c48, %c0_51], %61 {strides = array<i32>} : memref<73x512xf32, #tpu.memory_space<vmem>>, vector<8x480xf32>,
    %63 = vector.extract_strided_slice %49 {offsets = [0, 33], sizes = [8, 479], strides = [1, 1]} : vector<8x512xf32> to vector<8x479xf32>
    %c56 = arith.constant 56 : index
    %c0_52 = arith.constant 0 : index
    %64 = vector.load %arg6[%c56, %c0_52] : memref<73x512xf32, #tpu.memory_space<vmem>>, vector<8x479xf32>
    tpu.vector_store %arg6[%c56, %c0_52], %63 {strides = array<i32>} : memref<73x512xf32, #tpu.memory_space<vmem>>, vector<8x479xf32>,
    %65 = vector.extract_strided_slice %49 {offsets = [0, 34], sizes = [8, 478], strides = [1, 1]} : vector<8x512xf32> to vector<8x478xf32>
    %c64 = arith.constant 64 : index
    %c0_53 = arith.constant 0 : index
    %66 = vector.load %arg6[%c64, %c0_53] : memref<73x512xf32, #tpu.memory_space<vmem>>, vector<8x478xf32>
    tpu.vector_store %arg6[%c64, %c0_53], %65 {strides = array<i32>} : memref<73x512xf32, #tpu.memory_space<vmem>>, vector<8x478xf32>,
    %c72 = arith.constant 72 : index
    %c0_54 = arith.constant 0 : index
    %67 = vector.load %arg6[%c72, %c0_54] : memref<73x512xf32, #tpu.memory_space<vmem>>, vector<1x512xf32>
    tpu.vector_store %arg6[%c72, %c0_54], %2 {strides = array<i32>} : memref<73x512xf32, #tpu.memory_space<vmem>>, vector<1x512xf32>,
    %c16_55 = arith.constant 16 : index
    %c0_56 = arith.constant 0 : index
    %68 = vector.load %arg3[%c16_55, %c0_56] : memref<70x128xf32, #tpu.memory_space<vmem>>, vector<8x73xf32>
    %c0_57 = arith.constant 0 : index
    %c0_58 = arith.constant 0 : index
    %69 = vector.load %arg6[%c0_57, %c0_58] : memref<73x512xf32, #tpu.memory_space<vmem>>, vector<73x512xf32>
    %cst_59 = arith.constant dense<0.000000e+00> : vector<8x512xf32>
    %70 = tpu.matmul %68, %69, %cst_59 {dimension_numbers = #tpu.dot_dimension_numbers<[1], [0], [0], [1], [0, 0, 1, 1], [], []>} : vector<8x73xf32>, vector<73x512xf32>, vector<8x512xf32> -> vector<8x512xf32>
    %cst_60 = arith.constant 0.000000e+00 : f32
    %71 = vector.broadcast %cst_60 : f32 to vector<8x512xf32>
    %72 = arith.maximumf %70, %71 : vector<8x512xf32>
    %c24_61 = arith.constant 24 : index
    %c0_62 = arith.constant 0 : index
    %73 = vector.load %arg3[%c24_61, %c0_62] : memref<70x128xf32, #tpu.memory_space<vmem>>, vector<8x128xf32>
    %c32_63 = arith.constant 32 : index
    %c0_64 = arith.constant 0 : index
    %74 = vector.load %arg3[%c32_63, %c0_64] : memref<70x128xf32, #tpu.memory_space<vmem>>, vector<32x128xf32>
    %c64_65 = arith.constant 64 : index
    %c0_66 = arith.constant 0 : index
    %75 = vector.load %arg3[%c64_65, %c0_66] : memref<70x128xf32, #tpu.memory_space<vmem>>, vector<1x128xf32>
    %c0_67 = arith.constant 0 : index
    %c0_68 = arith.constant 0 : index
    %76 = vector.load %arg1[%c0_67, %c0_68] : memref<16x8xf32, #tpu.memory_space<vmem>>, vector<16x8xf32>
    %cst_69 = arith.constant dense<0.000000e+00> : vector<16x128xf32>
    %77 = tpu.matmul %76, %73, %cst_69 {dimension_numbers = #tpu.dot_dimension_numbers<[1], [0], [0], [1], [0, 0, 1, 1], [], []>} : vector<16x8xf32>, vector<8x128xf32>, vector<16x128xf32> -> vector<16x128xf32>
    %78 = vector.broadcast %75 : vector<1x128xf32> to vector<16x128xf32>
    %79 = arith.addf %77, %78 : vector<16x128xf32>
    %cst_70 = arith.constant 0.000000e+00 : f32
    %80 = vector.broadcast %cst_70 : f32 to vector<2x32xf32>
    %cst_71 = arith.constant 0.000000e+00 : f32
    %81 = vector.broadcast %cst_71 : f32 to vector<2x32xf32>
    %82 = vector.extract_strided_slice %79 {offsets = [0, 0], sizes = [2, 128], strides = [1, 1]} : vector<16x128xf32> to vector<2x128xf32>
    %cst_72 = arith.constant dense<0.000000e+00> : vector<2x128xf32>
    %83 = tpu.matmul %80, %74, %cst_72 {dimension_numbers = #tpu.dot_dimension_numbers<[1], [0], [0], [1], [0, 0, 1, 1], [], []>} : vector<2x32xf32>, vector<32x128xf32>, vector<2x128xf32> -> vector<2x128xf32>
    %84 = arith.addf %82, %83 : vector<2x128xf32>
    %85 = arith.negf %84 : vector<2x128xf32>
    %86 = math.exp %85 : vector<2x128xf32>
    %cst_73 = arith.constant 1.000000e+00 : f32
    %87 = vector.broadcast %cst_73 : f32 to vector<2x128xf32>
    %88 = arith.addf %87, %86 : vector<2x128xf32>
    %89 = arith.divf %87, %88 : vector<2x128xf32>
    %90 = math.tanh %84 : vector<2x128xf32>
    %91 = vector.extract_strided_slice %89 {offsets = [0, 0], sizes = [2, 32], strides = [1, 1]} : vector<2x128xf32> to vector<2x32xf32>
    %92 = vector.extract_strided_slice %89 {offsets = [0, 32], sizes = [2, 32], strides = [1, 1]} : vector<2x128xf32> to vector<2x32xf32>
    %93 = vector.extract_strided_slice %90 {offsets = [0, 64], sizes = [2, 32], strides = [1, 1]} : vector<2x128xf32> to vector<2x32xf32>
    %94 = vector.extract_strided_slice %89 {offsets = [0, 96], sizes = [2, 32], strides = [1, 1]} : vector<2x128xf32> to vector<2x32xf32>
    %95 = arith.mulf %92, %81 : vector<2x32xf32>
    %96 = arith.mulf %91, %93 : vector<2x32xf32>
    %97 = arith.addf %95, %96 : vector<2x32xf32>
    %98 = math.tanh %97 : vector<2x32xf32>
    %99 = arith.mulf %94, %98 : vector<2x32xf32>
    %100 = vector.extract_strided_slice %79 {offsets = [2, 0], sizes = [2, 128], strides = [1, 1]} : vector<16x128xf32> to vector<2x128xf32>
    %cst_74 = arith.constant dense<0.000000e+00> : vector<2x128xf32>
    %101 = tpu.matmul %99, %74, %cst_74 {dimension_numbers = #tpu.dot_dimension_numbers<[1], [0], [0], [1], [0, 0, 1, 1], [], []>} : vector<2x32xf32>, vector<32x128xf32>, vector<2x128xf32> -> vector<2x128xf32>
    %102 = arith.addf %100, %101 : vector<2x128xf32>
    %103 = arith.negf %102 : vector<2x128xf32>
    %104 = math.exp %103 : vector<2x128xf32>
    %cst_75 = arith.constant 1.000000e+00 : f32
    %105 = vector.broadcast %cst_75 : f32 to vector<2x128xf32>
    %106 = arith.addf %105, %104 : vector<2x128xf32>
    %107 = arith.divf %105, %106 : vector<2x128xf32>
    %108 = math.tanh %102 : vector<2x128xf32>
    %109 = vector.extract_strided_slice %107 {offsets = [0, 0], sizes = [2, 32], strides = [1, 1]} : vector<2x128xf32> to vector<2x32xf32>
    %110 = vector.extract_strided_slice %107 {offsets = [0, 32], sizes = [2, 32], strides = [1, 1]} : vector<2x128xf32> to vector<2x32xf32>
    %111 = vector.extract_strided_slice %108 {offsets = [0, 64], sizes = [2, 32], strides = [1, 1]} : vector<2x128xf32> to vector<2x32xf32>
    %112 = vector.extract_strided_slice %107 {offsets = [0, 96], sizes = [2, 32], strides = [1, 1]} : vector<2x128xf32> to vector<2x32xf32>
    %113 = arith.mulf %110, %97 : vector<2x32xf32>
    %114 = arith.mulf %109, %111 : vector<2x32xf32>
    %115 = arith.addf %113, %114 : vector<2x32xf32>
    %116 = math.tanh %115 : vector<2x32xf32>
    %117 = arith.mulf %112, %116 : vector<2x32xf32>
    %118 = vector.extract_strided_slice %79 {offsets = [4, 0], sizes = [2, 128], strides = [1, 1]} : vector<16x128xf32> to vector<2x128xf32>
    %cst_76 = arith.constant dense<0.000000e+00> : vector<2x128xf32>
    %119 = tpu.matmul %117, %74, %cst_76 {dimension_numbers = #tpu.dot_dimension_numbers<[1], [0], [0], [1], [0, 0, 1, 1], [], []>} : vector<2x32xf32>, vector<32x128xf32>, vector<2x128xf32> -> vector<2x128xf32>
    %120 = arith.addf %118, %119 : vector<2x128xf32>
    %121 = arith.negf %120 : vector<2x128xf32>
    %122 = math.exp %121 : vector<2x128xf32>
    %cst_77 = arith.constant 1.000000e+00 : f32
    %123 = vector.broadcast %cst_77 : f32 to vector<2x128xf32>
    %124 = arith.addf %123, %122 : vector<2x128xf32>
    %125 = arith.divf %123, %124 : vector<2x128xf32>
    %126 = math.tanh %120 : vector<2x128xf32>
    %127 = vector.extract_strided_slice %125 {offsets = [0, 0], sizes = [2, 32], strides = [1, 1]} : vector<2x128xf32> to vector<2x32xf32>
    %128 = vector.extract_strided_slice %125 {offsets = [0, 32], sizes = [2, 32], strides = [1, 1]} : vector<2x128xf32> to vector<2x32xf32>
    %129 = vector.extract_strided_slice %126 {offsets = [0, 64], sizes = [2, 32], strides = [1, 1]} : vector<2x128xf32> to vector<2x32xf32>
    %130 = vector.extract_strided_slice %125 {offsets = [0, 96], sizes = [2, 32], strides = [1, 1]} : vector<2x128xf32> to vector<2x32xf32>
    %131 = arith.mulf %128, %115 : vector<2x32xf32>
    %132 = arith.mulf %127, %129 : vector<2x32xf32>
    %133 = arith.addf %131, %132 : vector<2x32xf32>
    %134 = math.tanh %133 : vector<2x32xf32>
    %135 = arith.mulf %130, %134 : vector<2x32xf32>
    %136 = vector.extract_strided_slice %79 {offsets = [6, 0], sizes = [2, 128], strides = [1, 1]} : vector<16x128xf32> to vector<2x128xf32>
    %cst_78 = arith.constant dense<0.000000e+00> : vector<2x128xf32>
    %137 = tpu.matmul %135, %74, %cst_78 {dimension_numbers = #tpu.dot_dimension_numbers<[1], [0], [0], [1], [0, 0, 1, 1], [], []>} : vector<2x32xf32>, vector<32x128xf32>, vector<2x128xf32> -> vector<2x128xf32>
    %138 = arith.addf %136, %137 : vector<2x128xf32>
    %139 = arith.negf %138 : vector<2x128xf32>
    %140 = math.exp %139 : vector<2x128xf32>
    %cst_79 = arith.constant 1.000000e+00 : f32
    %141 = vector.broadcast %cst_79 : f32 to vector<2x128xf32>
    %142 = arith.addf %141, %140 : vector<2x128xf32>
    %143 = arith.divf %141, %142 : vector<2x128xf32>
    %144 = math.tanh %138 : vector<2x128xf32>
    %145 = vector.extract_strided_slice %143 {offsets = [0, 0], sizes = [2, 32], strides = [1, 1]} : vector<2x128xf32> to vector<2x32xf32>
    %146 = vector.extract_strided_slice %143 {offsets = [0, 32], sizes = [2, 32], strides = [1, 1]} : vector<2x128xf32> to vector<2x32xf32>
    %147 = vector.extract_strided_slice %144 {offsets = [0, 64], sizes = [2, 32], strides = [1, 1]} : vector<2x128xf32> to vector<2x32xf32>
    %148 = vector.extract_strided_slice %143 {offsets = [0, 96], sizes = [2, 32], strides = [1, 1]} : vector<2x128xf32> to vector<2x32xf32>
    %149 = arith.mulf %146, %133 : vector<2x32xf32>
    %150 = arith.mulf %145, %147 : vector<2x32xf32>
    %151 = arith.addf %149, %150 : vector<2x32xf32>
    %152 = math.tanh %151 : vector<2x32xf32>
    %153 = arith.mulf %148, %152 : vector<2x32xf32>
    %154 = vector.extract_strided_slice %79 {offsets = [8, 0], sizes = [2, 128], strides = [1, 1]} : vector<16x128xf32> to vector<2x128xf32>
    %cst_80 = arith.constant dense<0.000000e+00> : vector<2x128xf32>
    %155 = tpu.matmul %153, %74, %cst_80 {dimension_numbers = #tpu.dot_dimension_numbers<[1], [0], [0], [1], [0, 0, 1, 1], [], []>} : vector<2x32xf32>, vector<32x128xf32>, vector<2x128xf32> -> vector<2x128xf32>
    %156 = arith.addf %154, %155 : vector<2x128xf32>
    %157 = arith.negf %156 : vector<2x128xf32>
    %158 = math.exp %157 : vector<2x128xf32>
    %cst_81 = arith.constant 1.000000e+00 : f32
    %159 = vector.broadcast %cst_81 : f32 to vector<2x128xf32>
    %160 = arith.addf %159, %158 : vector<2x128xf32>
    %161 = arith.divf %159, %160 : vector<2x128xf32>
    %162 = math.tanh %156 : vector<2x128xf32>
    %163 = vector.extract_strided_slice %161 {offsets = [0, 0], sizes = [2, 32], strides = [1, 1]} : vector<2x128xf32> to vector<2x32xf32>
    %164 = vector.extract_strided_slice %161 {offsets = [0, 32], sizes = [2, 32], strides = [1, 1]} : vector<2x128xf32> to vector<2x32xf32>
    %165 = vector.extract_strided_slice %162 {offsets = [0, 64], sizes = [2, 32], strides = [1, 1]} : vector<2x128xf32> to vector<2x32xf32>
    %166 = vector.extract_strided_slice %161 {offsets = [0, 96], sizes = [2, 32], strides = [1, 1]} : vector<2x128xf32> to vector<2x32xf32>
    %167 = arith.mulf %164, %151 : vector<2x32xf32>
    %168 = arith.mulf %163, %165 : vector<2x32xf32>
    %169 = arith.addf %167, %168 : vector<2x32xf32>
    %170 = math.tanh %169 : vector<2x32xf32>
    %171 = arith.mulf %166, %170 : vector<2x32xf32>
    %172 = vector.extract_strided_slice %79 {offsets = [10, 0], sizes = [2, 128], strides = [1, 1]} : vector<16x128xf32> to vector<2x128xf32>
    %cst_82 = arith.constant dense<0.000000e+00> : vector<2x128xf32>
    %173 = tpu.matmul %171, %74, %cst_82 {dimension_numbers = #tpu.dot_dimension_numbers<[1], [0], [0], [1], [0, 0, 1, 1], [], []>} : vector<2x32xf32>, vector<32x128xf32>, vector<2x128xf32> -> vector<2x128xf32>
    %174 = arith.addf %172, %173 : vector<2x128xf32>
    %175 = arith.negf %174 : vector<2x128xf32>
    %176 = math.exp %175 : vector<2x128xf32>
    %cst_83 = arith.constant 1.000000e+00 : f32
    %177 = vector.broadcast %cst_83 : f32 to vector<2x128xf32>
    %178 = arith.addf %177, %176 : vector<2x128xf32>
    %179 = arith.divf %177, %178 : vector<2x128xf32>
    %180 = math.tanh %174 : vector<2x128xf32>
    %181 = vector.extract_strided_slice %179 {offsets = [0, 0], sizes = [2, 32], strides = [1, 1]} : vector<2x128xf32> to vector<2x32xf32>
    %182 = vector.extract_strided_slice %179 {offsets = [0, 32], sizes = [2, 32], strides = [1, 1]} : vector<2x128xf32> to vector<2x32xf32>
    %183 = vector.extract_strided_slice %180 {offsets = [0, 64], sizes = [2, 32], strides = [1, 1]} : vector<2x128xf32> to vector<2x32xf32>
    %184 = vector.extract_strided_slice %179 {offsets = [0, 96], sizes = [2, 32], strides = [1, 1]} : vector<2x128xf32> to vector<2x32xf32>
    %185 = arith.mulf %182, %169 : vector<2x32xf32>
    %186 = arith.mulf %181, %183 : vector<2x32xf32>
    %187 = arith.addf %185, %186 : vector<2x32xf32>
    %188 = math.tanh %187 : vector<2x32xf32>
    %189 = arith.mulf %184, %188 : vector<2x32xf32>
    %190 = vector.extract_strided_slice %79 {offsets = [12, 0], sizes = [2, 128], strides = [1, 1]} : vector<16x128xf32> to vector<2x128xf32>
    %cst_84 = arith.constant dense<0.000000e+00> : vector<2x128xf32>
    %191 = tpu.matmul %189, %74, %cst_84 {dimension_numbers = #tpu.dot_dimension_numbers<[1], [0], [0], [1], [0, 0, 1, 1], [], []>} : vector<2x32xf32>, vector<32x128xf32>, vector<2x128xf32> -> vector<2x128xf32>
    %192 = arith.addf %190, %191 : vector<2x128xf32>
    %193 = arith.negf %192 : vector<2x128xf32>
    %194 = math.exp %193 : vector<2x128xf32>
    %cst_85 = arith.constant 1.000000e+00 : f32
    %195 = vector.broadcast %cst_85 : f32 to vector<2x128xf32>
    %196 = arith.addf %195, %194 : vector<2x128xf32>
    %197 = arith.divf %195, %196 : vector<2x128xf32>
    %198 = math.tanh %192 : vector<2x128xf32>
    %199 = vector.extract_strided_slice %197 {offsets = [0, 0], sizes = [2, 32], strides = [1, 1]} : vector<2x128xf32> to vector<2x32xf32>
    %200 = vector.extract_strided_slice %197 {offsets = [0, 32], sizes = [2, 32], strides = [1, 1]} : vector<2x128xf32> to vector<2x32xf32>
    %201 = vector.extract_strided_slice %198 {offsets = [0, 64], sizes = [2, 32], strides = [1, 1]} : vector<2x128xf32> to vector<2x32xf32>
    %202 = vector.extract_strided_slice %197 {offsets = [0, 96], sizes = [2, 32], strides = [1, 1]} : vector<2x128xf32> to vector<2x32xf32>
    %203 = arith.mulf %200, %187 : vector<2x32xf32>
    %204 = arith.mulf %199, %201 : vector<2x32xf32>
    %205 = arith.addf %203, %204 : vector<2x32xf32>
    %206 = math.tanh %205 : vector<2x32xf32>
    %207 = arith.mulf %202, %206 : vector<2x32xf32>
    %208 = vector.extract_strided_slice %79 {offsets = [14, 0], sizes = [2, 128], strides = [1, 1]} : vector<16x128xf32> to vector<2x128xf32>
    %cst_86 = arith.constant dense<0.000000e+00> : vector<2x128xf32>
    %209 = tpu.matmul %207, %74, %cst_86 {dimension_numbers = #tpu.dot_dimension_numbers<[1], [0], [0], [1], [0, 0, 1, 1], [], []>} : vector<2x32xf32>, vector<32x128xf32>, vector<2x128xf32> -> vector<2x128xf32>
    %210 = arith.addf %208, %209 : vector<2x128xf32>
    %211 = arith.negf %210 : vector<2x128xf32>
    %212 = math.exp %211 : vector<2x128xf32>
    %cst_87 = arith.constant 1.000000e+00 : f32
    %213 = vector.broadcast %cst_87 : f32 to vector<2x128xf32>
    %214 = arith.addf %213, %212 : vector<2x128xf32>
    %215 = arith.divf %213, %214 : vector<2x128xf32>
    %216 = math.tanh %210 : vector<2x128xf32>
    %217 = vector.extract_strided_slice %215 {offsets = [0, 0], sizes = [2, 32], strides = [1, 1]} : vector<2x128xf32> to vector<2x32xf32>
    %218 = vector.extract_strided_slice %215 {offsets = [0, 32], sizes = [2, 32], strides = [1, 1]} : vector<2x128xf32> to vector<2x32xf32>
    %219 = vector.extract_strided_slice %216 {offsets = [0, 64], sizes = [2, 32], strides = [1, 1]} : vector<2x128xf32> to vector<2x32xf32>
    %220 = vector.extract_strided_slice %215 {offsets = [0, 96], sizes = [2, 32], strides = [1, 1]} : vector<2x128xf32> to vector<2x32xf32>
    %221 = arith.mulf %218, %205 : vector<2x32xf32>
    %222 = arith.mulf %217, %219 : vector<2x32xf32>
    %223 = arith.addf %221, %222 : vector<2x32xf32>
    %224 = math.tanh %223 : vector<2x32xf32>
    %225 = arith.mulf %220, %224 : vector<2x32xf32>
    tpu.wait_dma2 semaphore(%arg8 : memref<!tpu.dma_semaphore, #tpu.memory_space<semaphore_mem>>) src(%arg4 : memref<2048x32xf32, #tpu.memory_space<any>>) dst(%arg7 : memref<2048x32xf32, #tpu.memory_space<vmem>>)
    %226 = vector.extract_strided_slice %72 {offsets = [0, 0], sizes = [1, 256], strides = [1, 1]} : vector<8x512xf32> to vector<1x256xf32>
    %227 = vector.extract_strided_slice %72 {offsets = [0, 256], sizes = [1, 256], strides = [1, 1]} : vector<8x512xf32> to vector<1x256xf32>
    %228 = tpu.concatenate %226, %227 in 0 : vector<1x256xf32>, vector<1x256xf32> -> vector<2x256xf32>
    %c0_88 = arith.constant 0 : index
    %c0_89 = arith.constant 0 : index
    %229 = vector.load %arg7[%c0_88, %c0_89] : memref<2048x32xf32, #tpu.memory_space<vmem>>, vector<256x32xf32>
    %cst_90 = arith.constant dense<0.000000e+00> : vector<2x32xf32>
    %230 = tpu.matmul %228, %229, %cst_90 {dimension_numbers = #tpu.dot_dimension_numbers<[1], [0], [0], [1], [0, 0, 1, 1], [], []>} : vector<2x256xf32>, vector<256x32xf32>, vector<2x32xf32> -> vector<2x32xf32>
    %231 = vector.extract_strided_slice %72 {offsets = [1, 0], sizes = [1, 256], strides = [1, 1]} : vector<8x512xf32> to vector<1x256xf32>
    %232 = vector.extract_strided_slice %72 {offsets = [1, 256], sizes = [1, 256], strides = [1, 1]} : vector<8x512xf32> to vector<1x256xf32>
    %233 = tpu.concatenate %231, %232 in 0 : vector<1x256xf32>, vector<1x256xf32> -> vector<2x256xf32>
    %c256 = arith.constant 256 : index
    %c0_91 = arith.constant 0 : index
    %234 = vector.load %arg7[%c256, %c0_91] : memref<2048x32xf32, #tpu.memory_space<vmem>>, vector<256x32xf32>
    %cst_92 = arith.constant dense<0.000000e+00> : vector<2x32xf32>
    %235 = tpu.matmul %233, %234, %cst_92 {dimension_numbers = #tpu.dot_dimension_numbers<[1], [0], [0], [1], [0, 0, 1, 1], [], []>} : vector<2x256xf32>, vector<256x32xf32>, vector<2x32xf32> -> vector<2x32xf32>
    %236 = arith.addf %230, %235 : vector<2x32xf32>
    %237 = vector.extract_strided_slice %72 {offsets = [2, 0], sizes = [1, 256], strides = [1, 1]} : vector<8x512xf32> to vector<1x256xf32>
    %238 = vector.extract_strided_slice %72 {offsets = [2, 256], sizes = [1, 256], strides = [1, 1]} : vector<8x512xf32> to vector<1x256xf32>
    %239 = tpu.concatenate %237, %238 in 0 : vector<1x256xf32>, vector<1x256xf32> -> vector<2x256xf32>
    %c512 = arith.constant 512 : index
    %c0_93 = arith.constant 0 : index
    %240 = vector.load %arg7[%c512, %c0_93] : memref<2048x32xf32, #tpu.memory_space<vmem>>, vector<256x32xf32>
    %cst_94 = arith.constant dense<0.000000e+00> : vector<2x32xf32>
    %241 = tpu.matmul %239, %240, %cst_94 {dimension_numbers = #tpu.dot_dimension_numbers<[1], [0], [0], [1], [0, 0, 1, 1], [], []>} : vector<2x256xf32>, vector<256x32xf32>, vector<2x32xf32> -> vector<2x32xf32>
    %242 = arith.addf %236, %241 : vector<2x32xf32>
    %243 = vector.extract_strided_slice %72 {offsets = [3, 0], sizes = [1, 256], strides = [1, 1]} : vector<8x512xf32> to vector<1x256xf32>
    %244 = vector.extract_strided_slice %72 {offsets = [3, 256], sizes = [1, 256], strides = [1, 1]} : vector<8x512xf32> to vector<1x256xf32>
    %245 = tpu.concatenate %243, %244 in 0 : vector<1x256xf32>, vector<1x256xf32> -> vector<2x256xf32>
    %c768 = arith.constant 768 : index
    %c0_95 = arith.constant 0 : index
    %246 = vector.load %arg7[%c768, %c0_95] : memref<2048x32xf32, #tpu.memory_space<vmem>>, vector<256x32xf32>
    %cst_96 = arith.constant dense<0.000000e+00> : vector<2x32xf32>
    %247 = tpu.matmul %245, %246, %cst_96 {dimension_numbers = #tpu.dot_dimension_numbers<[1], [0], [0], [1], [0, 0, 1, 1], [], []>} : vector<2x256xf32>, vector<256x32xf32>, vector<2x32xf32> -> vector<2x32xf32>
    %248 = arith.addf %242, %247 : vector<2x32xf32>
    %249 = vector.extract_strided_slice %72 {offsets = [4, 0], sizes = [1, 256], strides = [1, 1]} : vector<8x512xf32> to vector<1x256xf32>
    %250 = vector.extract_strided_slice %72 {offsets = [4, 256], sizes = [1, 256], strides = [1, 1]} : vector<8x512xf32> to vector<1x256xf32>
    %251 = tpu.concatenate %249, %250 in 0 : vector<1x256xf32>, vector<1x256xf32> -> vector<2x256xf32>
    %c1024 = arith.constant 1024 : index
    %c0_97 = arith.constant 0 : index
    %252 = vector.load %arg7[%c1024, %c0_97] : memref<2048x32xf32, #tpu.memory_space<vmem>>, vector<256x32xf32>
    %cst_98 = arith.constant dense<0.000000e+00> : vector<2x32xf32>
    %253 = tpu.matmul %251, %252, %cst_98 {dimension_numbers = #tpu.dot_dimension_numbers<[1], [0], [0], [1], [0, 0, 1, 1], [], []>} : vector<2x256xf32>, vector<256x32xf32>, vector<2x32xf32> -> vector<2x32xf32>
    %254 = arith.addf %248, %253 : vector<2x32xf32>
    %255 = vector.extract_strided_slice %72 {offsets = [5, 0], sizes = [1, 256], strides = [1, 1]} : vector<8x512xf32> to vector<1x256xf32>
    %256 = vector.extract_strided_slice %72 {offsets = [5, 256], sizes = [1, 256], strides = [1, 1]} : vector<8x512xf32> to vector<1x256xf32>
    %257 = tpu.concatenate %255, %256 in 0 : vector<1x256xf32>, vector<1x256xf32> -> vector<2x256xf32>
    %c1280 = arith.constant 1280 : index
    %c0_99 = arith.constant 0 : index
    %258 = vector.load %arg7[%c1280, %c0_99] : memref<2048x32xf32, #tpu.memory_space<vmem>>, vector<256x32xf32>
    %cst_100 = arith.constant dense<0.000000e+00> : vector<2x32xf32>
    %259 = tpu.matmul %257, %258, %cst_100 {dimension_numbers = #tpu.dot_dimension_numbers<[1], [0], [0], [1], [0, 0, 1, 1], [], []>} : vector<2x256xf32>, vector<256x32xf32>, vector<2x32xf32> -> vector<2x32xf32>
    %260 = arith.addf %254, %259 : vector<2x32xf32>
    %261 = vector.extract_strided_slice %72 {offsets = [6, 0], sizes = [1, 256], strides = [1, 1]} : vector<8x512xf32> to vector<1x256xf32>
    %262 = vector.extract_strided_slice %72 {offsets = [6, 256], sizes = [1, 256], strides = [1, 1]} : vector<8x512xf32> to vector<1x256xf32>
    %263 = tpu.concatenate %261, %262 in 0 : vector<1x256xf32>, vector<1x256xf32> -> vector<2x256xf32>
    %c1536 = arith.constant 1536 : index
    %c0_101 = arith.constant 0 : index
    %264 = vector.load %arg7[%c1536, %c0_101] : memref<2048x32xf32, #tpu.memory_space<vmem>>, vector<256x32xf32>
    %cst_102 = arith.constant dense<0.000000e+00> : vector<2x32xf32>
    %265 = tpu.matmul %263, %264, %cst_102 {dimension_numbers = #tpu.dot_dimension_numbers<[1], [0], [0], [1], [0, 0, 1, 1], [], []>} : vector<2x256xf32>, vector<256x32xf32>, vector<2x32xf32> -> vector<2x32xf32>
    %266 = arith.addf %260, %265 : vector<2x32xf32>
    %267 = vector.extract_strided_slice %72 {offsets = [7, 0], sizes = [1, 256], strides = [1, 1]} : vector<8x512xf32> to vector<1x256xf32>
    %268 = vector.extract_strided_slice %72 {offsets = [7, 256], sizes = [1, 256], strides = [1, 1]} : vector<8x512xf32> to vector<1x256xf32>
    %269 = tpu.concatenate %267, %268 in 0 : vector<1x256xf32>, vector<1x256xf32> -> vector<2x256xf32>
    %c1792 = arith.constant 1792 : index
    %c0_103 = arith.constant 0 : index
    %270 = vector.load %arg7[%c1792, %c0_103] : memref<2048x32xf32, #tpu.memory_space<vmem>>, vector<256x32xf32>
    %cst_104 = arith.constant dense<0.000000e+00> : vector<2x32xf32>
    %271 = tpu.matmul %269, %270, %cst_104 {dimension_numbers = #tpu.dot_dimension_numbers<[1], [0], [0], [1], [0, 0, 1, 1], [], []>} : vector<2x256xf32>, vector<256x32xf32>, vector<2x32xf32> -> vector<2x32xf32>
    %272 = arith.addf %266, %271 : vector<2x32xf32>
    %c65 = arith.constant 65 : index
    %c0_105 = arith.constant 0 : index
    %273 = vector.load %arg3[%c65, %c0_105] : memref<70x128xf32, #tpu.memory_space<vmem>>, vector<1x32xf32>
    %274 = vector.broadcast %273 : vector<1x32xf32> to vector<2x32xf32>
    %275 = arith.addf %272, %274 : vector<2x32xf32>
    %cst_106 = arith.constant 0.000000e+00 : f32
    %276 = vector.broadcast %cst_106 : f32 to vector<2x32xf32>
    %277 = arith.maximumf %275, %276 : vector<2x32xf32>
    %c0_107 = arith.constant 0 : index
    %c0_108 = arith.constant 0 : index
    %278 = vector.load %arg2[%c0_107, %c0_108] : memref<2x1xf32, #tpu.memory_space<vmem>>, vector<2x1xf32>
    %c66 = arith.constant 66 : index
    %c0_109 = arith.constant 0 : index
    %279 = vector.load %arg3[%c66, %c0_109] : memref<70x128xf32, #tpu.memory_space<vmem>>, vector<1x32xf32>
    %280 = vector.broadcast %278 : vector<2x1xf32> to vector<2x32xf32>
    %281 = vector.broadcast %279 : vector<1x32xf32> to vector<2x32xf32>
    %282 = arith.mulf %280, %281 : vector<2x32xf32>
    %c67 = arith.constant 67 : index
    %c0_110 = arith.constant 0 : index
    %283 = vector.load %arg3[%c67, %c0_110] : memref<70x128xf32, #tpu.memory_space<vmem>>, vector<1x32xf32>
    %284 = vector.broadcast %283 : vector<1x32xf32> to vector<2x32xf32>
    %285 = arith.addf %282, %284 : vector<2x32xf32>
    %cst_111 = arith.constant 0.000000e+00 : f32
    %286 = vector.broadcast %cst_111 : f32 to vector<2x32xf32>
    %287 = arith.maximumf %285, %286 : vector<2x32xf32>
    %288 = arith.addf %277, %225 : vector<2x32xf32>
    %289 = arith.addf %288, %287 : vector<2x32xf32>
    %c68 = arith.constant 68 : index
    %c0_112 = arith.constant 0 : index
    %290 = vector.load %arg3[%c68, %c0_112] : memref<70x128xf32, #tpu.memory_space<vmem>>, vector<1x32xf32>
    %291 = vector.broadcast %290 : vector<1x32xf32> to vector<2x32xf32>
    %292 = arith.mulf %289, %291 : vector<2x32xf32>
    %cst_113 = arith.constant dense<0.000000e+00> : vector<2xf32>
    %293 = vector.multi_reduction <add>, %292, %cst_113 [1] : vector<2x32xf32> to vector<2xf32>
    %294 = vector.shape_cast %293 : vector<2xf32> to vector<2x1xf32>
    %c69 = arith.constant 69 : index
    %c0_114 = arith.constant 0 : index
    %295 = vector.load %arg3[%c69, %c0_114] : memref<70x128xf32, #tpu.memory_space<vmem>>, vector<1x1xf32>
    %296 = vector.broadcast %295 : vector<1x1xf32> to vector<2x1xf32>
    %297 = arith.addf %294, %296 : vector<2x1xf32>
    %c0_115 = arith.constant 0 : index
    %c0_116 = arith.constant 0 : index
    %298 = vector.load %arg5[%c0_115, %c0_116] : memref<2x1xf32, #tpu.memory_space<vmem>>, vector<2x1xf32>
    tpu.vector_store %arg5[%c0_115, %c0_116], %297 {strides = array<i32>} : memref<2x1xf32, #tpu.memory_space<vmem>>, vector<2x1xf32>,
    return
  }
}

</mosaic_0001>

<bundles_post_ra>
// kernel: forward_pallas.1
= control target key start
LH: loop header
LB: loop body
LE: loop exit
PB: predicated region body
PF: predicated region fallthrough
CT: control target
= control target key end

     0   :  { %s4431_s7 = smov 112   ;;  %s4432_s8 = smov 127   ;;  %s6503_s0 = inlined_call_operand.vmem [shape: f32[1,512], index: 0, kind: input, shape index: {}]   ;;  %s6504_s1 = inlined_call_operand.vmem [shape: f32[16,8], index: 1, kind: input, shape index: {}]   ;;  %s6505_s2 = inlined_call_operand.vmem [shape: f32[2,1], index: 2, kind: input, shape index: {}]   ;;  %s6506_s3 = inlined_call_operand.vmem [shape: f32[70,128], index: 3, kind: input, shape index: {}]   ;;  %s6507_s4 = inlined_call_operand.vmem [shape: f32[2048,32], index: 4, kind: input, shape index: {}]   ;;  %s6508_s5 = inlined_call_operand.vmem [shape: f32[2,1], index: 5, kind: output, shape index: {}]  }
   0x1   :  { %v4480_v0 = vld [vmem:[%s6507_s4] sm:$0xff]  ;;  %v4485_v1 = vld [vmem:[%s6507_s4 + $0x8] sm:$0xff]  ;;  %v4490_v2 = vld [vmem:[%s6507_s4 + $0x10] sm:$0xff] }
   0x2   :  { %v4495_v3 = vld [vmem:[%s6507_s4 + $0x18] sm:$0xff]  ;;  %v4500_v4 = vld [vmem:[%s6507_s4 + $0x20] sm:$0xff]  ;;  %v4505_v5 = vld [vmem:[%s6507_s4 + $0x28] sm:$0xff] }
   0x3   :  { %v4510_v6 = vld [vmem:[%s6507_s4 + $0x30] sm:$0xff]  ;;  %v4515_v7 = vld [vmem:[%s6507_s4 + $0x38] sm:$0xff]  ;;  %v4520_v8 = vld [vmem:[%s6507_s4 + $0x40] sm:$0xff] }
   0x4   :  { %6513 = vst [vmem:[#allocation7_spill] sm:$0xff] %v4510_v6  ;;  %6514 = vst [vmem:[#allocation8_spill] sm:$0xff] %v4515_v7  ;;  %v4525_v9 = vld [vmem:[%s6507_s4 + $0x48] sm:$0xff]  ;;  %v4530_v10 = vld [vmem:[%s6507_s4 + $0x50] sm:$0xff] }
   0x5   :  { %6515 = vst [vmem:[#allocation9_spill] sm:$0xff] %v4520_v8  ;;  %6516 = vst [vmem:[#allocation10_spill] sm:$0xff] %v4525_v9  ;;  %v4535_v11 = vld [vmem:[%s6507_s4 + $0x58] sm:$0xff]  ;;  %v4540_v12 = vld [vmem:[%s6507_s4 + $0x60] sm:$0xff] }
   0x6   :  { %6517 = vst [vmem:[#allocation11_spill] sm:$0xff] %v4530_v10  ;;  %6518 = vst [vmem:[#allocation12_spill] sm:$0xff] %v4535_v11  ;;  %v4545_v13 = vld [vmem:[%s6507_s4 + $0x68] sm:$0xff]  ;;  %v4550_v14 = vld [vmem:[%s6507_s4 + $0x70] sm:$0xff] }
   0x7   :  { %6519 = vst [vmem:[#allocation13_spill] sm:$0xff] %v4540_v12  ;;  %6520 = vst [vmem:[#allocation14_spill] sm:$0xff] %v4545_v13  ;;  %v4555_v15 = vld [vmem:[%s6507_s4 + $0x78] sm:$0xff]  ;;  %v4560_v16 = vld [vmem:[%s6507_s4 + $0x80] sm:$0xff] }
   0x8   :  { %6521 = vst [vmem:[#allocation15_spill] sm:$0xff] %v4550_v14  ;;  %6522 = vst [vmem:[#allocation16_spill] sm:$0xff] %v4555_v15  ;;  %v4565_v17 = vld [vmem:[%s6507_s4 + $0x88] sm:$0xff]  ;;  %v4570_v18 = vld [vmem:[%s6507_s4 + $0x90] sm:$0xff] }
   0x9   :  { %v4575_v19 = vld [vmem:[%s6507_s4 + $0x98] sm:$0xff]  ;;  %v4580_v20 = vld [vmem:[%s6507_s4 + $0xa0] sm:$0xff]  ;;  %v4585_v21 = vld [vmem:[%s6507_s4 + $0xa8] sm:$0xff] }
   0xa   :  { %v4590_v22 = vld [vmem:[%s6507_s4 + $0xb0] sm:$0xff]  ;;  %v4595_v23 = vld [vmem:[%s6507_s4 + $0xb8] sm:$0xff]  ;;  %v4600_v24 = vld [vmem:[%s6507_s4 + $0xc0] sm:$0xff] }
   0xb   :  { %6523 = vst [vmem:[#allocation17_spill] sm:$0xff] %v4600_v24  ;;  %v4605_v25 = vld [vmem:[%s6507_s4 + $0xc8] sm:$0xff]  ;;  %v4610_v26 = vld [vmem:[%s6507_s4 + $0xd0] sm:$0xff]  ;;  %v4615_v27 = vld [vmem:[%s6507_s4 + $0xd8] sm:$0xff] }
   0xc   :  { %6524 = vst [vmem:[#allocation18_spill] sm:$0xff] %v4605_v25  ;;  %6525 = vst [vmem:[#allocation19_spill] sm:$0xff] %v4610_v26  ;;  %v4620_v28 = vld [vmem:[%s6507_s4 + $0xe0] sm:$0xff]  ;;  %v4625_v29 = vld [vmem:[%s6507_s4 + $0xe8] sm:$0xff] }
   0xd   :  { %6526 = vst [vmem:[#allocation20_spill] sm:$0xff] %v4615_v27  ;;  %6527 = vst [vmem:[#allocation21_spill] sm:$0xff] %v4620_v28  ;;  %v4630_v30 = vld [vmem:[%s6507_s4 + $0xf0] sm:$0xff]  ;;  %v4635_v31 = vld [vmem:[%s6507_s4 + $0xf8] sm:$0xff] }
   0xe   :  { %6528 = vst [vmem:[#allocation22_spill] sm:$0xff] %v4625_v29  ;;  %6529 = vst [vmem:[#allocation23_spill] sm:$0xff] %v4630_v30  ;;  %v4640_v32 = vld [vmem:[%s6507_s4 + $0x100] sm:$0xff]  ;;  %v4645_v33 = vld [vmem:[%s6507_s4 + $0x108] sm:$0xff] }
   0xf   :  { %6530 = vst [vmem:[#allocation24_spill] sm:$0xff] %v4635_v31  ;;  %v4650_v34 = vld [vmem:[%s6507_s4 + $0x110] sm:$0xff]  ;;  %v4655_v35 = vld [vmem:[%s6507_s4 + $0x118] sm:$0xff]  ;;  %v4660_v36 = vld [vmem:[%s6507_s4 + $0x120] sm:$0xff] }
  0x10   :  { %v4665_v37 = vld [vmem:[%s6507_s4 + $0x128] sm:$0xff]  ;;  %v4670_v38 = vld [vmem:[%s6507_s4 + $0x130] sm:$0xff]  ;;  %v4675_v39 = vld [vmem:[%s6507_s4 + $0x138] sm:$0xff] }
  0x11   :  { %v4680_v40 = vld [vmem:[%s6507_s4 + $0x140] sm:$0xff]  ;;  %v4685_v41 = vld [vmem:[%s6507_s4 + $0x148] sm:$0xff]  ;;  %v4690_v42 = vld [vmem:[%s6507_s4 + $0x150] sm:$0xff] }
  0x12   :  { %6531 = vst [vmem:[#allocation25_spill] sm:$0xff] %v4680_v40  ;;  %6532 = vst [vmem:[#allocation26_spill] sm:$0xff] %v4685_v41  ;;  %v4695_v43 = vld [vmem:[%s6507_s4 + $0x158] sm:$0xff]  ;;  %v4700_v44 = vld [vmem:[%s6507_s4 + $0x160] sm:$0xff] }
  0x13   :  { %6533 = vst [vmem:[#allocation27_spill] sm:$0xff] %v4690_v42  ;;  %6534 = vst [vmem:[#allocation28_spill] sm:$0xff] %v4695_v43  ;;  %v4705_v45 = vld [vmem:[%s6507_s4 + $0x168] sm:$0xff]  ;;  %v4710_v46 = vld [vmem:[%s6507_s4 + $0x170] sm:$0xff] }
  0x14   :  { %6535 = vst [vmem:[#allocation29_spill] sm:$0xff] %v4700_v44  ;;  %6536 = vst [vmem:[#allocation30_spill] sm:$0xff] %v4705_v45  ;;  %v4715_v47 = vld [vmem:[%s6507_s4 + $0x178] sm:$0xff]  ;;  %v4720_v48 = vld [vmem:[%s6507_s4 + $0x180] sm:$0xff] }
  0x15   :  { %6537 = vst [vmem:[#allocation31_spill] sm:$0xff] %v4710_v46  ;;  %6538 = vst [vmem:[#allocation32_spill] sm:$0xff] %v4715_v47  ;;  %v4725_v49 = vld [vmem:[%s6507_s4 + $0x188] sm:$0xff]  ;;  %v4730_v50 = vld [vmem:[%s6507_s4 + $0x190] sm:$0xff] }
  0x16   :  { %v4735_v51 = vld [vmem:[%s6507_s4 + $0x198] sm:$0xff]  ;;  %v4740_v52 = vld [vmem:[%s6507_s4 + $0x1a0] sm:$0xff]  ;;  %v4745_v53 = vld [vmem:[%s6507_s4 + $0x1a8] sm:$0xff] }
  0x17   :  { %v4750_v54 = vld [vmem:[%s6507_s4 + $0x1b0] sm:$0xff]  ;;  %v4755_v55 = vld [vmem:[%s6507_s4 + $0x1b8] sm:$0xff]  ;;  %v4760_v56 = vld [vmem:[%s6507_s4 + $0x1c0] sm:$0xff] }
  0x18   :  { %6539 = vst [vmem:[#allocation33_spill] sm:$0xff] %v4760_v56  ;;  %v4765_v57 = vld [vmem:[%s6507_s4 + $0x1c8] sm:$0xff]  ;;  %v4770_v58 = vld [vmem:[%s6507_s4 + $0x1d0] sm:$0xff]  ;;  %v4775_v59 = vld [vmem:[%s6507_s4 + $0x1d8] sm:$0xff] }
  0x19   :  { %6540 = vst [vmem:[#allocation34_spill] sm:$0xff] %v4765_v57  ;;  %6541 = vst [vmem:[#allocation35_spill] sm:$0xff] %v4770_v58  ;;  %v4780_v60 = vld [vmem:[%s6507_s4 + $0x1e0] sm:$0xff]  ;;  %v4785_v61 = vld [vmem:[%s6507_s4 + $0x1e8] sm:$0xff] }
  0x1a   :  { %6542 = vst [vmem:[#allocation36_spill] sm:$0xff] %v4775_v59  ;;  %6543 = vst [vmem:[#allocation37_spill] sm:$0xff] %v4780_v60  ;;  %v4790_v62 = vld [vmem:[%s6507_s4 + $0x1f0] sm:$0xff]  ;;  %v4795_v63 = vld [vmem:[%s6507_s4 + $0x1f8] sm:$0xff] }
  0x1b   :  { %6544 = vst [vmem:[#allocation38_spill] sm:$0xff] %v4785_v61  ;;  %6545 = vst [vmem:[#allocation39_spill] sm:$0xff] %v4790_v62  ;;  %v4800_v15 = vld [vmem:[%s6507_s4 + $0x200] sm:$0xff]  ;;  %v4805_v14 = vld [vmem:[%s6507_s4 + $0x208] sm:$0xff] }
  0x1c   :  { %6546 = vst [vmem:[#allocation40_spill] sm:$0xff] %v4795_v63  ;;  %6547 = vst [vmem:[#allocation41_spill] sm:$0xff] %v4800_v15  ;;  %v4810_v47 = vld [vmem:[%s6507_s4 + $0x210] sm:$0xff]  ;;  %v4815_v46 = vld [vmem:[%s6507_s4 + $0x218] sm:$0xff] }
  0x1d   :  { %6548 = vst [vmem:[#allocation42_spill] sm:$0xff] %v4805_v14  ;;  %6549 = vst [vmem:[#allocation43_spill] sm:$0xff] %v4810_v47  ;;  %v4820_v31 = vld [vmem:[%s6507_s4 + $0x220] sm:$0xff]  ;;  %v4825_v15 = vld [vmem:[%s6507_s4 + $0x228] sm:$0xff] }
  0x1e   :  { %6550 = vst [vmem:[#allocation44_spill] sm:$0xff] %v4815_v46  ;;  %6551 = vst [vmem:[#allocation45_spill] sm:$0xff] %v4820_v31  ;;  %v4830_v14 = vld [vmem:[%s6507_s4 + $0x230] sm:$0xff]  ;;  %v4835_v47 = vld [vmem:[%s6507_s4 + $0x238] sm:$0xff] }
  0x1f   :  { %6552 = vst [vmem:[#allocation46_spill] sm:$0xff] %v4825_v15  ;;  %6553 = vst [vmem:[#allocation47_spill] sm:$0xff] %v4830_v14  ;;  %v4840_v46 = vld [vmem:[%s6507_s4 + $0x240] sm:$0xff]  ;;  %v4845_v31 = vld [vmem:[%s6507_s4 + $0x248] sm:$0xff] }
  0x20   :  { %6554 = vst [vmem:[#allocation48_spill] sm:$0xff] %v4835_v47  ;;  %6555 = vst [vmem:[#allocation49_spill] sm:$0xff] %v4840_v46  ;;  %v4850_v15 = vld [vmem:[%s6507_s4 + $0x250] sm:$0xff]  ;;  %v4855_v14 = vld [vmem:[%s6507_s4 + $0x258] sm:$0xff] }
  0x21   :  { %6556 = vst [vmem:[#allocation50_spill] sm:$0xff] %v4845_v31  ;;  %6557 = vst [vmem:[#allocation51_spill] sm:$0xff] %v4850_v15  ;;  %v4860_v47 = vld [vmem:[%s6507_s4 + $0x260] sm:$0xff]  ;;  %v4865_v46 = vld [vmem:[%s6507_s4 + $0x268] sm:$0xff] }
  0x22   :  { %6558 = vst [vmem:[#allocation52_spill] sm:$0xff] %v4855_v14  ;;  %6559 = vst [vmem:[#allocation53_spill] sm:$0xff] %v4860_v47  ;;  %v4870_v31 = vld [vmem:[%s6507_s4 + $0x270] sm:$0xff]  ;;  %v4875_v15 = vld [vmem:[%s6507_s4 + $0x278] sm:$0xff] }
  0x23   :  { %6560 = vst [vmem:[#allocation54_spill] sm:$0xff] %v4865_v46  ;;  %6561 = vst [vmem:[#allocation55_spill] sm:$0xff] %v4870_v31  ;;  %v4880_v14 = vld [vmem:[%s6507_s4 + $0x280] sm:$0xff]  ;;  %v4885_v47 = vld [vmem:[%s6507_s4 + $0x288] sm:$0xff] }
  0x24   :  { %6562 = vst [vmem:[#allocation56_spill] sm:$0xff] %v4875_v15  ;;  %6563 = vst [vmem:[#allocation57_spill] sm:$0xff] %v4880_v14  ;;  %v4890_v46 = vld [vmem:[%s6507_s4 + $0x290] sm:$0xff]  ;;  %v4895_v31 = vld [vmem:[%s6507_s4 + $0x298] sm:$0xff] }
  0x25   :  { %6564 = vst [vmem:[#allocation58_spill] sm:$0xff] %v4885_v47  ;;  %6565 = vst [vmem:[#allocation59_spill] sm:$0xff] %v4890_v46  ;;  %v4900_v15 = vld [vmem:[%s6507_s4 + $0x2a0] sm:$0xff]  ;;  %v4905_v14 = vld [vmem:[%s6507_s4 + $0x2a8] sm:$0xff] }
  0x26   :  { %6566 = vst [vmem:[#allocation60_spill] sm:$0xff] %v4895_v31  ;;  %6567 = vst [vmem:[#allocation61_spill] sm:$0xff] %v4900_v15  ;;  %v4910_v47 = vld [vmem:[%s6507_s4 + $0x2b0] sm:$0xff]  ;;  %v4915_v46 = vld [vmem:[%s6507_s4 + $0x2b8] sm:$0xff] }
  0x27   :  { %6568 = vst [vmem:[#allocation62_spill] sm:$0xff] %v4905_v14  ;;  %6569 = vst [vmem:[#allocation63_spill] sm:$0xff] %v4910_v47  ;;  %v4920_v31 = vld [vmem:[%s6507_s4 + $0x2c0] sm:$0xff]  ;;  %v4925_v15 = vld [vmem:[%s6507_s4 + $0x2c8] sm:$0xff] }
  0x28   :  { %6570 = vst [vmem:[#allocation64_spill] sm:$0xff] %v4915_v46  ;;  %6571 = vst [vmem:[#allocation65_spill] sm:$0xff] %v4920_v31  ;;  %v4930_v14 = vld [vmem:[%s6507_s4 + $0x2d0] sm:$0xff]  ;;  %v4935_v47 = vld [vmem:[%s6507_s4 + $0x2d8] sm:$0xff] }
  0x29   :  { %6572 = vst [vmem:[#allocation66_spill] sm:$0xff] %v4925_v15  ;;  %6573 = vst [vmem:[#allocation67_spill] sm:$0xff] %v4930_v14  ;;  %v4940_v46 = vld [vmem:[%s6507_s4 + $0x2e0] sm:$0xff]  ;;  %v4945_v31 = vld [vmem:[%s6507_s4 + $0x2e8] sm:$0xff] }
  0x2a   :  { %6574 = vst [vmem:[#allocation68_spill] sm:$0xff] %v4935_v47  ;;  %6575 = vst [vmem:[#allocation69_spill] sm:$0xff] %v4940_v46  ;;  %v4950_v15 = vld [vmem:[%s6507_s4 + $0x2f0] sm:$0xff]  ;;  %v4955_v14 = vld [vmem:[%s6507_s4 + $0x2f8] sm:$0xff] }
  0x2b   :  { %6576 = vst [vmem:[#allocation70_spill] sm:$0xff] %v4945_v31  ;;  %6577 = vst [vmem:[#allocation71_spill] sm:$0xff] %v4950_v15  ;;  %v4960_v47 = vld [vmem:[%s6507_s4 + $0x300] sm:$0xff]  ;;  %v4965_v46 = vld [vmem:[%s6507_s4 + $0x308] sm:$0xff] }
  0x2c   :  { %6578 = vst [vmem:[#allocation72_spill] sm:$0xff] %v4955_v14  ;;  %6579 = vst [vmem:[#allocation73_spill] sm:$0xff] %v4960_v47  ;;  %v4970_v31 = vld [vmem:[%s6507_s4 + $0x310] sm:$0xff]  ;;  %v4975_v15 = vld [vmem:[%s6507_s4 + $0x318] sm:$0xff] }
  0x2d   :  { %6580 = vst [vmem:[#allocation74_spill] sm:$0xff] %v4965_v46  ;;  %6581 = vst [vmem:[#allocation75_spill] sm:$0xff] %v4970_v31  ;;  %v4980_v14 = vld [vmem:[%s6507_s4 + $0x320] sm:$0xff]  ;;  %v4985_v47 = vld [vmem:[%s6507_s4 + $0x328] sm:$0xff] }
  0x2e   :  { %6582 = vst [vmem:[#allocation76_spill] sm:$0xff] %v4975_v15  ;;  %6583 = vst [vmem:[#allocation77_spill] sm:$0xff] %v4980_v14  ;;  %v4990_v46 = vld [vmem:[%s6507_s4 + $0x330] sm:$0xff]  ;;  %v4995_v31 = vld [vmem:[%s6507_s4 + $0x338] sm:$0xff] }
  0x2f   :  { %6584 = vst [vmem:[#allocation78_spill] sm:$0xff] %v4985_v47  ;;  %6585 = vst [vmem:[#allocation79_spill] sm:$0xff] %v4990_v46  ;;  %v5000_v15 = vld [vmem:[%s6507_s4 + $0x340] sm:$0xff]  ;;  %v5005_v14 = vld [vmem:[%s6507_s4 + $0x348] sm:$0xff] }
  0x30   :  { %6586 = vst [vmem:[#allocation80_spill] sm:$0xff] %v4995_v31  ;;  %6587 = vst [vmem:[#allocation81_spill] sm:$0xff] %v5000_v15  ;;  %v5010_v47 = vld [vmem:[%s6507_s4 + $0x350] sm:$0xff]  ;;  %v5015_v46 = vld [vmem:[%s6507_s4 + $0x358] sm:$0xff] }
  0x31   :  { %6588 = vst [vmem:[#allocation82_spill] sm:$0xff] %v5005_v14  ;;  %6589 = vst [vmem:[#allocation83_spill] sm:$0xff] %v5010_v47  ;;  %v5020_v31 = vld [vmem:[%s6507_s4 + $0x360] sm:$0xff]  ;;  %v5025_v15 = vld [vmem:[%s6507_s4 + $0x368] sm:$0xff] }
  0x32   :  { %6590 = vst [vmem:[#allocation84_spill] sm:$0xff] %v5015_v46  ;;  %6591 = vst [vmem:[#allocation85_spill] sm:$0xff] %v5020_v31  ;;  %v5030_v14 = vld [vmem:[%s6507_s4 + $0x370] sm:$0xff]  ;;  %v5035_v47 = vld [vmem:[%s6507_s4 + $0x378] sm:$0xff] }
  0x33   :  { %6592 = vst [vmem:[#allocation86_spill] sm:$0xff] %v5025_v15  ;;  %6593 = vst [vmem:[#allocation87_spill] sm:$0xff] %v5030_v14  ;;  %v5040_v46 = vld [vmem:[%s6507_s4 + $0x380] sm:$0xff]  ;;  %v5045_v31 = vld [vmem:[%s6507_s4 + $0x388] sm:$0xff] }
  0x34   :  { %6594 = vst [vmem:[#allocation88_spill] sm:$0xff] %v5035_v47  ;;  %6595 = vst [vmem:[#allocation89_spill] sm:$0xff] %v5040_v46  ;;  %v5050_v15 = vld [vmem:[%s6507_s4 + $0x390] sm:$0xff]  ;;  %v5055_v14 = vld [vmem:[%s6507_s4 + $0x398] sm:$0xff] }
  0x35   :  { %6596 = vst [vmem:[#allocation90_spill] sm:$0xff] %v5045_v31  ;;  %6597 = vst [vmem:[#allocation91_spill] sm:$0xff] %v5050_v15  ;;  %v5060_v47 = vld [vmem:[%s6507_s4 + $0x3a0] sm:$0xff]  ;;  %v5065_v46 = vld [vmem:[%s6507_s4 + $0x3a8] sm:$0xff] }
  0x36   :  { %6598 = vst [vmem:[#allocation92_spill] sm:$0xff] %v5055_v14  ;;  %6599 = vst [vmem:[#allocation93_spill] sm:$0xff] %v5060_v47  ;;  %v5070_v31 = vld [vmem:[%s6507_s4 + $0x3b0] sm:$0xff]  ;;  %v5075_v15 = vld [vmem:[%s6507_s4 + $0x3b8] sm:$0xff] }
  0x37   :  { %6600 = vst [vmem:[#allocation94_spill] sm:$0xff] %v5065_v46  ;;  %6601 = vst [vmem:[#allocation95_spill] sm:$0xff] %v5070_v31  ;;  %v5080_v14 = vld [vmem:[%s6507_s4 + $0x3c0] sm:$0xff]  ;;  %v5085_v47 = vld [vmem:[%s6507_s4 + $0x3c8] sm:$0xff] }
  0x38   :  { %6602 = vst [vmem:[#allocation96_spill] sm:$0xff] %v5075_v15  ;;  %6603 = vst [vmem:[#allocation97_spill] sm:$0xff] %v5080_v14  ;;  %v5090_v46 = vld [vmem:[%s6507_s4 + $0x3d0] sm:$0xff]  ;;  %v5095_v31 = vld [vmem:[%s6507_s4 + $0x3d8] sm:$0xff] }
  0x39   :  { %6604 = vst [vmem:[#allocation98_spill] sm:$0xff] %v5085_v47  ;;  %6605 = vst [vmem:[#allocation99_spill] sm:$0xff] %v5090_v46  ;;  %v5100_v15 = vld [vmem:[%s6507_s4 + $0x3e0] sm:$0xff]  ;;  %v5105_v14 = vld [vmem:[%s6507_s4 + $0x3e8] sm:$0xff] }
  0x3a   :  { %6606 = vst [vmem:[#allocation100_spill] sm:$0xff] %v5095_v31  ;;  %6607 = vst [vmem:[#allocation101_spill] sm:$0xff] %v5100_v15  ;;  %v5110_v47 = vld [vmem:[%s6507_s4 + $0x3f0] sm:$0xff]  ;;  %v5115_v46 = vld [vmem:[%s6507_s4 + $0x3f8] sm:$0xff] }
  0x3b   :  { %6608 = vst [vmem:[#allocation102_spill] sm:$0xff] %v5105_v14  ;;  %6609 = vst [vmem:[#allocation103_spill] sm:$0xff] %v5110_v47  ;;  %v5120_v31 = vld [vmem:[%s6507_s4 + $0x400] sm:$0xff]  ;;  %v5125_v15 = vld [vmem:[%s6507_s4 + $0x408] sm:$0xff] }
  0x3c   :  { %6610 = vst [vmem:[#allocation104_spill] sm:$0xff] %v5115_v46  ;;  %6611 = vst [vmem:[#allocation105_spill] sm:$0xff] %v5120_v31  ;;  %v5130_v14 = vld [vmem:[%s6507_s4 + $0x410] sm:$0xff]  ;;  %v5135_v47 = vld [vmem:[%s6507_s4 + $0x418] sm:$0xff] }
  0x3d   :  { %6612 = vst [vmem:[#allocation106_spill] sm:$0xff] %v5125_v15  ;;  %6613 = vst [vmem:[#allocation107_spill] sm:$0xff] %v5130_v14  ;;  %v5140_v46 = vld [vmem:[%s6507_s4 + $0x420] sm:$0xff]  ;;  %v5145_v31 = vld [vmem:[%s6507_s4 + $0x428] sm:$0xff] }
  0x3e   :  { %6614 = vst [vmem:[#allocation108_spill] sm:$0xff] %v5135_v47  ;;  %6615 = vst [vmem:[#allocation109_spill] sm:$0xff] %v5140_v46  ;;  %v5150_v15 = vld [vmem:[%s6507_s4 + $0x430] sm:$0xff]  ;;  %v5155_v14 = vld [vmem:[%s6507_s4 + $0x438] sm:$0xff] }
  0x3f   :  { %6616 = vst [vmem:[#allocation110_spill] sm:$0xff] %v5145_v31  ;;  %6617 = vst [vmem:[#allocation111_spill] sm:$0xff] %v5150_v15  ;;  %v5160_v47 = vld [vmem:[%s6507_s4 + $0x440] sm:$0xff]  ;;  %v5165_v46 = vld [vmem:[%s6507_s4 + $0x448] sm:$0xff] }
  0x40   :  { %6618 = vst [vmem:[#allocation112_spill] sm:$0xff] %v5155_v14  ;;  %6619 = vst [vmem:[#allocation113_spill] sm:$0xff] %v5160_v47  ;;  %v5170_v31 = vld [vmem:[%s6507_s4 + $0x450] sm:$0xff]  ;;  %v5175_v15 = vld [vmem:[%s6507_s4 + $0x458] sm:$0xff] }
  0x41   :  { %6620 = vst [vmem:[#allocation114_spill] sm:$0xff] %v5165_v46  ;;  %6621 = vst [vmem:[#allocation115_spill] sm:$0xff] %v5170_v31  ;;  %v5180_v14 = vld [vmem:[%s6507_s4 + $0x460] sm:$0xff]  ;;  %v5185_v47 = vld [vmem:[%s6507_s4 + $0x468] sm:$0xff] }
  0x42   :  { %6622 = vst [vmem:[#allocation116_spill] sm:$0xff] %v5175_v15  ;;  %6623 = vst [vmem:[#allocation117_spill] sm:$0xff] %v5180_v14  ;;  %v5190_v46 = vld [vmem:[%s6507_s4 + $0x470] sm:$0xff]  ;;  %v5195_v31 = vld [vmem:[%s6507_s4 + $0x478] sm:$0xff] }
  0x43   :  { %6624 = vst [vmem:[#allocation118_spill] sm:$0xff] %v5185_v47  ;;  %6625 = vst [vmem:[#allocation119_spill] sm:$0xff] %v5190_v46  ;;  %v5200_v15 = vld [vmem:[%s6507_s4 + $0x480] sm:$0xff]  ;;  %v5205_v14 = vld [vmem:[%s6507_s4 + $0x488] sm:$0xff] }
  0x44   :  { %6626 = vst [vmem:[#allocation120_spill] sm:$0xff] %v5195_v31  ;;  %6627 = vst [vmem:[#allocation121_spill] sm:$0xff] %v5200_v15  ;;  %v5210_v47 = vld [vmem:[%s6507_s4 + $0x490] sm:$0xff]  ;;  %v5215_v46 = vld [vmem:[%s6507_s4 + $0x498] sm:$0xff] }
  0x45   :  { %6628 = vst [vmem:[#allocation122_spill] sm:$0xff] %v5205_v14  ;;  %6629 = vst [vmem:[#allocation123_spill] sm:$0xff] %v5210_v47  ;;  %v5220_v31 = vld [vmem:[%s6507_s4 + $0x4a0] sm:$0xff]  ;;  %v5225_v15 = vld [vmem:[%s6507_s4 + $0x4a8] sm:$0xff] }
  0x46   :  { %6630 = vst [vmem:[#allocation124_spill] sm:$0xff] %v5215_v46  ;;  %6631 = vst [vmem:[#allocation125_spill] sm:$0xff] %v5220_v31  ;;  %v5230_v14 = vld [vmem:[%s6507_s4 + $0x4b0] sm:$0xff]  ;;  %v5235_v47 = vld [vmem:[%s6507_s4 + $0x4b8] sm:$0xff] }
  0x47   :  { %6632 = vst [vmem:[#allocation126_spill] sm:$0xff] %v5225_v15  ;;  %6633 = vst [vmem:[#allocation127_spill] sm:$0xff] %v5230_v14  ;;  %v5240_v46 = vld [vmem:[%s6507_s4 + $0x4c0] sm:$0xff]  ;;  %v5245_v31 = vld [vmem:[%s6507_s4 + $0x4c8] sm:$0xff] }
  0x48   :  { %6634 = vst [vmem:[#allocation128_spill] sm:$0xff] %v5235_v47  ;;  %6635 = vst [vmem:[#allocation129_spill] sm:$0xff] %v5240_v46  ;;  %v5250_v15 = vld [vmem:[%s6507_s4 + $0x4d0] sm:$0xff]  ;;  %v5255_v14 = vld [vmem:[%s6507_s4 + $0x4d8] sm:$0xff] }
  0x49   :  { %6636 = vst [vmem:[#allocation130_spill] sm:$0xff] %v5245_v31  ;;  %6637 = vst [vmem:[#allocation131_spill] sm:$0xff] %v5250_v15  ;;  %v5260_v47 = vld [vmem:[%s6507_s4 + $0x4e0] sm:$0xff]  ;;  %v5265_v46 = vld [vmem:[%s6507_s4 + $0x4e8] sm:$0xff] }
  0x4a   :  { %6638 = vst [vmem:[#allocation132_spill] sm:$0xff] %v5255_v14  ;;  %6639 = vst [vmem:[#allocation133_spill] sm:$0xff] %v5260_v47  ;;  %v5270_v31 = vld [vmem:[%s6507_s4 + $0x4f0] sm:$0xff]  ;;  %v5275_v15 = vld [vmem:[%s6507_s4 + $0x4f8] sm:$0xff] }
  0x4b   :  { %6640 = vst [vmem:[#allocation134_spill] sm:$0xff] %v5265_v46  ;;  %6641 = vst [vmem:[#allocation135_spill] sm:$0xff] %v5270_v31  ;;  %v5280_v14 = vld [vmem:[%s6507_s4 + $0x500] sm:$0xff]  ;;  %v5285_v47 = vld [vmem:[%s6507_s4 + $0x508] sm:$0xff] }
  0x4c   :  { %6642 = vst [vmem:[#allocation136_spill] sm:$0xff] %v5275_v15  ;;  %6643 = vst [vmem:[#allocation137_spill] sm:$0xff] %v5280_v14  ;;  %v5290_v46 = vld [vmem:[%s6507_s4 + $0x510] sm:$0xff]  ;;  %v5295_v31 = vld [vmem:[%s6507_s4 + $0x518] sm:$0xff] }
  0x4d   :  { %6644 = vst [vmem:[#allocation138_spill] sm:$0xff] %v5285_v47  ;;  %6645 = vst [vmem:[#allocation139_spill] sm:$0xff] %v5290_v46  ;;  %v5300_v15 = vld [vmem:[%s6507_s4 + $0x520] sm:$0xff]  ;;  %v5305_v14 = vld [vmem:[%s6507_s4 + $0x528] sm:$0xff] }
  0x4e   :  { %6646 = vst [vmem:[#allocation140_spill] sm:$0xff] %v5295_v31  ;;  %6647 = vst [vmem:[#allocation141_spill] sm:$0xff] %v5300_v15  ;;  %v5310_v47 = vld [vmem:[%s6507_s4 + $0x530] sm:$0xff]  ;;  %v5315_v46 = vld [vmem:[%s6507_s4 + $0x538] sm:$0xff] }
  0x4f   :  { %6648 = vst [vmem:[#allocation142_spill] sm:$0xff] %v5305_v14  ;;  %6649 = vst [vmem:[#allocation143_spill] sm:$0xff] %v5310_v47  ;;  %v5320_v31 = vld [vmem:[%s6507_s4 + $0x540] sm:$0xff]  ;;  %v5325_v15 = vld [vmem:[%s6507_s4 + $0x548] sm:$0xff] }
  0x50   :  { %6650 = vst [vmem:[#allocation144_spill] sm:$0xff] %v5315_v46  ;;  %6651 = vst [vmem:[#allocation145_spill] sm:$0xff] %v5320_v31  ;;  %v5330_v14 = vld [vmem:[%s6507_s4 + $0x550] sm:$0xff]  ;;  %v5335_v47 = vld [vmem:[%s6507_s4 + $0x558] sm:$0xff] }
  0x51   :  { %6652 = vst [vmem:[#allocation146_spill] sm:$0xff] %v5325_v15  ;;  %6653 = vst [vmem:[#allocation147_spill] sm:$0xff] %v5330_v14  ;;  %v5340_v46 = vld [vmem:[%s6507_s4 + $0x560] sm:$0xff]  ;;  %v5345_v31 = vld [vmem:[%s6507_s4 + $0x568] sm:$0xff] }
  0x52   :  { %6654 = vst [vmem:[#allocation148_spill] sm:$0xff] %v5335_v47  ;;  %6655 = vst [vmem:[#allocation149_spill] sm:$0xff] %v5340_v46  ;;  %v5350_v15 = vld [vmem:[%s6507_s4 + $0x570] sm:$0xff]  ;;  %v5355_v14 = vld [vmem:[%s6507_s4 + $0x578] sm:$0xff] }
  0x53   :  { %6656 = vst [vmem:[#allocation150_spill] sm:$0xff] %v5345_v31  ;;  %6657 = vst [vmem:[#allocation151_spill] sm:$0xff] %v5350_v15  ;;  %v5360_v47 = vld [vmem:[%s6507_s4 + $0x580] sm:$0xff]  ;;  %v5365_v46 = vld [vmem:[%s6507_s4 + $0x588] sm:$0xff] }
  0x54   :  { %6658 = vst [vmem:[#allocation152_spill] sm:$0xff] %v5355_v14  ;;  %6659 = vst [vmem:[#allocation153_spill] sm:$0xff] %v5360_v47  ;;  %v5370_v31 = vld [vmem:[%s6507_s4 + $0x590] sm:$0xff]  ;;  %v5375_v15 = vld [vmem:[%s6507_s4 + $0x598] sm:$0xff] }
  0x55   :  { %6660 = vst [vmem:[#allocation154_spill] sm:$0xff] %v5365_v46  ;;  %6661 = vst [vmem:[#allocation155_spill] sm:$0xff] %v5370_v31  ;;  %v5380_v14 = vld [vmem:[%s6507_s4 + $0x5a0] sm:$0xff]  ;;  %v5385_v47 = vld [vmem:[%s6507_s4 + $0x5a8] sm:$0xff] }
  0x56   :  { %6662 = vst [vmem:[#allocation156_spill] sm:$0xff] %v5375_v15  ;;  %6663 = vst [vmem:[#allocation157_spill] sm:$0xff] %v5380_v14  ;;  %v5390_v46 = vld [vmem:[%s6507_s4 + $0x5b0] sm:$0xff]  ;;  %v5395_v31 = vld [vmem:[%s6507_s4 + $0x5b8] sm:$0xff] }
  0x57   :  { %6664 = vst [vmem:[#allocation158_spill] sm:$0xff] %v5385_v47  ;;  %6665 = vst [vmem:[#allocation159_spill] sm:$0xff] %v5390_v46  ;;  %v5400_v15 = vld [vmem:[%s6507_s4 + $0x5c0] sm:$0xff]  ;;  %v5405_v14 = vld [vmem:[%s6507_s4 + $0x5c8] sm:$0xff] }
  0x58   :  { %6666 = vst [vmem:[#allocation160_spill] sm:$0xff] %v5395_v31  ;;  %6667 = vst [vmem:[#allocation161_spill] sm:$0xff] %v5400_v15  ;;  %v5410_v47 = vld [vmem:[%s6507_s4 + $0x5d0] sm:$0xff]  ;;  %v5415_v46 = vld [vmem:[%s6507_s4 + $0x5d8] sm:$0xff] }
  0x59   :  { %6668 = vst [vmem:[#allocation162_spill] sm:$0xff] %v5405_v14  ;;  %6669 = vst [vmem:[#allocation163_spill] sm:$0xff] %v5410_v47  ;;  %v5420_v31 = vld [vmem:[%s6507_s4 + $0x5e0] sm:$0xff]  ;;  %v5425_v15 = vld [vmem:[%s6507_s4 + $0x5e8] sm:$0xff] }
  0x5a   :  { %6670 = vst [vmem:[#allocation164_spill] sm:$0xff] %v5415_v46  ;;  %6671 = vst [vmem:[#allocation165_spill] sm:$0xff] %v5420_v31  ;;  %v5430_v14 = vld [vmem:[%s6507_s4 + $0x5f0] sm:$0xff]  ;;  %v5435_v47 = vld [vmem:[%s6507_s4 + $0x5f8] sm:$0xff] }
  0x5b   :  { %6672 = vst [vmem:[#allocation166_spill] sm:$0xff] %v5425_v15  ;;  %6673 = vst [vmem:[#allocation167_spill] sm:$0xff] %v5430_v14  ;;  %v5440_v46 = vld [vmem:[%s6507_s4 + $0x600] sm:$0xff]  ;;  %v5445_v31 = vld [vmem:[%s6507_s4 + $0x608] sm:$0xff] }
  0x5c   :  { %6674 = vst [vmem:[#allocation168_spill] sm:$0xff] %v5435_v47  ;;  %6675 = vst [vmem:[#allocation169_spill] sm:$0xff] %v5440_v46  ;;  %v5450_v15 = vld [vmem:[%s6507_s4 + $0x610] sm:$0xff]  ;;  %v5455_v14 = vld [vmem:[%s6507_s4 + $0x618] sm:$0xff] }
  0x5d   :  { %6676 = vst [vmem:[#allocation170_spill] sm:$0xff] %v5445_v31  ;;  %6677 = vst [vmem:[#allocation171_spill] sm:$0xff] %v5450_v15  ;;  %v5460_v47 = vld [vmem:[%s6507_s4 + $0x620] sm:$0xff]  ;;  %v5465_v46 = vld [vmem:[%s6507_s4 + $0x628] sm:$0xff] }
  0x5e   :  { %6678 = vst [vmem:[#allocation172_spill] sm:$0xff] %v5455_v14  ;;  %6679 = vst [vmem:[#allocation173_spill] sm:$0xff] %v5460_v47  ;;  %v5470_v31 = vld [vmem:[%s6507_s4 + $0x630] sm:$0xff]  ;;  %v5475_v15 = vld [vmem:[%s6507_s4 + $0x638] sm:$0xff] }
  0x5f   :  { %6680 = vst [vmem:[#allocation174_spill] sm:$0xff] %v5465_v46  ;;  %6681 = vst [vmem:[#allocation175_spill] sm:$0xff] %v5470_v31  ;;  %v5480_v14 = vld [vmem:[%s6507_s4 + $0x640] sm:$0xff]  ;;  %v5485_v47 = vld [vmem:[%s6507_s4 + $0x648] sm:$0xff] }
  0x60   :  { %6682 = vst [vmem:[#allocation176_spill] sm:$0xff] %v5475_v15  ;;  %6683 = vst [vmem:[#allocation177_spill] sm:$0xff] %v5480_v14  ;;  %v5490_v46 = vld [vmem:[%s6507_s4 + $0x650] sm:$0xff]  ;;  %v5495_v31 = vld [vmem:[%s6507_s4 + $0x658] sm:$0xff] }
  0x61   :  { %6684 = vst [vmem:[#allocation178_spill] sm:$0xff] %v5485_v47  ;;  %6685 = vst [vmem:[#allocation179_spill] sm:$0xff] %v5490_v46  ;;  %v5500_v15 = vld [vmem:[%s6507_s4 + $0x660] sm:$0xff]  ;;  %v5505_v14 = vld [vmem:[%s6507_s4 + $0x668] sm:$0xff] }
  0x62   :  { %6686 = vst [vmem:[#allocation180_spill] sm:$0xff] %v5495_v31  ;;  %6687 = vst [vmem:[#allocation181_spill] sm:$0xff] %v5500_v15  ;;  %v5510_v47 = vld [vmem:[%s6507_s4 + $0x670] sm:$0xff]  ;;  %v5515_v46 = vld [vmem:[%s6507_s4 + $0x678] sm:$0xff] }
  0x63   :  { %6688 = vst [vmem:[#allocation182_spill] sm:$0xff] %v5505_v14  ;;  %6689 = vst [vmem:[#allocation183_spill] sm:$0xff] %v5510_v47  ;;  %v5520_v31 = vld [vmem:[%s6507_s4 + $0x680] sm:$0xff]  ;;  %v5525_v15 = vld [vmem:[%s6507_s4 + $0x688] sm:$0xff] }
  0x64   :  { %6690 = vst [vmem:[#allocation184_spill] sm:$0xff] %v5515_v46  ;;  %6691 = vst [vmem:[#allocation185_spill] sm:$0xff] %v5520_v31  ;;  %v5530_v14 = vld [vmem:[%s6507_s4 + $0x690] sm:$0xff]  ;;  %v5535_v47 = vld [vmem:[%s6507_s4 + $0x698] sm:$0xff] }
  0x65   :  { %6692 = vst [vmem:[#allocation186_spill] sm:$0xff] %v5525_v15  ;;  %6693 = vst [vmem:[#allocation187_spill] sm:$0xff] %v5530_v14  ;;  %v5540_v46 = vld [vmem:[%s6507_s4 + $0x6a0] sm:$0xff]  ;;  %v5545_v31 = vld [vmem:[%s6507_s4 + $0x6a8] sm:$0xff] }
  0x66   :  { %6694 = vst [vmem:[#allocation188_spill] sm:$0xff] %v5535_v47  ;;  %6695 = vst [vmem:[#allocation189_spill] sm:$0xff] %v5540_v46  ;;  %v5550_v15 = vld [vmem:[%s6507_s4 + $0x6b0] sm:$0xff]  ;;  %v5555_v14 = vld [vmem:[%s6507_s4 + $0x6b8] sm:$0xff] }
  0x67   :  { %6696 = vst [vmem:[#allocation190_spill] sm:$0xff] %v5545_v31  ;;  %6697 = vst [vmem:[#allocation191_spill] sm:$0xff] %v5550_v15  ;;  %v5560_v47 = vld [vmem:[%s6507_s4 + $0x6c0] sm:$0xff]  ;;  %v5565_v46 = vld [vmem:[%s6507_s4 + $0x6c8] sm:$0xff] }
  0x68   :  { %6698 = vst [vmem:[#allocation192_spill] sm:$0xff] %v5555_v14  ;;  %6699 = vst [vmem:[#allocation193_spill] sm:$0xff] %v5560_v47  ;;  %v5570_v31 = vld [vmem:[%s6507_s4 + $0x6d0] sm:$0xff]  ;;  %v5575_v15 = vld [vmem:[%s6507_s4 + $0x6d8] sm:$0xff] }
  0x69   :  { %6700 = vst [vmem:[#allocation194_spill] sm:$0xff] %v5565_v46  ;;  %6701 = vst [vmem:[#allocation195_spill] sm:$0xff] %v5570_v31  ;;  %v5580_v14 = vld [vmem:[%s6507_s4 + $0x6e0] sm:$0xff]  ;;  %v5585_v47 = vld [vmem:[%s6507_s4 + $0x6e8] sm:$0xff] }
  0x6a   :  { %6702 = vst [vmem:[#allocation196_spill] sm:$0xff] %v5575_v15  ;;  %6703 = vst [vmem:[#allocation197_spill] sm:$0xff] %v5580_v14  ;;  %v5590_v46 = vld [vmem:[%s6507_s4 + $0x6f0] sm:$0xff]  ;;  %v5595_v31 = vld [vmem:[%s6507_s4 + $0x6f8] sm:$0xff] }
  0x6b   :  { %6704 = vst [vmem:[#allocation198_spill] sm:$0xff] %v5585_v47  ;;  %6705 = vst [vmem:[#allocation199_spill] sm:$0xff] %v5590_v46  ;;  %v5600_v15 = vld [vmem:[%s6507_s4 + $0x700] sm:$0xff]  ;;  %v5605_v14 = vld [vmem:[%s6507_s4 + $0x708] sm:$0xff] }
  0x6c   :  { %6706 = vst [vmem:[#allocation200_spill] sm:$0xff] %v5595_v31  ;;  %6707 = vst [vmem:[#allocation201_spill] sm:$0xff] %v5600_v15  ;;  %v5610_v47 = vld [vmem:[%s6507_s4 + $0x710] sm:$0xff]  ;;  %v5615_v46 = vld [vmem:[%s6507_s4 + $0x718] sm:$0xff] }
  0x6d   :  { %6708 = vst [vmem:[#allocation202_spill] sm:$0xff] %v5605_v14  ;;  %6709 = vst [vmem:[#allocation203_spill] sm:$0xff] %v5610_v47  ;;  %v5620_v31 = vld [vmem:[%s6507_s4 + $0x720] sm:$0xff]  ;;  %v5625_v15 = vld [vmem:[%s6507_s4 + $0x728] sm:$0xff] }
  0x6e   :  { %6710 = vst [vmem:[#allocation204_spill] sm:$0xff] %v5615_v46  ;;  %6711 = vst [vmem:[#allocation205_spill] sm:$0xff] %v5620_v31  ;;  %v5630_v14 = vld [vmem:[%s6507_s4 + $0x730] sm:$0xff]  ;;  %v5635_v47 = vld [vmem:[%s6507_s4 + $0x738] sm:$0xff] }
  0x6f   :  { %6712 = vst [vmem:[#allocation206_spill] sm:$0xff] %v5625_v15  ;;  %6713 = vst [vmem:[#allocation207_spill] sm:$0xff] %v5630_v14  ;;  %v5640_v46 = vld [vmem:[%s6507_s4 + $0x740] sm:$0xff]  ;;  %v5645_v31 = vld [vmem:[%s6507_s4 + $0x748] sm:$0xff] }
  0x70   :  { %6714 = vst [vmem:[#allocation208_spill] sm:$0xff] %v5635_v47  ;;  %6715 = vst [vmem:[#allocation209_spill] sm:$0xff] %v5640_v46  ;;  %v5650_v15 = vld [vmem:[%s6507_s4 + $0x750] sm:$0xff]  ;;  %v5655_v14 = vld [vmem:[%s6507_s4 + $0x758] sm:$0xff] }
  0x71   :  { %6716 = vst [vmem:[#allocation210_spill] sm:$0xff] %v5645_v31  ;;  %6717 = vst [vmem:[#allocation211_spill] sm:$0xff] %v5650_v15  ;;  %v5660_v47 = vld [vmem:[%s6507_s4 + $0x760] sm:$0xff]  ;;  %v5665_v46 = vld [vmem:[%s6507_s4 + $0x768] sm:$0xff] }
  0x72   :  { %6718 = vst [vmem:[#allocation212_spill] sm:$0xff] %v5655_v14  ;;  %6719 = vst [vmem:[#allocation213_spill] sm:$0xff] %v5660_v47  ;;  %v5670_v31 = vld [vmem:[%s6507_s4 + $0x770] sm:$0xff]  ;;  %v5675_v15 = vld [vmem:[%s6507_s4 + $0x778] sm:$0xff] }
  0x73   :  { %6720 = vst [vmem:[#allocation214_spill] sm:$0xff] %v5665_v46  ;;  %6721 = vst [vmem:[#allocation215_spill] sm:$0xff] %v5670_v31  ;;  %v5680_v14 = vld [vmem:[%s6507_s4 + $0x780] sm:$0xff]  ;;  %v5685_v47 = vld [vmem:[%s6507_s4 + $0x788] sm:$0xff] }
  0x74   :  { %6722 = vst [vmem:[#allocation216_spill] sm:$0xff] %v5675_v15  ;;  %6723 = vst [vmem:[#allocation217_spill] sm:$0xff] %v5680_v14  ;;  %v5690_v46 = vld [vmem:[%s6507_s4 + $0x790] sm:$0xff]  ;;  %v5695_v31 = vld [vmem:[%s6507_s4 + $0x798] sm:$0xff] }
  0x75   :  { %6724 = vst [vmem:[#allocation218_spill] sm:$0xff] %v5685_v47  ;;  %6725 = vst [vmem:[#allocation219_spill] sm:$0xff] %v5690_v46  ;;  %v5700_v15 = vld [vmem:[%s6507_s4 + $0x7a0] sm:$0xff]  ;;  %v5705_v14 = vld [vmem:[%s6507_s4 + $0x7a8] sm:$0xff] }
  0x76   :  { %6726 = vst [vmem:[#allocation220_spill] sm:$0xff] %v5695_v31  ;;  %6727 = vst [vmem:[#allocation221_spill] sm:$0xff] %v5700_v15  ;;  %v5710_v47 = vld [vmem:[%s6507_s4 + $0x7b0] sm:$0xff]  ;;  %v5715_v46 = vld [vmem:[%s6507_s4 + $0x7b8] sm:$0xff] }
  0x77   :  { %6728 = vst [vmem:[#allocation222_spill] sm:$0xff] %v5705_v14  ;;  %6729 = vst [vmem:[#allocation223_spill] sm:$0xff] %v5710_v47  ;;  %v5720_v31 = vld [vmem:[%s6507_s4 + $0x7c0] sm:$0xff]  ;;  %v5725_v15 = vld [vmem:[%s6507_s4 + $0x7c8] sm:$0xff] }
  0x78   :  { %6730 = vst [vmem:[#allocation224_spill] sm:$0xff] %v5715_v46  ;;  %6731 = vst [vmem:[#allocation225_spill] sm:$0xff] %v5720_v31  ;;  %v5730_v14 = vld [vmem:[%s6507_s4 + $0x7d0] sm:$0xff]  ;;  %v5735_v47 = vld [vmem:[%s6507_s4 + $0x7d8] sm:$0xff] }
  0x79   :  { %6732 = vst [vmem:[#allocation226_spill] sm:$0xff] %v5725_v15  ;;  %6733 = vst [vmem:[#allocation227_spill] sm:$0xff] %v5730_v14  ;;  %v5740_v46 = vld [vmem:[%s6507_s4 + $0x7e0] sm:$0xff]  ;;  %v5745_v31 = vld [vmem:[%s6507_s4 + $0x7e8] sm:$0xff] }
  0x7a   :  { %6734 = vst [vmem:[#allocation228_spill] sm:$0xff] %v5735_v47  ;;  %6735 = vst [vmem:[#allocation229_spill] sm:$0xff] %v5740_v46  ;;  %v5750_v15 = vld [vmem:[%s6507_s4 + $0x7f0] sm:$0xff]  ;;  %v5755_v14 = vld [vmem:[%s6507_s4 + $0x7f8] sm:$0xff]  ;;  %v6509_v46 = vmov 0.0  }
  0x7b   :  { %6736 = vst [vmem:[#allocation230_spill] sm:$0xff] %v5745_v31  ;;  %6737 = vst [vmem:[#allocation231_spill] sm:$0xff] %v5750_v15  ;;  %v610_v47 = vld [vmem:[%s6503_s0] sm:$0xf]  ;;  %v6511_v31 = vlaneseq  ;;  %799 = vmatprep.mubr.f32.mxu0 %v6509_v46  ;;  %870 = vmatprep.mubr.f32.mxu1 %v6509_v46 }
  0x7c   :  { %6738 = vst [vmem:[#allocation232_spill] sm:$0xff] %v5755_v14  ;;  %640 = vrot.lane.b32.xlu1 %v610_v47, %s4431_s7  ;;  %618 = vrot.lane.b32.xlu0 %v610_v47, %s4432_s8  ;;  %570 = vst [vmem:[#allocation2] sm:$0xff] %v6509_v46 }
  0x7d   :  { %571 = vst [vmem:[#allocation2 + $0x8] sm:$0xff] %v6509_v46  ;;  %572 = vst [vmem:[#allocation2 + $0x10] sm:$0xff] %v6509_v46  ;;  %vm613_vm0 = vcmp.lt.s32.totalorder %v6511_v31, 512 }
  0x7e   :  { %573 = vst [vmem:[#allocation2 + $0x18] sm:$0xff] %v6509_v46  ;;  %574 = vst [vmem:[#allocation2 + $0x20] sm:$0xff] %v6509_v46 }
  0x7f   :  { %575 = vst [vmem:[#allocation2 + $0x28] sm:$0xff] %v6509_v46  ;;  %576 = vst [vmem:[#allocation2 + $0x30] sm:$0xff] %v6509_v46 }
  0x80   :  { %577 = vst [vmem:[#allocation2 + $0x38] sm:$0xff] %v6509_v46  ;;  %578 = vst [vmem:[#allocation2 + $0x40] sm:$0xff] %v6509_v46 }
  0x81   :  { %579 = vst [vmem:[#allocation2 + $0x48] sm:$0xff] %v6509_v46  ;;  %580 = vst [vmem:[#allocation2 + $0x50] sm:$0xff] %v6509_v46 }
  0x82   :  { %581 = vst [vmem:[#allocation2 + $0x58] sm:$0xff] %v6509_v46  ;;  %582 = vst [vmem:[#allocation2 + $0x60] sm:$0xff] %v6509_v46 }
  0x83   :  { %583 = vst [vmem:[#allocation2 + $0x68] sm:$0xff] %v6509_v46  ;;  %584 = vst [vmem:[#allocation2 + $0x70] sm:$0xff] %v6509_v46 }
  0x84   :  { %585 = vst [vmem:[#allocation2 + $0x78] sm:$0xff] %v6509_v46  ;;  %586 = vst [vmem:[#allocation2 + $0x80] sm:$0xff] %v6509_v46 }
  0x85   :  { %587 = vst [vmem:[#allocation2 + $0x88] sm:$0xff] %v6509_v46  ;;  %588 = vst [vmem:[#allocation2 + $0x90] sm:$0xff] %v6509_v46 }
  0x86   :  { %589 = vst [vmem:[#allocation2 + $0x98] sm:$0xff] %v6509_v46  ;;  %593 = vst [vmem:[#allocation2 + $0xb8] sm:$0xff] %v6509_v46 }
  0x87   :  { %597 = vst [vmem:[#allocation2 + $0xd8] sm:$0xff] %v6509_v46  ;;  %601 = vst [vmem:[#allocation2 + $0xf8] sm:$0xff] %v6509_v46 }
  0x88   :  { %605 = vst [vmem:[#allocation2 + $0x118] sm:$0xff] %v6509_v46  ;;  %606 = vst [vmem:[#allocation2 + $0x120] sm:$0x1] %v6509_v46 }
  0x89   :  { %607 = vst [vmem:[#allocation2 + $0x128] sm:$0x1] %v6509_v46  ;;  %608 = vst [vmem:[#allocation2 + $0x130] sm:$0x1] %v6509_v46 }
  0x8a   :  { %609 = vst [vmem:[#allocation2 + $0x138] sm:$0x1] %v6509_v46  ;;  %615 = vst.msk [vmem:[#allocation2] ss:$8 sm:$0xf] %vm613_vm0, %v610_v47 }
  0x8b   :  { %569 = vsyncadd [#allocation4], 32768  ;;  %s4434_s0 = smov 111   ;;  %s4435_s4 = smov 126   ;;  %v4436_v14 = vmov 1.0   ;;  %vm643_vm1 = vcmask 916480   ;;  %v6739_v15 = vlaneseq }
  0x8c   :  { %651 = vrot.lane.b32.xlu1 %v610_v47, %s4434_s0  ;;  %629 = vrot.lane.b32.xlu0 %v610_v47, %s4435_s4  ;;  %707 = vst.msk [vmem:[#allocation2 + $0x21] ss:$8 sm:$0xf] %vm613_vm0, %v4436_v14  ;;  %1054 = vst.msk [vmem:[#allocation2 + $0x84] ss:$8 sm:$0xf] %vm613_vm0, %v4436_v14 }
  0x8d   :  { %1401 = vst.msk [vmem:[#allocation2 + $0x120] ss:$8 sm:$0xf] %vm613_vm0, %v4436_v14  ;;  %s4437_s9 = smov 96   ;;  %s4438_s10 = smov 110   ;;  %vm621_vm2 = vcmask 1039360  }
  0x8e   :  { %s4439_s11 = smov 94   ;;  %s4440_s12 = smov 95   ;;  %vm646_vm3 = vcmp.lt.s32.totalorder %v6739_v15, 496  ;;  %vm624_vm4 = vcmp.lt.s32.totalorder %v6739_v15, 511  ;;  %vm654_vm5 = vcmask 908288   ;;  %vm632_vm6 = vcmask 1031168  }
  0x8f   :  { %vm657_vm7 = vcmp.lt.s32.totalorder %v6739_v15, 495  ;;  %vm635_vm8 = vcmp.lt.s32.totalorder %v6739_v15, 510  ;;  %vm676_vm9 = vcmask 785408   ;;  %vm665_vm10 = vcmask 900096  }
  0x90   :  { %673 = vrot.lane.b32.xlu1 %v610_v47, %s4437_s9  ;;  %662 = vrot.lane.b32.xlu0 %v610_v47, %s4438_s10  ;;  %vm679_vm11 = vcmp.lt.s32.totalorder %v6739_v15, 480  ;;  %vm668_vm12 = vcmp.lt.s32.totalorder %v6739_v15, 494  ;;  %vm698_vm13 = vcmask 769024   ;;  %vm687_vm14 = vcmask 777216  }
  0x91   :  { %vm701_vm15 = vcmp.lt.s32.totalorder %v6739_v15, 478  ;;  %vm690_vm0 = vcmp.lt.s32.totalorder %v6739_v15, 479 }
  0x94   :  { %695 = vrot.lane.b32.xlu1 %v610_v47, %s4439_s11  ;;  %684 = vrot.lane.b32.xlu0 %v610_v47, %s4440_s12 }
  0xee   :  { %v641_v46 = vpop.permute.xlu1 %640  ;;  %v619_v31 = vpop.permute.xlu0 %618 }
  0xef   :  { %v642_v30 = vrot.slane %v641_v46, 1  ;;  %v620_v14 = vrot.slane %v619_v31, 1 }
  0xf1   :  { %v644_v63 = vsel %vm643_vm1, %v641_v46, %v642_v30  ;;  %v622_v62 = vsel %vm621_vm2, %v619_v31, %v620_v14 }
  0xf2   :  { %649 = vst.msk [vmem:[#allocation2 + $0x3] ss:$8 sm:$0xf] %vm646_vm3, %v644_v63  ;;  %vm722_vm3 = vcmask 1041408  }
  0xf3   :  { %627 = vst.msk [vmem:[#allocation2 + $0x1] ss:$8 sm:$0xf] %vm624_vm4, %v622_v62  ;;  %vm4441_vm4 = vmmov 1  }
  0xfe   :  { %v652_v13 = vpop.permute.xlu1 %651  ;;  %v630_v47 = vpop.permute.xlu0 %629 }
  0xff   :  { %v653_v12 = vrot.slane %v652_v13, 1  ;;  %v631_v45 = vrot.slane %v630_v47, 1 }
 0x101   :  { %v655_v44 = vsel %vm654_vm5, %v652_v13, %v653_v12  ;;  %v633_v29 = vsel %vm632_vm6, %v630_v47, %v631_v45 }
 0x102   :  { %660 = vst.msk [vmem:[#allocation2 + $0x4] ss:$8 sm:$0xf] %vm657_vm7, %v655_v44  ;;  %v674_v30 = vpop.permute.xlu1 %673  ;;  %v663_v31 = vpop.permute.xlu0 %662  ;;  %vm5816_vm7 = vmpackc.low %vm722_vm3, %vm4441_vm4  ;;  %vm951_vm3 = vcmask 916484  }
 0x103   :  { %638 = vst.msk [vmem:[#allocation2 + $0x2] ss:$8 sm:$0xf] %vm635_vm8, %v633_v29  ;;  %v675_v46 = vrot.slane %v674_v30, 1  ;;  %v664_v62 = vrot.slane %v663_v31, 1  ;;  %vm718_vm8 = vcmask 80896  }
 0x105   :  { %v677_v63 = vsel %vm676_vm9, %v674_v30, %v675_v46  ;;  %v666_v14 = vsel %vm665_vm10, %v663_v31, %v664_v62 }
 0x106   :  { %682 = vst.msk [vmem:[#allocation2 + $0x6] ss:$8 sm:$0xf] %vm679_vm11, %v677_v63  ;;  %v696_v12 = vpop.permute.xlu1 %695  ;;  %v685_v13 = vpop.permute.xlu0 %684  ;;  %vm931_vm11 = vcmask 1027072  }
 0x107   :  { %671 = vst.msk [vmem:[#allocation2 + $0x5] ss:$8 sm:$0xf] %vm668_vm12, %v666_v14  ;;  %v697_v29 = vrot.slane %v696_v12, 1  ;;  %v686_v44 = vrot.slane %v685_v13, 1  ;;  %vm971_vm12 = vcmask 904192  }
 0x109   :  { %v699_v45 = vsel %vm698_vm13, %v696_v12, %v697_v29  ;;  %v688_v47 = vsel %vm687_vm14, %v685_v13, %v686_v44 }
 0x10a   :  { %704 = vst.msk [vmem:[#allocation2 + $0x20] ss:$8 sm:$0xf] %vm701_vm15, %v699_v45  ;;  %v709_v45 = vld [vmem:[%s6506_s3] sm:$0xf]  ;;  %vm1011_vm15 = vcmask 781312  }
 0x10b   :  { %693 = vst.msk [vmem:[#allocation2 + $0x7] ss:$8 sm:$0xf] %vm690_vm0, %v688_v47  ;;  %vm911_vm0 = vcmask 1039364  }
 0x111   :  { %v715_v46 = vld [vmem:[#allocation2 + $0x28] sm:$0x3]  ;;  %v717_v14 = vld [vmem:[#allocation2 + $0x38] sm:$0x3]  ;;  %v714_v28 = vld [vmem:[#allocation2 + $0x20] sm:$0x3] }
 0x112   :  { %v711_v31 = vld [vmem:[#allocation2 + $0x8] sm:$0xff]  ;;  %v713_v62 = vld [vmem:[#allocation2 + $0x18] sm:$0xff]  ;;  %v710_v15 = vld [vmem:[#allocation2] sm:$0xff] }
 0x113   :  { %v3972_v63 = vpack.c.bf16 %v715_v46, %v711_v31  ;;  %v3978_v61 = vpack.c.bf16 %v717_v14, %v713_v62  ;;  %v3975_v12 = vpack.c.bf16 %v714_v28, %v710_v15  ;;  %v712_v29 = vld [vmem:[#allocation2 + $0x10] sm:$0xff]  ;;  %v6742_v28 = vmov 0.0  }
 0x114   :  { %v716_v13 = vld [vmem:[#allocation2 + $0x30] sm:$0x3] }
 0x115   :  { %3974 = vmatprep.subr.msk.bf16.mxu0 %vm5816_vm7, %v3972_v63  ;;  %v3981_v44 = vpack.c.bf16 %v716_v13, %v712_v29  ;;  %3980 = vmatprep.subr.msk.bf16.mxu1 %vm5816_vm7, %v3978_v61 }
 0x116   :  { %3977 = vmatpush1.bf16.msk.msra.mxu0 %vm5816_vm7, %v3975_v12 }
 0x117   :  { %3983 = vmatpush1.bf16.msk.msra.mxu1 %vm5816_vm7, %v3981_v44  ;;  %vm991_vm7 = vcmask 900100  }
 0x119   :  { %3516 = vmatmul.mubr.msk.f32.vlgmr.msra.gmra.mrb[0].mxu0 %vm718_vm8, %v709_v45 }
 0x11a   :  { %3519 = vmatmul.mubr.msk.f32.vlgmr.msra.gmra.mrb[0].mxu1 %vm718_vm8, %v709_v45  ;;  %1158 = vmatprep.mubr.f32.mxu0 %v6742_v28  ;;  %vm1031_vm8 = vcmask 777220  }
 0x11b   :  { %1229 = vmatprep.mubr.f32.mxu1 %v6742_v28 }
 0x1ec   :  { %v801_v47 = vpop.f32.mrb[0].mxu0 }
 0x1ed   :  { %v877_v31 = vmax.f32 %v801_v47, 0.0  ;;  %v872_v61 = vpop.f32.mrb[0].mxu1  ;;  %v803_v46 = vpop.f32.mrb[1].mxu0 }
 0x1ee   :  { %v879_v62 = vmax.f32 %v872_v61, 0.0  ;;  %v874_v63 = vpop.f32.mrb[1].mxu1  ;;  %v878_v14 = vmax.f32 %v803_v46, 0.0 }
 0x1ef   :  { %881 = vst [vmem:[#allocation2] sm:$0xf] %v877_v31  ;;  %v880_v15 = vmax.f32 %v874_v63, 0.0  ;;  %913 = vrot.lane.b32.xlu0 %v877_v31, %s4435_s4  ;;  %v889_v30 = vrot.slane %v877_v31, 4 }
 0x1f0   :  { %883 = vst [vmem:[#allocation2 + $0x10] sm:$0xf] %v879_v62  ;;  %917 = vrot.lane.b32.xlu1 %v879_v62, %s4435_s4  ;;  %882 = vst [vmem:[#allocation2 + $0x8] sm:$0xf] %v878_v14  ;;  %v891_v12 = vrot.slane %v879_v62, 4  ;;  %v890_v29 = vrot.slane %v878_v14, 4 }
 0x1f1   :  { %884 = vst [vmem:[#allocation2 + $0x18] sm:$0xf] %v880_v15  ;;  %v892_v13 = vrot.slane %v880_v15, 4 }
 0x1f3   :  { %953 = vrot.lane.b32.xlu0 %v877_v31, %s4434_s0 }
 0x1f4   :  { %957 = vrot.lane.b32.xlu1 %v879_v62, %s4434_s0 }
 0x1f7   :  { %993 = vrot.lane.b32.xlu0 %v877_v31, %s4437_s9 }
 0x1f8   :  { %997 = vrot.lane.b32.xlu1 %v879_v62, %s4437_s9 }
 0x1fb   :  { %915 = vrot.lane.b32.xlu0 %v878_v14, %s4435_s4 }
 0x1fc   :  { %919 = vrot.lane.b32.xlu1 %v880_v15, %s4435_s4 }
 0x1ff   :  { %955 = vrot.lane.b32.xlu0 %v878_v14, %s4434_s0 }
 0x200   :  { %959 = vrot.lane.b32.xlu1 %v880_v15, %s4434_s0 }
 0x203   :  { %995 = vrot.lane.b32.xlu0 %v878_v14, %s4437_s9 }
 0x204   :  { %999 = vrot.lane.b32.xlu1 %v880_v15, %s4437_s9 }
 0x207   :  { %893 = vrot.lane.b32.xlu0 %v889_v30, %s4432_s8 }
 0x208   :  { %897 = vrot.lane.b32.xlu1 %v891_v12, %s4432_s8 }
 0x20b   :  { %933 = vrot.lane.b32.xlu0 %v889_v30, %s4431_s7 }
 0x20c   :  { %937 = vrot.lane.b32.xlu1 %v891_v12, %s4431_s7 }
 0x20f   :  { %973 = vrot.lane.b32.xlu0 %v889_v30, %s4438_s10 }
 0x210   :  { %977 = vrot.lane.b32.xlu1 %v891_v12, %s4438_s10 }
 0x213   :  { %1013 = vrot.lane.b32.xlu0 %v889_v30, %s4440_s12 }
 0x214   :  { %1017 = vrot.lane.b32.xlu1 %v891_v12, %s4440_s12 }
 0x217   :  { %895 = vrot.lane.b32.xlu0 %v890_v29, %s4432_s8 }
 0x218   :  { %899 = vrot.lane.b32.xlu1 %v892_v13, %s4432_s8 }
 0x21b   :  { %935 = vrot.lane.b32.xlu0 %v890_v29, %s4431_s7 }
 0x21c   :  { %939 = vrot.lane.b32.xlu1 %v892_v13, %s4431_s7 }
 0x21f   :  { %975 = vrot.lane.b32.xlu0 %v890_v29, %s4438_s10 }
 0x220   :  { %979 = vrot.lane.b32.xlu1 %v892_v13, %s4438_s10 }
 0x223   :  { %1015 = vrot.lane.b32.xlu0 %v890_v29, %s4440_s12 }
 0x224   :  { %1019 = vrot.lane.b32.xlu1 %v892_v13, %s4440_s12 }
 0x227   :  { %1035 = vrot.lane.b32.xlu0 %v878_v14, %s4439_s11 }
 0x228   :  { %1037 = vrot.lane.b32.xlu1 %v879_v62, %s4439_s11 }
 0x22b   :  { %1033 = vrot.lane.b32.xlu0 %v877_v31, %s4439_s11 }
 0x22c   :  { %1039 = vrot.lane.b32.xlu1 %v880_v15, %s4439_s11 }
 0x261   :  { %v914_v44 = vpop.permute.xlu0 %913 }
 0x262   :  { %v918_v45 = vpop.permute.xlu1 %917 }
 0x265   :  { %v954_v47 = vpop.permute.xlu0 %953 }
 0x266   :  { %v958_v61 = vpop.permute.xlu1 %957 }
 0x269   :  { %v994_v46 = vpop.permute.xlu0 %993 }
 0x26a   :  { %v998_v63 = vpop.permute.xlu1 %997 }
 0x26d   :  { %v916_v30 = vpop.permute.xlu0 %915 }
 0x26e   :  { %v920_v12 = vpop.permute.xlu1 %919  ;;  %v921_v29 = vsel %vm632_vm6, %v914_v44, %v916_v30  ;;  %v922_v13 = vsel %vm632_vm6, %v916_v30, %v918_v45 }
 0x26f   :  { %v923_v14 = vsel %vm632_vm6, %v918_v45, %v920_v12  ;;  %932 = vst.msk [vmem:[#allocation2 + $0x38] sm:$0xf] %vm931_vm11, %v920_v12  ;;  %928 = vst [vmem:[#allocation2 + $0x20] sm:$0xf] %v921_v29  ;;  %vm1051_vm11 = vcmask 764928  }
 0x270   :  { %929 = vst [vmem:[#allocation2 + $0x28] sm:$0xf] %v922_v13  ;;  %930 = vst [vmem:[#allocation2 + $0x30] sm:$0xf] %v923_v14 }
 0x271   :  { %v956_v31 = vpop.permute.xlu0 %955 }
 0x272   :  { %v960_v62 = vpop.permute.xlu1 %959  ;;  %v961_v15 = vsel %vm654_vm5, %v954_v47, %v956_v31  ;;  %v962_v60 = vsel %vm654_vm5, %v956_v31, %v958_v61 }
 0x273   :  { %v963_v11 = vsel %vm654_vm5, %v958_v61, %v960_v62  ;;  %972 = vst.msk [vmem:[#allocation2 + $0x58] sm:$0xf] %vm971_vm12, %v960_v62  ;;  %968 = vst [vmem:[#allocation2 + $0x40] sm:$0xf] %v961_v15  ;;  %vm1081_vm12 = vcmask 1044480  }
 0x274   :  { %969 = vst [vmem:[#allocation2 + $0x48] sm:$0xf] %v962_v60  ;;  %970 = vst [vmem:[#allocation2 + $0x50] sm:$0xf] %v963_v11 }
 0x275   :  { %v996_v44 = vpop.permute.xlu0 %995 }
 0x276   :  { %v1000_v45 = vpop.permute.xlu1 %999  ;;  %v1001_v30 = vsel %vm676_vm9, %v994_v46, %v996_v44  ;;  %v1002_v12 = vsel %vm676_vm9, %v996_v44, %v998_v63 }
 0x277   :  { %v1003_v29 = vsel %vm676_vm9, %v998_v63, %v1000_v45  ;;  %1012 = vst.msk [vmem:[#allocation2 + $0x78] sm:$0xf] %vm1011_vm15, %v1000_v45  ;;  %1008 = vst [vmem:[#allocation2 + $0x60] sm:$0xf] %v1001_v30  ;;  %vm1077_vm15 = vcmask 302080  }
 0x278   :  { %1009 = vst [vmem:[#allocation2 + $0x68] sm:$0xf] %v1002_v12  ;;  %1010 = vst [vmem:[#allocation2 + $0x70] sm:$0xf] %v1003_v29 }
 0x279   :  { %v894_v47 = vpop.permute.xlu0 %893 }
 0x27a   :  { %v898_v13 = vpop.permute.xlu1 %897 }
 0x27d   :  { %v934_v61 = vpop.permute.xlu0 %933 }
 0x27e   :  { %v938_v14 = vpop.permute.xlu1 %937 }
 0x281   :  { %v974_v31 = vpop.permute.xlu0 %973 }
 0x282   :  { %v978_v60 = vpop.permute.xlu1 %977 }
 0x285   :  { %v1014_v11 = vpop.permute.xlu0 %1013 }
 0x286   :  { %v1018_v62 = vpop.permute.xlu1 %1017 }
 0x289   :  { %v896_v15 = vpop.permute.xlu0 %895 }
 0x28a   :  { %v900_v10 = vpop.permute.xlu1 %899  ;;  %v901_v46 = vsel %vm621_vm2, %v894_v47, %v896_v15  ;;  %v902_v44 = vsel %vm621_vm2, %v896_v15, %v898_v13 }
 0x28b   :  { %v903_v63 = vsel %vm621_vm2, %v898_v13, %v900_v10  ;;  %912 = vst.msk [vmem:[#allocation2 + $0x18] sm:$0xf0] %vm911_vm0, %v900_v10  ;;  %908 = vst [vmem:[#allocation2] sm:$0xf0] %v901_v46 }
 0x28c   :  { %909 = vst [vmem:[#allocation2 + $0x8] sm:$0xf0] %v902_v44  ;;  %910 = vst [vmem:[#allocation2 + $0x10] sm:$0xf0] %v903_v63 }
 0x28d   :  { %v936_v45 = vpop.permute.xlu0 %935 }
 0x28e   :  { %v940_v30 = vpop.permute.xlu1 %939  ;;  %v941_v12 = vsel %vm643_vm1, %v934_v61, %v936_v45  ;;  %v942_v29 = vsel %vm643_vm1, %v936_v45, %v938_v14 }
 0x28f   :  { %v943_v43 = vsel %vm643_vm1, %v938_v14, %v940_v30  ;;  %952 = vst.msk [vmem:[#allocation2 + $0x38] sm:$0xf0] %vm951_vm3, %v940_v30  ;;  %948 = vst [vmem:[#allocation2 + $0x20] sm:$0xf0] %v941_v12 }
 0x290   :  { %949 = vst [vmem:[#allocation2 + $0x28] sm:$0xf0] %v942_v29  ;;  %950 = vst [vmem:[#allocation2 + $0x30] sm:$0xf0] %v943_v43 }
 0x291   :  { %v976_v47 = vpop.permute.xlu0 %975 }
 0x292   :  { %v980_v13 = vpop.permute.xlu1 %979  ;;  %v981_v10 = vsel %vm665_vm10, %v974_v31, %v976_v47  ;;  %v982_v15 = vsel %vm665_vm10, %v976_v47, %v978_v60  ;;  %v1060_v14 = vld [vmem:[#allocation2 + $0x18] sm:$0xff]  ;;  %v1057_v63 = vld [vmem:[#allocation2] sm:$0xff] }
 0x293   :  { %v983_v46 = vsel %vm665_vm10, %v978_v60, %v980_v13  ;;  %992 = vst.msk [vmem:[#allocation2 + $0x58] sm:$0xf0] %vm991_vm7, %v980_v13  ;;  %988 = vst [vmem:[#allocation2 + $0x40] sm:$0xf0] %v981_v10  ;;  %v1058_v44 = vld [vmem:[#allocation2 + $0x8] sm:$0xff]  ;;  %v1059_v13 = vld [vmem:[#allocation2 + $0x10] sm:$0xff] }
 0x294   :  { %989 = vst [vmem:[#allocation2 + $0x48] sm:$0xf0] %v982_v15  ;;  %990 = vst [vmem:[#allocation2 + $0x50] sm:$0xf0] %v983_v46 }
 0x295   :  { %v1016_v61 = vpop.permute.xlu0 %1015 }
 0x296   :  { %v1020_v45 = vpop.permute.xlu1 %1019  ;;  %v1021_v43 = vsel %vm687_vm14, %v1014_v11, %v1016_v61  ;;  %v1022_v30 = vsel %vm687_vm14, %v1016_v61, %v1018_v62  ;;  %v1064_v12 = vld [vmem:[#allocation2 + $0x38] sm:$0xff]  ;;  %v1061_v29 = vld [vmem:[#allocation2 + $0x20] sm:$0xff] }
 0x297   :  { %v1062_v31 = vld [vmem:[#allocation2 + $0x28] sm:$0xff]  ;;  %v1023_v47 = vsel %vm687_vm14, %v1018_v62, %v1020_v45  ;;  %1032 = vst.msk [vmem:[#allocation2 + $0x78] sm:$0xf0] %vm1031_vm8, %v1020_v45  ;;  %1028 = vst [vmem:[#allocation2 + $0x60] sm:$0xf0] %v1021_v43  ;;  %v3992_v60 = vpack.c.bf16 %v1064_v12, %v1060_v14  ;;  %v1063_v10 = vld [vmem:[#allocation2 + $0x30] sm:$0xff]  ;;  %v3986_v46 = vpack.c.bf16 %v1061_v29, %v1057_v63 }
 0x298   :  { %1029 = vst [vmem:[#allocation2 + $0x68] sm:$0xf0] %v1022_v30  ;;  %v3984_v15 = vpack.c.bf16 %v1062_v31, %v1058_v44  ;;  %1030 = vst [vmem:[#allocation2 + $0x70] sm:$0xf0] %v1023_v47  ;;  %v3994_v42 = vpack.c.bf16 %v1063_v10, %v1059_v13 }
 0x299   :  { %3993 = vmatprep.subr.bf16.mxu1 %v3992_v60  ;;  %v1036_v27 = vpop.permute.xlu0 %1035 }
 0x29a   :  { %3985 = vmatprep.subr.bf16.mxu0 %v3984_v15  ;;  %v1038_v11 = vpop.permute.xlu1 %1037  ;;  %3995 = vmatpush1.bf16.msra.mxu1 %v3994_v42  ;;  %v1068_v45 = vld [vmem:[#allocation2 + $0x58] sm:$0xff]  ;;  %v1065_v14 = vld [vmem:[#allocation2 + $0x40] sm:$0xff] }
 0x29b   :  { %3987 = vmatpush1.bf16.msra.mxu0 %v3986_v46  ;;  %v1042_v61 = vsel %vm698_vm13, %v1036_v27, %v1038_v11  ;;  %v1066_v43 = vld [vmem:[#allocation2 + $0x48] sm:$0xff]  ;;  %v1067_v60 = vld [vmem:[#allocation2 + $0x50] sm:$0xff] }
 0x29c   :  { %1049 = vst [vmem:[#allocation2 + $0x88] sm:$0xf] %v1042_v61 }
 0x29d   :  { %v1034_v62 = vpop.permute.xlu0 %1033 }
 0x29e   :  { %v1040_v30 = vpop.permute.xlu1 %1039  ;;  %v1041_v44 = vsel %vm698_vm13, %v1034_v62, %v1036_v27  ;;  %v1072_v63 = vld [vmem:[#allocation2 + $0x78] sm:$0xff]  ;;  %v1069_v31 = vld [vmem:[#allocation2 + $0x60] sm:$0xff] }
 0x29f   :  { %v1070_v12 = vld [vmem:[#allocation2 + $0x68] sm:$0xff]  ;;  %v1043_v29 = vsel %vm698_vm13, %v1038_v11, %v1040_v30  ;;  %1052 = vst.msk [vmem:[#allocation2 + $0x98] sm:$0xf] %vm1051_vm11, %v1040_v30  ;;  %1048 = vst [vmem:[#allocation2 + $0x80] sm:$0xf] %v1041_v44  ;;  %v3996_v42 = vpack.c.bf16 %v1072_v63, %v1068_v45  ;;  %v1071_v13 = vld [vmem:[#allocation2 + $0x70] sm:$0xff]  ;;  %v3990_v10 = vpack.c.bf16 %v1069_v31, %v1065_v14 }
 0x2a0   :  { %v3988_v47 = vpack.c.bf16 %v1070_v12, %v1066_v43  ;;  %1050 = vst [vmem:[#allocation2 + $0x90] sm:$0xf] %v1043_v29  ;;  %v3998_v15 = vpack.c.bf16 %v1071_v13, %v1067_v60  ;;  %v1056_v11 = vld [vmem:[%s6506_s3 + $0x8] sm:$0xff] }
 0x2a1   :  { %3997 = vmatprep.subr.bf16.mxu1 %v3996_v42 }
 0x2a2   :  { %3989 = vmatprep.subr.bf16.mxu0 %v3988_v47  ;;  %3999 = vmatpush1.bf16.msra.mxu1 %v3998_v15 }
 0x2a3   :  { %3991 = vmatpush1.bf16.msra.mxu0 %v3990_v10  ;;  %v1074_v27 = vld [vmem:[#allocation2 + $0x88] sm:$0x1f] }
 0x2a4   :  { %3520 = vmatprep.subr.msk.mxu0 %vm1081_vm12, %v1074_v27 }
 0x2a6   :  { %v1076_v46 = vld [vmem:[#allocation2 + $0x98] sm:$0x1f]  ;;  %v1073_v61 = vld [vmem:[#allocation2 + $0x80] sm:$0x1f] }
 0x2a7   :  { %3523 = vmatprep.subr.msk.mxu1 %vm1081_vm12, %v1076_v46  ;;  %3521 = vmatpush1.msk.msra.mxu0 %vm1081_vm12, %v1073_v61  ;;  %v1075_v62 = vld [vmem:[#allocation2 + $0x90] sm:$0x1f] }
 0x2a8   :  { %3524 = vmatpush1.msk.msra.mxu1 %vm1081_vm12, %v1075_v62  ;;  %3522 = vmatmul.mubr.msk.f32.vlgmr.msra.gmra.mrb[2].mxu0 %vm1077_vm15, %v1056_v11 }
 0x2a9   :  { %3525 = vmatmul.mubr.msk.f32.vlgmr.msra.gmra.mrb[2].mxu1 %vm1077_vm15, %v1056_v11  ;;  %1525 = vmatprep.mubr.f32.mxu0 %v6742_v28 }
 0x2aa   :  { %1596 = vmatprep.mubr.f32.mxu1 %v6742_v28 }
 0x37b   :  { %v1160_v45 = vpop.f32.mrb[2].mxu0 }
 0x37c   :  { %v1231_v43 = vpop.f32.mrb[2].mxu1  ;;  %v5894_v14 = vmax.f32 %v1160_v45, 0.0  ;;  %v1162_v30 = vpop.f32.mrb[3].mxu0 }
 0x37d   :  { %v5896_v44 = vmax.f32 %v1231_v43, 0.0  ;;  %v1233_v63 = vpop.f32.mrb[3].mxu1  ;;  %v5898_v12 = vmax.f32 %v1162_v30, 0.0 }
 0x37e   :  { %v1239_v31 = vmax.f32 %v1233_v63, 0.0  ;;  %1240 = vst [vmem:[#allocation2] sm:$0xff] %v5894_v14 }
 0x37f   :  { %1242 = vst [vmem:[#allocation2 + $0x10] sm:$0xff] %v5896_v44  ;;  %1252 = vrot.lane.b32.xlu1 %v5896_v44, %s4432_s8  ;;  %1290 = vrot.lane.b32.xlu0 %v5896_v44, %s4431_s7  ;;  %1241 = vst [vmem:[#allocation2 + $0x8] sm:$0xff] %v5898_v12 }
 0x380   :  { %1243 = vst [vmem:[#allocation2 + $0x18] sm:$0xff] %v1239_v31 }
 0x383   :  { %1271 = vrot.lane.b32.xlu1 %v5896_v44, %s4435_s4  ;;  %1328 = vrot.lane.b32.xlu0 %v5896_v44, %s4438_s10 }
 0x387   :  { %1309 = vrot.lane.b32.xlu1 %v5896_v44, %s4434_s0  ;;  %1366 = vrot.lane.b32.xlu0 %v5896_v44, %s4440_s12 }
 0x38b   :  { %1347 = vrot.lane.b32.xlu1 %v5896_v44, %s4437_s9  ;;  %1254 = vrot.lane.b32.xlu0 %v1239_v31, %s4432_s8 }
 0x38f   :  { %1273 = vrot.lane.b32.xlu0 %v1239_v31, %s4435_s4  ;;  %1248 = vrot.lane.b32.xlu1 %v5894_v14, %s4432_s8 }
 0x393   :  { %1267 = vrot.lane.b32.xlu0 %v5894_v14, %s4435_s4  ;;  %1292 = vrot.lane.b32.xlu1 %v1239_v31, %s4431_s7 }
 0x397   :  { %1311 = vrot.lane.b32.xlu0 %v1239_v31, %s4434_s0  ;;  %1286 = vrot.lane.b32.xlu1 %v5894_v14, %s4431_s7 }
 0x39b   :  { %1305 = vrot.lane.b32.xlu0 %v5894_v14, %s4434_s0  ;;  %1330 = vrot.lane.b32.xlu1 %v1239_v31, %s4438_s10 }
 0x39f   :  { %1349 = vrot.lane.b32.xlu0 %v1239_v31, %s4437_s9  ;;  %1324 = vrot.lane.b32.xlu1 %v5894_v14, %s4438_s10 }
 0x3a3   :  { %1343 = vrot.lane.b32.xlu0 %v5894_v14, %s4437_s9  ;;  %1368 = vrot.lane.b32.xlu1 %v1239_v31, %s4440_s12 }
 0x3a7   :  { %1362 = vrot.lane.b32.xlu1 %v5894_v14, %s4440_s12  ;;  %1250 = vrot.lane.b32.xlu0 %v5898_v12, %s4432_s8 }
 0x3ab   :  { %1288 = vrot.lane.b32.xlu1 %v5898_v12, %s4431_s7  ;;  %1269 = vrot.lane.b32.xlu0 %v5898_v12, %s4435_s4  ;;  %s4445_s4 = smov 32  }
 0x3af   :  { %1326 = vrot.lane.b32.xlu1 %v5898_v12, %s4438_s10  ;;  %1307 = vrot.lane.b32.xlu0 %v5898_v12, %s4434_s0  ;;  %s4444_s0 = smov 64  }
 0x3b3   :  { %1364 = vrot.lane.b32.xlu1 %v5898_v12, %s4440_s12  ;;  %1345 = vrot.lane.b32.xlu0 %v5898_v12, %s4437_s9 }
 0x3b7   :  { %1385 = vrot.lane.b32.xlu1 %v5896_v44, %s4439_s11  ;;  %1383 = vrot.lane.b32.xlu0 %v5898_v12, %s4439_s11 }
 0x3bb   :  { %1381 = vrot.lane.b32.xlu1 %v5894_v14, %s4439_s11  ;;  %1387 = vrot.lane.b32.xlu0 %v1239_v31, %s4439_s11 }
 0x3f1   :  { %v1253_v29 = vpop.permute.xlu1 %1252  ;;  %v5959_v42 = vpop.permute.xlu0 %1290 }
 0x3f5   :  { %v5961_v47 = vpop.permute.xlu1 %1271  ;;  %v5963_v60 = vpop.permute.xlu0 %1328 }
 0x3f9   :  { %v5965_v13 = vpop.permute.xlu1 %1309  ;;  %v5967_v10 = vpop.permute.xlu0 %1366 }
 0x3fd   :  { %v5969_v15 = vpop.permute.xlu1 %1347  ;;  %v1255_v27 = vpop.permute.xlu0 %1254 }
 0x3fe   :  { %v1258_v46 = vsel %vm621_vm2, %v1253_v29, %v1255_v27  ;;  %1266 = vst.msk [vmem:[#allocation2 + $0x38] sm:$0xff] %vm621_vm2, %v1255_v27 }
 0x3ff   :  { %1265 = vst [vmem:[#allocation2 + $0x30] sm:$0xff] %v1258_v46  ;;  %v4024_v27 = vpack.c.bf16 %v1258_v46, %v5896_v44 }
 0x401   :  { %v1274_v61 = vpop.permute.xlu0 %1273  ;;  %v1249_v11 = vpop.permute.xlu1 %1248 }
 0x402   :  { %v1277_v62 = vsel %vm632_vm6, %v5961_v47, %v1274_v61  ;;  %1285 = vst.msk [vmem:[#allocation2 + $0x58] sm:$0xff] %vm632_vm6, %v1274_v61 }
 0x403   :  { %1284 = vst [vmem:[#allocation2 + $0x50] sm:$0xff] %v1277_v62 }
 0x405   :  { %v1268_v45 = vpop.permute.xlu0 %1267  ;;  %v1293_v43 = vpop.permute.xlu1 %1292  ;;  %v1411_v30 = vld [vmem:[#allocation2 + $0x38] sm:$0xff] }
 0x406   :  { %v1296_v63 = vsel %vm643_vm1, %v5959_v42, %v1293_v43  ;;  %1304 = vst.msk [vmem:[#allocation2 + $0x78] sm:$0xff] %vm643_vm1, %v1293_v43  ;;  %v4022_v26 = vpack.c.bf16 %v1411_v30, %v1239_v31 }
 0x407   :  { %1303 = vst [vmem:[#allocation2 + $0x70] sm:$0xff] %v1296_v63 }
 0x408   :  { %4023 = vmatprep.subr.bf16.mxu1 %v4022_v26  ;;  %v4028_v26 = vpack.c.bf16 %v1296_v63, %v1277_v62 }
 0x409   :  { %4025 = vmatpush1.bf16.msra.mxu1 %v4024_v27  ;;  %v1312_v59 = vpop.permute.xlu0 %1311  ;;  %v1287_v58 = vpop.permute.xlu1 %1286  ;;  %v1415_v41 = vld [vmem:[#allocation2 + $0x58] sm:$0xff] }
 0x40a   :  { %v1315_v61 = vsel %vm654_vm5, %v5965_v13, %v1312_v59  ;;  %1323 = vst.msk [vmem:[#allocation2 + $0x98] sm:$0xff] %vm654_vm5, %v1312_v59 }
 0x40b   :  { %1322 = vst [vmem:[#allocation2 + $0x90] sm:$0xff] %v1315_v61 }
 0x40d   :  { %v1306_v9 = vpop.permute.xlu0 %1305  ;;  %v1331_v8 = vpop.permute.xlu1 %1330  ;;  %v1419_v40 = vld [vmem:[#allocation2 + $0x78] sm:$0xff] }
 0x40e   :  { %v1334_v31 = vsel %vm665_vm10, %v5963_v60, %v1331_v8  ;;  %1342 = vst.msk [vmem:[#allocation2 + $0xb8] sm:$0xff] %vm665_vm10, %v1331_v8  ;;  %v4026_v44 = vpack.c.bf16 %v1419_v40, %v1415_v41 }
 0x40f   :  { %v4032_v40 = vpack.c.bf16 %v1334_v31, %v1315_v61 }
 0x410   :  { %4027 = vmatprep.subr.bf16.mxu1 %v4026_v44 }
 0x411   :  { %v1350_v46 = vpop.permute.xlu0 %1349  ;;  %4029 = vmatpush1.bf16.msra.mxu1 %v4028_v26  ;;  %v1325_v43 = vpop.permute.xlu1 %1324  ;;  %v1423_v25 = vld [vmem:[#allocation2 + $0x98] sm:$0xff] }
 0x412   :  { %v1353_v30 = vsel %vm676_vm9, %v5969_v15, %v1350_v46  ;;  %1361 = vst.msk [vmem:[#allocation2 + $0xd8] sm:$0xff] %vm676_vm9, %v1350_v46 }
 0x415   :  { %v1344_v59 = vpop.permute.xlu0 %1343  ;;  %v1369_v27 = vpop.permute.xlu1 %1368  ;;  %v1427_v24 = vld [vmem:[#allocation2 + $0xb8] sm:$0xff] }
 0x416   :  { %v1372_v57 = vsel %vm687_vm14, %v5967_v10, %v1369_v27  ;;  %1380 = vst.msk [vmem:[#allocation2 + $0xf8] sm:$0xff] %vm687_vm14, %v1369_v27  ;;  %v4030_v8 = vpack.c.bf16 %v1427_v24, %v1423_v25 }
 0x417   :  { %v4036_v27 = vpack.c.bf16 %v1372_v57, %v1353_v30 }
 0x418   :  { %4031 = vmatprep.subr.bf16.mxu1 %v4030_v8 }
 0x419   :  { %4033 = vmatpush1.bf16.msra.mxu1 %v4032_v40  ;;  %v1363_v41 = vpop.permute.xlu1 %1362  ;;  %v1251_v62 = vpop.permute.xlu0 %1250 }
 0x41a   :  { %v1256_v63 = vsel %vm621_vm2, %v1249_v11, %v1251_v62  ;;  %v1257_v44 = vsel %vm621_vm2, %v1251_v62, %v1253_v29  ;;  %v1431_v11 = vld [vmem:[#allocation2 + $0xd8] sm:$0xff] }
 0x41b   :  { %1263 = vst [vmem:[#allocation2 + $0x20] sm:$0xff] %v1256_v63  ;;  %1264 = vst [vmem:[#allocation2 + $0x28] sm:$0xff] %v1257_v44  ;;  %v4000_v26 = vpack.c.bf16 %v1257_v44, %v5898_v12  ;;  %v4002_v46 = vpack.c.bf16 %v1256_v63, %v5894_v14  ;;  %v1441_v63 = vld [vmem:[#allocation2 + $0x128] sm:$0x1] }
 0x41d   :  { %v1289_v56 = vpop.permute.xlu1 %1288  ;;  %v1270_v7 = vpop.permute.xlu0 %1269  ;;  %v1435_v6 = vld [vmem:[#allocation2 + $0xf8] sm:$0xff]  ;;  %4001 = vmatprep.subr.bf16.mxu0 %v4000_v26 }
 0x41e   :  { %v1294_v24 = vsel %vm643_vm1, %v1287_v58, %v1289_v56  ;;  %v1295_v25 = vsel %vm643_vm1, %v1289_v56, %v5959_v42  ;;  %v1275_v61 = vsel %vm632_vm6, %v1268_v45, %v1270_v7  ;;  %v1276_v29 = vsel %vm632_vm6, %v1270_v7, %v5961_v47  ;;  %4003 = vmatpush1.bf16.msra.mxu0 %v4002_v46 }
 0x41f   :  { %1301 = vst [vmem:[#allocation2 + $0x60] sm:$0xff] %v1294_v24  ;;  %1302 = vst [vmem:[#allocation2 + $0x68] sm:$0xff] %v1295_v25  ;;  %v4034_v14 = vpack.c.bf16 %v1435_v6, %v1431_v11  ;;  %v4004_v12 = vpack.c.bf16 %v1295_v25, %v1276_v29  ;;  %v4006_v31 = vpack.c.bf16 %v1294_v24, %v1275_v61  ;;  %vm1448_vm1 = vcmask 1040384   ;;  %v1607_v11 = vld [vmem:[%s6506_s3 + $0x18] sm:$0xff] }
 0x420   :  { %1282 = vst [vmem:[#allocation2 + $0x40] sm:$0xff] %v1275_v61  ;;  %1283 = vst [vmem:[#allocation2 + $0x48] sm:$0xff] %v1276_v29  ;;  %vm1619_vm6 = vcmask 64512  }
 0x421   :  { %4035 = vmatprep.subr.bf16.mxu1 %v4034_v14  ;;  %v1327_v58 = vpop.permute.xlu1 %1326  ;;  %v1308_v8 = vpop.permute.xlu0 %1307  ;;  %4005 = vmatprep.subr.bf16.mxu0 %v4004_v12  ;;  %vm6017_vm2 = vmpackc.low %vm1448_vm1, %vm4441_vm4  ;;  %v1403_v14 = vld [vmem:[%s6506_s3 + $0x10] sm:$0xff]  ;;  %v1613_v12 = vld [vmem:[%s6504_s1] sm:$0xff] }
 0x422   :  { %4037 = vmatpush1.bf16.msra.mxu1 %v4036_v27  ;;  %v1332_v56 = vsel %vm665_vm10, %v1325_v43, %v1327_v58  ;;  %v1333_v7 = vsel %vm665_vm10, %v1327_v58, %v5963_v60  ;;  %v1313_v42 = vsel %vm654_vm5, %v1306_v9, %v1308_v8  ;;  %v1314_v47 = vsel %vm654_vm5, %v1308_v8, %v5965_v13  ;;  %v1442_v27 = vld [vmem:[#allocation2 + $0x130] sm:$0x1]  ;;  %v1608_v58 = vld [vmem:[%s6506_s3 + $0x20] sm:$0xff]  ;;  %v1609_v8 = vld [vmem:[%s6506_s3 + $0x28] sm:$0xff] }
 0x423   :  { %1320 = vst [vmem:[#allocation2 + $0x80] sm:$0xff] %v1313_v42  ;;  %1321 = vst [vmem:[#allocation2 + $0x88] sm:$0xff] %v1314_v47  ;;  %4007 = vmatpush1.bf16.msra.mxu0 %v4006_v31  ;;  %v4008_v6 = vpack.c.bf16 %v1333_v7, %v1314_v47  ;;  %v4010_v57 = vpack.c.bf16 %v1332_v56, %v1313_v42  ;;  %vm1444_vm5 = vcmask 596992   ;;  %v1443_v31 = vld [vmem:[#allocation2 + $0x138] sm:$0x1]  ;;  %v1614_v7 = vld [vmem:[%s6504_s1 + $0x8] sm:$0xff] }
 0x424   :  { %v4442_v47 = vmov 0.0|0.0   ;;  %vm1701_vm10 = vcmask 261120  }
 0x425   :  { %v1365_v45 = vpop.permute.xlu1 %1364  ;;  %v1346_v30 = vpop.permute.xlu0 %1345  ;;  %4009 = vmatprep.subr.bf16.mxu0 %v4008_v6 }
 0x426   :  { %v1370_v40 = vsel %vm687_vm14, %v1363_v41, %v1365_v45  ;;  %v1371_v43 = vsel %vm687_vm14, %v1365_v45, %v5967_v10  ;;  %v1351_v60 = vsel %vm676_vm9, %v1344_v59, %v1346_v30  ;;  %v1352_v9 = vsel %vm676_vm9, %v1346_v30, %v5969_v15  ;;  %v1440_v59 = vld [vmem:[#allocation2 + $0x120] sm:$0x1]  ;;  %v1610_v45 = vld [vmem:[%s6506_s3 + $0x30] sm:$0xff]  ;;  %v1611_v30 = vld [vmem:[%s6506_s3 + $0x38] sm:$0xff] }
 0x427   :  { %4011 = vmatpush1.bf16.msra.mxu0 %v4010_v57  ;;  %v4012_v13 = vpack.c.bf16 %v1371_v43, %v1352_v9  ;;  %v4014_v62 = vpack.c.bf16 %v1370_v40, %v1351_v60  ;;  %v6049_v57 = vpack.c.bf16 %v1609_v8, %v1608_v58  ;;  %vm4443_vm9 = vmmov 0  }
 0x428   :  { %v6068_v40 = vpack.c.bf16 %v1611_v30, %v1610_v45 }
 0x429   :  { %v1386_v44 = vpop.permute.xlu1 %1385  ;;  %v1384_v26 = vpop.permute.xlu0 %1383  ;;  %4013 = vmatprep.subr.bf16.mxu0 %v4012_v13 }
 0x42a   :  { %v1390_v46 = vsel %vm698_vm13, %v1384_v26, %v1386_v44 }
 0x42b   :  { %4015 = vmatpush1.bf16.msra.mxu0 %v4014_v62  ;;  %v4016_v10 = vpack.c.bf16 %v1441_v63, %v1390_v46  ;;  %v3532_v62 = vld [vmem:[%s6506_s3 + $0x40] ss:$0 sm:$0xff] }
 0x42d   :  { %v1382_v15 = vpop.permute.xlu1 %1381  ;;  %v1388_v24 = vpop.permute.xlu0 %1387  ;;  %4018 = vmatprep.subr.msk.bf16.mxu0 %vm6017_vm2, %v4016_v10 }
 0x42e   :  { %v1389_v25 = vsel %vm698_vm13, %v1382_v15, %v1384_v26  ;;  %v1391_v61 = vsel %vm698_vm13, %v1386_v44, %v1388_v24  ;;  %1399 = vst.msk [vmem:[#allocation2 + $0x118] sm:$0xff] %vm698_vm13, %v1388_v24 }
 0x42f   :  { %v4019_v29 = vpack.c.bf16 %v1440_v59, %v1389_v25  ;;  %v4041_v6 = vpack.c.bf16 %v1442_v27, %v1391_v61 }
 0x431   :  { %4021 = vmatpush1.bf16.msk.msra.mxu0 %vm6017_vm2, %v4019_v29 }
 0x432   :  { %3879 = vmatprep.subr.mxu0 %v1607_v11 }
 0x434   :  { %3528 = vmatmul.mubr.msk.f32.vlgmr.msra.gmra.mrb[4].mxu0 %vm1444_vm5, %v1403_v14 }
 0x435   :  { %v1439_v56 = vld [vmem:[#allocation2 + $0x118] sm:$0xff]  ;;  %3880 = vmatpush3.msra.mxu0 %v1607_v11  ;;  %3881 = vmatprep.mubr.msk.f32.mxu0 %vm1619_vm6, %v1613_v12 }
 0x436   :  { %v4038_v42 = vpack.c.bf16 %v1443_v31, %v1439_v56  ;;  %4050 = vmatprep.subr.bf16.mxu0 %v4442_v47 }
 0x438   :  { %4040 = vmatprep.subr.msk.bf16.mxu1 %vm6017_vm2, %v4038_v42  ;;  %3882 = vmatmul.mubr.msk.f32.vlgmr.msra.gmra.mrb[6].mxu0 %vm1619_vm6, %v1614_v7 }
 0x439   :  { %4043 = vmatpush1.bf16.msk.msra.mxu1 %vm6017_vm2, %v4041_v6  ;;  %4052 = vmatpush3.bf16.msra.mxu0 %v6049_v57 }
 0x43a   :  { %4044 = vmatprep.subr.bf16.mxu1 %v4442_v47  ;;  %4053 = vmatprep.subr.bf16.mxu0 %v4442_v47 }
 0x43b   :  { %3903 = vmatprep.mubr.msk.f32.mxu0 %vm4443_vm9, %v6742_v28 }
 0x43c   :  { %3531 = vmatmul.mubr.msk.f32.vlgmr.msra.gmra.mrb[4].mxu1 %vm1444_vm5, %v1403_v14 }
 0x43d   :  { %4046 = vmatpush3.bf16.msra.mxu1 %v6049_v57  ;;  %3892 = vmatprep.mubr.msk.f32.mxu1 %vm4443_vm9, %v6742_v28 }
 0x43e   :  { %4047 = vmatprep.subr.bf16.mxu1 %v4442_v47  ;;  %4055 = vmatpush3.bf16.msra.mxu0 %v6068_v40 }
 0x43f   :  { %4062 = vmatprep.subr.bf16.mxu0 %v4442_v47 }
 0x441   :  { %4049 = vmatpush3.bf16.msra.mxu1 %v6068_v40 }
 0x442   :  { %4056 = vmatprep.subr.bf16.mxu1 %v4442_v47 }
 0x444   :  { %3893 = vmatmul.mubr.f32.vlgmr.msra.gmra.mrb[6].mxu1 %v6742_v28 }
 0x445   :  { %4058 = vmatpush3.bf16.msra.mxu1 %v6049_v57  ;;  %3914 = vmatprep.mubr.msk.f32.mxu1 %vm4443_vm9, %v6742_v28 }
 0x446   :  { %4059 = vmatprep.subr.bf16.mxu1 %v4442_v47 }
 0x449   :  { %4061 = vmatpush3.bf16.msra.mxu1 %v6068_v40 }
 0x44a   :  { %4068 = vmatprep.subr.bf16.mxu1 %v4442_v47 }
 0x507   :  { %v1527_v43 = vpop.f32.mrb[4].mxu0 }
 0x508   :  { %v6085_v60 = vmax.f32 %v1527_v43, 0.0  ;;  %v1529_v9 = vpop.f32.mrb[5].mxu0 }
 0x509   :  { %v6087_v13 = vmax.f32 %v1529_v9, 0.0 }
 0x50b   :  { %v3883_v63 = vpop.f32.mrb[6].mxu0 }
 0x50c   :  { %v6092_v44 = vadd.f32 %v3883_v63, %v3532_v62  ;;  %v1692_v26 = vpop.f32.mrb[7].mxu0 }
 0x50d   :  { %v6098_v15 = vadd.f32 %v3532_v62, %v1692_v26 }
 0x50f   :  { %v1598_v46 = vpop.f32.mrb[4].mxu1 }
 0x510   :  { %v6094_v41 = vmax.f32 %v1598_v46, 0.0  ;;  %v1600_v10 = vpop.f32.mrb[5].mxu1 }
 0x511   :  { %v6096_v59 = vmax.f32 %v1600_v10, 0.0 }
 0x517   :  { %v1771_v24 = vpop.f32.mrb[6].mxu1 }
 0x518   :  { %v1775_v25 = vadd.f32 %v1771_v24, %v6098_v15  ;;  %v3894_v61 = vpop.f32.mrb[7].mxu1 }
 0x51a   :  { %4364 = vtanh.f32 %v1775_v25  ;;  %v3535_v11 = vmul.f32 -1.442695, %v1775_v25 }
 0x51c   :  { %4366 = vpow2.f32 %v3535_v11 }
 0x524   :  { %v4365_v29 = vpop.eup %4364 }
 0x525   :  { %1785 = vrot.lane.b32.xlu0 %v4365_v29, %s4444_s0 }
 0x526   :  { %v4367_v14 = vpop.eup %4366 }
 0x527   :  { %v1779_v12 = vadd.f32 1.0, %v4367_v14 }
 0x529   :  { %4368 = vrcp.f32 %v1779_v12 }
 0x533   :  { %v4369_v31 = vpop.eup %4368 }
 0x534   :  { %v1783_v8 = vmul.f32 0.0, %v4369_v31 }
 0x597   :  { %v1786_v27 = vpop.permute.xlu0 %1785 }
 0x598   :  { %v1788_v58 = vmul.f32 %v4369_v31, %v1786_v27 }
 0x59a   :  { %1790 = vrot.lane.b32.xlu1 %v1788_v58, %s4445_s4 }
 0x60c   :  { %v1791_v56 = vpop.permute.xlu1 %1790 }
 0x60d   :  { %v1793_v7 = vadd.f32 %v1791_v56, %v1783_v8 }
 0x60f   :  { %4370 = vtanh.f32 %v1793_v7  ;;  %v1887_v11 = vrot.slane %v1793_v7, 6 }
 0x619   :  { %v4371_v42 = vpop.eup %4370 }
 0x61a   :  { %1796 = vrot.lane.b32.xlu0 %v4371_v42, %s4444_s0 }
 0x68c   :  { %v1797_v6 = vpop.permute.xlu0 %1796 }
 0x68d   :  { %v1799_v45 = vmul.f32 %v4369_v31, %v1797_v6 }
 0x68f   :  { %1801 = vrot.lane.b32.xlu1 %v1799_v45, %s4445_s4 }
 0x701   :  { %v1802_v30 = vpop.permute.xlu1 %1801 }
 0x702   :  { %3904 = vmatmul.mubr.msk.f32.vlgmr.msra.gmra.mrb[8].mxu0 %vm1701_vm10, %v1802_v30 }
 0x703   :  { %4064 = vmatpush3.bf16.msra.mxu0 %v6049_v57  ;;  %3925 = vmatprep.mubr.msk.f32.mxu0 %vm4443_vm9, %v6742_v28 }
 0x704   :  { %4065 = vmatprep.subr.bf16.mxu0 %v4442_v47 }
 0x707   :  { %4067 = vmatpush3.bf16.msra.mxu0 %v6068_v40 }
 0x708   :  { %4074 = vmatprep.subr.bf16.mxu0 %v4442_v47 }
 0x7d5   :  { %v1871_v43 = vpop.f32.mrb[8].mxu0 }
 0x7d6   :  { %v1876_v9 = vrot.slane %v1871_v43, 6  ;;  %v3905_v62 = vpop.f32.mrb[9].mxu0 }
 0x7d8   :  { %v1878_v63 = vadd.f32 %v1876_v9, %v6098_v15 }
 0x7da   :  { %4372 = vtanh.f32 %v1878_v63  ;;  %v3537_v46 = vmul.f32 -1.442695, %v1878_v63 }
 0x7dc   :  { %4374 = vpow2.f32 %v3537_v46 }
 0x7e4   :  { %v4373_v26 = vpop.eup %4372 }
 0x7e5   :  { %1891 = vrot.lane.b32.xlu0 %v4373_v26, %s4444_s0 }
 0x7e6   :  { %v4375_v10 = vpop.eup %4374 }
 0x7e7   :  { %v1882_v24 = vadd.f32 1.0, %v4375_v10 }
 0x7e9   :  { %4376 = vrcp.f32 %v1882_v24 }
 0x7f3   :  { %v4377_v25 = vpop.eup %4376 }
 0x7f4   :  { %v1889_v14 = vmul.f32 %v4377_v25, %v1887_v11 }
 0x857   :  { %v1892_v61 = vpop.permute.xlu0 %1891 }
 0x858   :  { %v1894_v29 = vmul.f32 %v4377_v25, %v1892_v61 }
 0x85a   :  { %1896 = vrot.lane.b32.xlu1 %v1894_v29, %s4445_s4 }
 0x8cc   :  { %v1897_v12 = vpop.permute.xlu1 %1896 }
 0x8cd   :  { %v1899_v31 = vadd.f32 %v1897_v12, %v1889_v14 }
 0x8cf   :  { %4378 = vtanh.f32 %v1899_v31  ;;  %v1994_v24 = vrot.slane %v1899_v31, 6 }
 0x8d9   :  { %v4379_v27 = vpop.eup %4378 }
 0x8da   :  { %1902 = vrot.lane.b32.xlu0 %v4379_v27, %s4444_s0 }
 0x94c   :  { %v1903_v58 = vpop.permute.xlu0 %1902 }
 0x94d   :  { %v1905_v8 = vmul.f32 %v4377_v25, %v1903_v58 }
 0x94f   :  { %v1907_v56 = vrot.slane %v1905_v8, 2 }
 0x951   :  { %1908 = vrot.lane.b32.xlu1 %v1907_v56, %s4445_s4 }
 0x9c3   :  { %v1909_v42 = vpop.permute.xlu1 %1908 }
 0x9c4   :  { %3915 = vmatmul.mubr.msk.f32.vlgmr.msra.gmra.mrb[8].mxu1 %vm1701_vm10, %v1909_v42 }
 0x9c5   :  { %4070 = vmatpush3.bf16.msra.mxu1 %v6049_v57  ;;  %3936 = vmatprep.mubr.msk.f32.mxu1 %vm4443_vm9, %v6742_v28 }
 0x9c6   :  { %4071 = vmatprep.subr.bf16.mxu1 %v4442_v47 }
 0x9c9   :  { %4073 = vmatpush3.bf16.msra.mxu1 %v6068_v40 }
 0x9ca   :  { %4080 = vmatprep.subr.bf16.mxu1 %v4442_v47 }
 0xa97   :  { %v1978_v7 = vpop.f32.mrb[8].mxu1 }
 0xa98   :  { %v1983_v6 = vrot.slane %v1978_v7, 4  ;;  %v3916_v45 = vpop.f32.mrb[9].mxu1 }
 0xa9a   :  { %v1985_v30 = vadd.f32 %v1983_v6, %v6098_v15 }
 0xa9c   :  { %4380 = vtanh.f32 %v1985_v30  ;;  %v3539_v9 = vmul.f32 -1.442695, %v1985_v30 }
 0xa9e   :  { %4382 = vpow2.f32 %v3539_v9 }
 0xaa6   :  { %v4381_v43 = vpop.eup %4380 }
 0xaa7   :  { %1998 = vrot.lane.b32.xlu0 %v4381_v43, %s4444_s0 }
 0xaa8   :  { %v4383_v62 = vpop.eup %4382 }
 0xaa9   :  { %v1989_v63 = vadd.f32 1.0, %v4383_v62 }
 0xaab   :  { %4384 = vrcp.f32 %v1989_v63 }
 0xab5   :  { %v4385_v26 = vpop.eup %4384 }
 0xab6   :  { %v1996_v25 = vmul.f32 %v4385_v26, %v1994_v24 }
 0xb19   :  { %v1999_v46 = vpop.permute.xlu0 %1998 }
 0xb1a   :  { %v2001_v10 = vmul.f32 %v4385_v26, %v1999_v46 }
 0xb1c   :  { %2003 = vrot.lane.b32.xlu1 %v2001_v10, %s4445_s4 }
 0xb8e   :  { %v2004_v61 = vpop.permute.xlu1 %2003 }
 0xb8f   :  { %v2006_v29 = vadd.f32 %v2004_v61, %v1996_v25 }
 0xb91   :  { %4386 = vtanh.f32 %v2006_v29  ;;  %v2101_v63 = vrot.slane %v2006_v29, 6 }
 0xb9b   :  { %v4387_v11 = vpop.eup %4386 }
 0xb9c   :  { %2009 = vrot.lane.b32.xlu0 %v4387_v11, %s4444_s0 }
 0xc0e   :  { %v2010_v14 = vpop.permute.xlu0 %2009 }
 0xc0f   :  { %v2012_v12 = vmul.f32 %v4385_v26, %v2010_v14 }
 0xc11   :  { %v2014_v27 = vrot.slane %v2012_v12, 4 }
 0xc13   :  { %2015 = vrot.lane.b32.xlu1 %v2014_v27, %s4445_s4 }
 0xc85   :  { %v2016_v58 = vpop.permute.xlu1 %2015 }
 0xc86   :  { %3926 = vmatmul.mubr.msk.f32.vlgmr.msra.gmra.mrb[10].mxu0 %vm1701_vm10, %v2016_v58 }
 0xc87   :  { %4076 = vmatpush3.bf16.msra.mxu0 %v6049_v57  ;;  %3947 = vmatprep.mubr.msk.f32.mxu0 %vm4443_vm9, %v6742_v28 }
 0xc88   :  { %4077 = vmatprep.subr.bf16.mxu0 %v4442_v47 }
 0xc8b   :  { %4079 = vmatpush3.bf16.msra.mxu0 %v6068_v40 }
 0xc8c   :  { %4086 = vmatprep.subr.bf16.mxu0 %v4442_v47 }
 0xd59   :  { %v2085_v31 = vpop.f32.mrb[10].mxu0 }
 0xd5a   :  { %v2090_v8 = vrot.slane %v2085_v31, 2  ;;  %v3927_v56 = vpop.f32.mrb[11].mxu0 }
 0xd5c   :  { %v2092_v42 = vadd.f32 %v2090_v8, %v6098_v15 }
 0xd5e   :  { %4388 = vtanh.f32 %v2092_v42  ;;  %v3541_v6 = vmul.f32 -1.442695, %v2092_v42 }
 0xd60   :  { %4390 = vpow2.f32 %v3541_v6 }
 0xd68   :  { %v4389_v7 = vpop.eup %4388 }
 0xd69   :  { %2105 = vrot.lane.b32.xlu0 %v4389_v7, %s4444_s0 }
 0xd6a   :  { %v4391_v45 = vpop.eup %4390 }
 0xd6b   :  { %v2096_v30 = vadd.f32 1.0, %v4391_v45 }
 0xd6d   :  { %4392 = vrcp.f32 %v2096_v30 }
 0xd77   :  { %v4393_v43 = vpop.eup %4392 }
 0xd78   :  { %v2103_v26 = vmul.f32 %v4393_v43, %v2101_v63 }
 0xddb   :  { %v2106_v9 = vpop.permute.xlu0 %2105 }
 0xddc   :  { %v2108_v62 = vmul.f32 %v4393_v43, %v2106_v9 }
 0xdde   :  { %2110 = vrot.lane.b32.xlu1 %v2108_v62, %s4445_s4 }
 0xe50   :  { %v2111_v46 = vpop.permute.xlu1 %2110 }
 0xe51   :  { %v2113_v10 = vadd.f32 %v2111_v46, %v2103_v26 }
 0xe53   :  { %4394 = vtanh.f32 %v2113_v10  ;;  %v2205_v6 = vrot.slane %v2113_v10, 6 }
 0xe5d   :  { %v4395_v15 = vpop.eup %4394 }
 0xe5e   :  { %2116 = vrot.lane.b32.xlu0 %v4395_v15, %s4444_s0 }
 0xed0   :  { %v2117_v24 = vpop.permute.xlu0 %2116 }
 0xed1   :  { %v2119_v25 = vmul.f32 %v4393_v43, %v2117_v24 }
 0xed3   :  { %v2121_v61 = vrot.slane %v2119_v25, 6 }
 0xed5   :  { %2122 = vrot.lane.b32.xlu1 %v2121_v61, %s4445_s4 }
 0xf47   :  { %v2123_v11 = vpop.permute.xlu1 %2122 }
 0xf48   :  { %3937 = vmatmul.mubr.msk.f32.vlgmr.msra.gmra.mrb[10].mxu1 %vm1701_vm10, %v2123_v11 }
 0xf49   :  { %4082 = vmatpush3.bf16.msra.mxu1 %v6049_v57  ;;  %3958 = vmatprep.mubr.msk.f32.mxu1 %vm4443_vm9, %v6742_v28 }
 0xf4a   :  { %4083 = vmatprep.subr.bf16.mxu1 %v4442_v47 }
 0xf4d   :  { %4085 = vmatpush3.bf16.msra.mxu1 %v6068_v40 }
0x101b   :  { %v2192_v29 = vpop.f32.mrb[10].mxu1 }
0x101c   :  { %v2196_v14 = vadd.f32 %v2192_v29, %v6092_v44  ;;  %v3938_v12 = vpop.f32.mrb[11].mxu1 }
0x101e   :  { %4396 = vtanh.f32 %v2196_v14  ;;  %v3543_v58 = vmul.f32 -1.442695, %v2196_v14 }
0x1020   :  { %4398 = vpow2.f32 %v3543_v58 }
0x1028   :  { %v4397_v27 = vpop.eup %4396 }
0x1029   :  { %2209 = vrot.lane.b32.xlu0 %v4397_v27, %s4444_s0 }
0x102a   :  { %v4399_v31 = vpop.eup %4398 }
0x102b   :  { %v2200_v8 = vadd.f32 1.0, %v4399_v31 }
0x102d   :  { %4400 = vrcp.f32 %v2200_v8 }
0x1037   :  { %v4401_v56 = vpop.eup %4400 }
0x1038   :  { %v2207_v45 = vmul.f32 %v4401_v56, %v2205_v6 }
0x109b   :  { %v2210_v42 = vpop.permute.xlu0 %2209 }
0x109c   :  { %v2212_v7 = vmul.f32 %v4401_v56, %v2210_v42 }
0x109e   :  { %2214 = vrot.lane.b32.xlu1 %v2212_v7, %s4445_s4 }
0x1110   :  { %v2215_v30 = vpop.permute.xlu1 %2214 }
0x1111   :  { %v2217_v43 = vadd.f32 %v2215_v30, %v2207_v45 }
0x1113   :  { %4402 = vtanh.f32 %v2217_v43 }
0x111d   :  { %v4403_v9 = vpop.eup %4402 }
0x111e   :  { %2220 = vrot.lane.b32.xlu0 %v4403_v9, %s4444_s0 }
0x1190   :  { %v2221_v62 = vpop.permute.xlu0 %2220 }
0x1191   :  { %v2223_v63 = vmul.f32 %v4401_v56, %v2221_v62 }
0x1193   :  { %2225 = vrot.lane.b32.xlu1 %v2223_v63, %s4445_s4 }
0x1205   :  { %v2226_v26 = vpop.permute.xlu1 %2225 }
0x1206   :  { %3948 = vmatmul.mubr.msk.f32.vlgmr.msra.gmra.mrb[12].mxu0 %vm1701_vm10, %v2226_v26 }
0x1207   :  { %4088 = vmatpush3.bf16.msra.mxu0 %v6049_v57  ;;  %3969 = vmatprep.mubr.msk.f32.mxu0 %vm4443_vm9, %v6742_v28 }
0x1208   :  { %4089 = vmatprep.subr.bf16.mxu0 %v4442_v47  ;;  %v2311_v47 = vrot.slane %v2217_v43, 6 }
0x120b   :  { %4091 = vmatpush3.bf16.msra.mxu0 %v6068_v40 }
0x12d9   :  { %v2295_v46 = vpop.f32.mrb[12].mxu0 }
0x12da   :  { %v2300_v10 = vrot.slane %v2295_v46, 6  ;;  %v3949_v15 = vpop.f32.mrb[13].mxu0 }
0x12dc   :  { %v2302_v24 = vadd.f32 %v2300_v10, %v6092_v44 }
0x12de   :  { %4404 = vtanh.f32 %v2302_v24  ;;  %v3545_v61 = vmul.f32 -1.442695, %v2302_v24 }
0x12e0   :  { %4406 = vpow2.f32 %v3545_v61 }
0x12e8   :  { %v4405_v25 = vpop.eup %4404 }
0x12e9   :  { %2315 = vrot.lane.b32.xlu0 %v4405_v25, %s4444_s0 }
0x12ea   :  { %v4407_v11 = vpop.eup %4406 }
0x12eb   :  { %v2306_v57 = vadd.f32 1.0, %v4407_v11 }
0x12ed   :  { %4408 = vrcp.f32 %v2306_v57 }
0x12f7   :  { %v4409_v29 = vpop.eup %4408 }
0x12f8   :  { %v2313_v40 = vmul.f32 %v4409_v29, %v2311_v47 }
0x135b   :  { %v2316_v28 = vpop.permute.xlu0 %2315 }
0x135c   :  { %v2318_v14 = vmul.f32 %v4409_v29, %v2316_v28 }
0x135e   :  { %2320 = vrot.lane.b32.xlu1 %v2318_v14, %s4445_s4 }
0x13d0   :  { %v2321_v12 = vpop.permute.xlu1 %2320 }
0x13d1   :  { %v2323_v27 = vadd.f32 %v2321_v12, %v2313_v40 }
0x13d3   :  { %4410 = vtanh.f32 %v2323_v27  ;;  %v2418_v15 = vrot.slane %v2323_v27, 6 }
0x13dd   :  { %v4411_v58 = vpop.eup %4410 }
0x13de   :  { %2326 = vrot.lane.b32.xlu0 %v4411_v58, %s4444_s0 }
0x1450   :  { %v2327_v31 = vpop.permute.xlu0 %2326 }
0x1451   :  { %v2329_v8 = vmul.f32 %v4409_v29, %v2327_v31 }
0x1453   :  { %v2331_v56 = vrot.slane %v2329_v8, 2 }
0x1455   :  { %2332 = vrot.lane.b32.xlu1 %v2331_v56, %s4445_s4 }
0x14c7   :  { %v2333_v42 = vpop.permute.xlu1 %2332 }
0x14c8   :  { %3959 = vmatmul.mubr.msk.f32.vlgmr.msra.gmra.mrb[12].mxu1 %vm1701_vm10, %v2333_v42 }
0x159b   :  { %v2402_v7 = vpop.f32.mrb[12].mxu1 }
0x159c   :  { %v2407_v6 = vrot.slane %v2402_v7, 4  ;;  %v3960_v45 = vpop.f32.mrb[13].mxu1 }
0x159e   :  { %v2409_v30 = vadd.f32 %v2407_v6, %v6092_v44 }
0x15a0   :  { %4412 = vtanh.f32 %v2409_v30  ;;  %v3547_v9 = vmul.f32 -1.442695, %v2409_v30 }
0x15a2   :  { %4414 = vpow2.f32 %v3547_v9 }
0x15aa   :  { %v4413_v43 = vpop.eup %4412 }
0x15ab   :  { %2422 = vrot.lane.b32.xlu0 %v4413_v43, %s4444_s0 }
0x15ac   :  { %v4415_v62 = vpop.eup %4414 }
0x15ad   :  { %v2413_v63 = vadd.f32 1.0, %v4415_v62 }
0x15af   :  { %4416 = vrcp.f32 %v2413_v63 }
0x15b9   :  { %v4417_v26 = vpop.eup %4416 }
0x15ba   :  { %v2420_v24 = vmul.f32 %v4417_v26, %v2418_v15  ;;  %v4126_v15 = vpack.c.bf16 %v4485_v1, %v4480_v0 }
0x161d   :  { %v2423_v46 = vpop.permute.xlu0 %2422 }
0x161e   :  { %v2425_v10 = vmul.f32 %v4417_v26, %v2423_v46  ;;  %v4124_v46 = vpack.c.bf16 %v4565_v17, %v4560_v16 }
0x1620   :  { %2427 = vrot.lane.b32.xlu1 %v2425_v10, %s4445_s4  ;;  %v4094_v10 = vpack.c.bf16 %v4645_v33, %v4640_v32 }
0x1692   :  { %v2428_v25 = vpop.permute.xlu1 %2427 }
0x1693   :  { %v2430_v61 = vadd.f32 %v2428_v25, %v2420_v24 }
0x1695   :  { %4418 = vtanh.f32 %v2430_v61  ;;  %v2525_v45 = vrot.slane %v2430_v61, 6 }
0x169f   :  { %v4419_v11 = vpop.eup %4418 }
0x16a0   :  { %2433 = vrot.lane.b32.xlu0 %v4419_v11, %s4444_s0 }
0x1712   :  { %v2434_v57 = vpop.permute.xlu0 %2433 }
0x1713   :  { %v2436_v29 = vmul.f32 %v4417_v26, %v2434_v57  ;;  %v4092_v26 = vpack.c.bf16 %v4725_v49, %v4720_v48 }
0x1715   :  { %v2438_v28 = vrot.slane %v2436_v29, 4 }
0x1717   :  { %2439 = vrot.lane.b32.xlu1 %v2438_v28, %s4445_s4 }
0x1789   :  { %v2440_v14 = vpop.permute.xlu1 %2439 }
0x178a   :  { %3970 = vmatmul.mubr.msk.f32.vlgmr.msra.gmra.mrb[14].mxu0 %vm1701_vm10, %v2440_v14 }
0x185d   :  { %v2509_v47 = vpop.f32.mrb[14].mxu0 }
0x185e   :  { %v2514_v40 = vrot.slane %v2509_v47, 2  ;;  %v3971_v12 = vpop.f32.mrb[15].mxu0 }
0x1860   :  { %v2516_v27 = vadd.f32 %v2514_v40, %v6092_v44 }
0x1862   :  { %4420 = vtanh.f32 %v2516_v27  ;;  %v3549_v31 = vmul.f32 -1.442695, %v2516_v27 }
0x1864   :  { %4422 = vpow2.f32 %v3549_v31 }
0x186c   :  { %v4421_v58 = vpop.eup %4420 }
0x186d   :  { %2529 = vrot.lane.b32.xlu0 %v4421_v58, %s4444_s0 }
0x186e   :  { %v4423_v8 = vpop.eup %4422 }
0x186f   :  { %v2520_v56 = vadd.f32 1.0, %v4423_v8 }
0x1871   :  { %4424 = vrcp.f32 %v2520_v56 }
0x187b   :  { %v4425_v42 = vpop.eup %4424 }
0x187c   :  { %v2527_v30 = vmul.f32 %v4425_v42, %v2525_v45 }
0x18df   :  { %v2530_v7 = vpop.permute.xlu0 %2529 }
0x18e0   :  { %v2532_v6 = vmul.f32 %v4425_v42, %v2530_v7 }
0x18e2   :  { %2534 = vrot.lane.b32.xlu1 %v2532_v6, %s4445_s4 }
0x1954   :  { %v2535_v43 = vpop.permute.xlu1 %2534 }
0x1955   :  { %v2537_v9 = vadd.f32 %v2535_v43, %v2527_v30 }
0x1957   :  { %4426 = vtanh.f32 %v2537_v9 }
0x1961   :  { %v4427_v44 = vpop.eup %4426 }
0x1962   :  { %2540 = vrot.lane.b32.xlu0 %v4427_v44, %s4444_s0 }
0x19d4   :  { %v2541_v62 = vpop.permute.xlu0 %2540 }
0x19d5   :  { %v6174_v63 = vmul.f32 %v4425_v42, %v2541_v62 }
0x19d6   :  { %4429 = dma.done.wait [#allocation4], 32768 }
0x19d7   :  { %4430 = vsyncadd [#allocation4], 4294934528  ;;  %v4096_v24 = vpack.c.bf16 %v4735_v51, %v4730_v50  ;;  %v4128_v25 = vpack.c.bf16 %v4575_v19, %v4570_v18  ;;  %4093 = vmatprep.subr.bf16.mxu1 %v4092_v26  ;;  %4125 = vmatprep.subr.bf16.mxu0 %v4124_v46  ;;  %v4098_v16 = vpack.c.bf16 %v4655_v35, %v4650_v34  ;;  %v2590_v18 = vrot.slane %v6087_v13, 1  ;;  %v6746_v34 = vld [vmem:[#allocation8_spill] sm:$0xff]  ;;  %v6750_v48 = vld [vmem:[#allocation18_spill] sm:$0xff] }
0x19d8   :  { %4095 = vmatpush3.bf16.msra.mxu1 %v4094_v10  ;;  %4127 = vmatpush3.bf16.msra.mxu0 %v4126_v15  ;;  %v4130_v17 = vpack.c.bf16 %v4495_v3, %v4490_v2  ;;  %v4100_v0 = vpack.c.bf16 %v4745_v53, %v4740_v52  ;;  %v4132_v1 = vpack.c.bf16 %v4585_v21, %v4580_v20  ;;  %v2550_v19 = vrot.slane %v6096_v59, 7  ;;  %v6751_v50 = vld [vmem:[#allocation25_spill] sm:$0xff]  ;;  %v6752_v51 = vld [vmem:[#allocation26_spill] sm:$0xff]  ;;  %v6757_v11 = vld [vmem:[#allocation19_spill] sm:$0xff] }
0x19d9   :  { %4097 = vmatprep.subr.bf16.mxu1 %v4096_v24  ;;  %4129 = vmatprep.subr.bf16.mxu0 %v4128_v25  ;;  %v4102_v32 = vpack.c.bf16 %v4665_v37, %v4660_v36  ;;  %v4134_v2 = vpack.c.bf16 %v4505_v5, %v4500_v4  ;;  %v4104_v3 = vpack.c.bf16 %v4755_v55, %v4750_v54  ;;  %v6745_v5 = vld [vmem:[#allocation7_spill] sm:$0xff]  ;;  %v6747_v36 = vld [vmem:[#allocation33_spill] sm:$0xff]  ;;  %v6754_v54 = vld [vmem:[#allocation10_spill] sm:$0xff]  ;;  %v2589_v25 = vrot.slane %v6085_v60, 1 }
0x19da   :  { %v4136_v20 = vpack.c.bf16 %v4595_v23, %v4590_v22  ;;  %v2594_v21 = vsel %vm1448_vm1, %v2590_v18, %v6096_v59  ;;  %v2554_v33 = vsel %vm1448_vm1, %v6087_v13, %v2550_v19  ;;  %v4106_v4 = vpack.c.bf16 %v4675_v39, %v4670_v38  ;;  %v6748_v22 = vld [vmem:[#allocation34_spill] sm:$0xff]  ;;  %v6749_v37 = vld [vmem:[#allocation17_spill] sm:$0xff]  ;;  %v6755_v38 = vld [vmem:[#allocation35_spill] sm:$0xff] }
0x19db   :  { %2691 = vmatprep.mubr.f32.mxu1 %v2594_v21  ;;  %2761 = vmatprep.mubr.f32.mxu0 %v2554_v33  ;;  %v4138_v35 = vpack.c.bf16 %v6746_v34, %v6745_v5  ;;  %v4108_v23 = vpack.c.bf16 %v6748_v22, %v6747_v36  ;;  %v4140_v49 = vpack.c.bf16 %v6750_v48, %v6749_v37  ;;  %v6753_v53 = vld [vmem:[#allocation9_spill] sm:$0xff]  ;;  %v6756_v39 = vld [vmem:[#allocation36_spill] sm:$0xff]  ;;  %v6759_v28 = vld [vmem:[#allocation27_spill] sm:$0xff]  ;;  %v2768_v5 = vrot.slane %v6087_v13, 2 }
0x19dc   :  { %4099 = vmatpush3.bf16.msra.mxu1 %v4098_v16  ;;  %4131 = vmatpush3.bf16.msra.mxu0 %v4130_v17  ;;  %v4110_v52 = vpack.c.bf16 %v6752_v51, %v6751_v50  ;;  %v4142_v55 = vpack.c.bf16 %v6754_v54, %v6753_v53  ;;  %v4112_v61 = vpack.c.bf16 %v6756_v39, %v6755_v38  ;;  %v6758_v57 = vld [vmem:[#allocation20_spill] sm:$0xff]  ;;  %v6761_v40 = vld [vmem:[#allocation11_spill] sm:$0xff]  ;;  %v6763_v58 = vld [vmem:[#allocation37_spill] sm:$0xff]  ;;  %v2881_v36 = vrot.slane %v6087_v13, 3 }
0x19dd   :  { %4101 = vmatprep.subr.bf16.mxu1 %v4100_v0  ;;  %4133 = vmatprep.subr.bf16.mxu0 %v4132_v1  ;;  %v4144_v29 = vpack.c.bf16 %v6758_v57, %v6757_v11  ;;  %v6760_v14 = vld [vmem:[#allocation28_spill] sm:$0xff]  ;;  %v6764_v31 = vld [vmem:[#allocation38_spill] sm:$0xff]  ;;  %v6765_v56 = vld [vmem:[#allocation21_spill] sm:$0xff]  ;;  %v2593_v34 = vsel %vm1448_vm1, %v2589_v25, %v6094_v41  ;;  %v2885_v22 = vrot.slane %v6096_v59, 2  ;;  %vm3484_vm13 = vcmask 254976  }
0x19de   :  { %v4114_v47 = vpack.c.bf16 %v6760_v14, %v6759_v28  ;;  %v6762_v12 = vld [vmem:[#allocation12_spill] sm:$0xff]  ;;  %v4116_v8 = vpack.c.bf16 %v6764_v31, %v6763_v58  ;;  %v6766_v42 = vld [vmem:[#allocation22_spill] sm:$0xff]  ;;  %v6767_v6 = vld [vmem:[#allocation29_spill] sm:$0xff]  ;;  %vm3494_vm14 = vcmask 1024  }
0x19df   :  { %v4146_v27 = vpack.c.bf16 %v6762_v12, %v6761_v40  ;;  %v4148_v7 = vpack.c.bf16 %v6766_v42, %v6765_v56  ;;  %v6768_v45 = vld [vmem:[#allocation30_spill] sm:$0xff]  ;;  %v6769_v43 = vld [vmem:[#allocation13_spill] sm:$0xff]  ;;  %v6771_v62 = vld [vmem:[#allocation39_spill] sm:$0xff]  ;;  %v2889_v57 = vsel %vm1448_vm1, %v2881_v36, %v2885_v22 }
0x19e0   :  { %4103 = vmatpush3.bf16.msra.mxu1 %v4102_v32  ;;  %4135 = vmatpush3.bf16.msra.mxu0 %v4134_v2  ;;  %v4118_v30 = vpack.c.bf16 %v6768_v45, %v6767_v6  ;;  %v6770_v9 = vld [vmem:[#allocation14_spill] sm:$0xff]  ;;  %v6772_v26 = vld [vmem:[#allocation40_spill] sm:$0xff]  ;;  %v6773_v10 = vld [vmem:[#allocation23_spill] sm:$0xff]  ;;  %v2549_v32 = vrot.slane %v6094_v41, 7 }
0x19e1   :  { %4105 = vmatprep.subr.bf16.mxu1 %v4104_v3  ;;  %4137 = vmatprep.subr.bf16.mxu0 %v4136_v20  ;;  %v4150_v44 = vpack.c.bf16 %v6770_v9, %v6769_v43  ;;  %v4120_v46 = vpack.c.bf16 %v6772_v26, %v6771_v62  ;;  %v6774_v15 = vld [vmem:[#allocation24_spill] sm:$0xff]  ;;  %v6775_v16 = vld [vmem:[#allocation31_spill] sm:$0xff]  ;;  %v6779_v2 = vld [vmem:[#allocation57_spill] sm:$0xff] }
0x19e2   :  { %v4152_v24 = vpack.c.bf16 %v6774_v15, %v6773_v10  ;;  %v6776_v17 = vld [vmem:[#allocation32_spill] sm:$0xff]  ;;  %v6777_v1 = vld [vmem:[#allocation15_spill] sm:$0xff]  ;;  %v6780_v3 = vld [vmem:[#allocation58_spill] sm:$0xff] }
0x19e3   :  { %v4122_v0 = vpack.c.bf16 %v6776_v17, %v6775_v16  ;;  %v6778_v18 = vld [vmem:[#allocation16_spill] sm:$0xff]  ;;  %v4156_v20 = vpack.c.bf16 %v6780_v3, %v6779_v2  ;;  %v6781_v21 = vld [vmem:[#allocation89_spill] sm:$0xff]  ;;  %v6782_v33 = vld [vmem:[#allocation90_spill] sm:$0xff] }
0x19e4   :  { %4107 = vmatpush3.bf16.msra.mxu1 %v4106_v4  ;;  %4139 = vmatpush3.bf16.msra.mxu0 %v4138_v35  ;;  %v4154_v19 = vpack.c.bf16 %v6778_v18, %v6777_v1  ;;  %v4188_v4 = vpack.c.bf16 %v6782_v33, %v6781_v21  ;;  %v2772_v35 = vrot.slane %v6096_v59, 1  ;;  %v6783_v37 = vld [vmem:[#allocation41_spill] sm:$0xff]  ;;  %v6784_v48 = vld [vmem:[#allocation42_spill] sm:$0xff]  ;;  %v6787_v53 = vld [vmem:[#allocation59_spill] sm:$0xff]  ;;  %v4446_v33 = vmov 0  }
0x19e5   :  { %4109 = vmatprep.subr.bf16.mxu1 %v4108_v23  ;;  %4141 = vmatprep.subr.bf16.mxu0 %v4140_v49  ;;  %v2553_v23 = vsel %vm1448_vm1, %v6085_v60, %v2549_v32  ;;  %v4158_v49 = vpack.c.bf16 %v6784_v48, %v6783_v37  ;;  %v6785_v50 = vld [vmem:[#allocation73_spill] sm:$0xff]  ;;  %v6786_v51 = vld [vmem:[#allocation74_spill] sm:$0xff]  ;;  %v6788_v54 = vld [vmem:[#allocation60_spill] sm:$0xff] }
0x19e6   :  { %v6789_v38 = vld [vmem:[#allocation91_spill] sm:$0xff]  ;;  %v6790_v39 = vld [vmem:[#allocation92_spill] sm:$0xff]  ;;  %v2776_v11 = vsel %vm1448_vm1, %v2768_v5, %v2772_v35  ;;  %v6796_v58 = vld [vmem:[#allocation62_spill] sm:$0xff]  ;;  %4428 = vset.pattern.permute.xlu0 %v4446_v33 }
0x19e7   :  { %v6792_v28 = vld [vmem:[#allocation44_spill] sm:$0xff]  ;;  %v6798_v56 = vld [vmem:[#allocation94_spill] sm:$0xff]  ;;  %v6809_v17 = vld [vmem:[#allocation79_spill] sm:$0xff] }
0x19e8   :  { %4111 = vmatpush3.bf16.msra.mxu1 %v4110_v52  ;;  %4143 = vmatpush3.bf16.msra.mxu0 %v4142_v55  ;;  %v4190_v52 = vpack.c.bf16 %v6786_v51, %v6785_v50  ;;  %v4160_v55 = vpack.c.bf16 %v6788_v54, %v6787_v53  ;;  %v6794_v40 = vld [vmem:[#allocation76_spill] sm:$0xff]  ;;  %v6800_v6 = vld [vmem:[#allocation46_spill] sm:$0xff]  ;;  %v3452_v18 = vld [vmem:[%s6505_s2] sm:$0x3] }
0x19e9   :  { %4113 = vmatprep.subr.bf16.mxu1 %v4112_v61  ;;  %4145 = vmatprep.subr.bf16.mxu0 %v4144_v29  ;;  %v4192_v61 = vpack.c.bf16 %v6790_v39, %v6789_v38  ;;  %v6791_v29 = vld [vmem:[#allocation43_spill] sm:$0xff]  ;;  %v6802_v43 = vld [vmem:[#allocation78_spill] sm:$0xff]  ;;  %v6804_v62 = vld [vmem:[#allocation64_spill] sm:$0xff] }
0x19ea   :  { %v4162_v14 = vpack.c.bf16 %v6792_v28, %v6791_v29  ;;  %v6806_v10 = vld [vmem:[#allocation96_spill] sm:$0xff]  ;;  %v6812_v32 = vld [vmem:[#allocation66_spill] sm:$0xff]  ;;  %v6813_v3 = vld [vmem:[#allocation97_spill] sm:$0xff]  ;;  %3456 = vperm.xlu0 %4428, %v3452_v18  }
0x19eb   :  { %v6808_v25 = vld [vmem:[#allocation48_spill] sm:$0xff]  ;;  %v6815_v5 = vld [vmem:[#allocation49_spill] sm:$0xff]  ;;  %v6818_v22 = vld [vmem:[#allocation82_spill] sm:$0xff] }
0x19ec   :  { %4115 = vmatpush3.bf16.msra.mxu1 %v4114_v47  ;;  %4147 = vmatpush3.bf16.msra.mxu0 %v4146_v27  ;;  %v6793_v47 = vld [vmem:[#allocation75_spill] sm:$0xff]  ;;  %v6795_v27 = vld [vmem:[#allocation61_spill] sm:$0xff]  ;;  %v6820_v48 = vld [vmem:[#allocation68_spill] sm:$0xff] }
0x19ed   :  { %4117 = vmatprep.subr.bf16.mxu1 %v4116_v8  ;;  %4149 = vmatprep.subr.bf16.mxu0 %v4148_v7  ;;  %v4194_v12 = vpack.c.bf16 %v6794_v40, %v6793_v47  ;;  %v4164_v31 = vpack.c.bf16 %v6796_v58, %v6795_v27  ;;  %v6797_v8 = vld [vmem:[#allocation93_spill] sm:$0xff]  ;;  %v6819_v37 = vld [vmem:[#allocation67_spill] sm:$0xff]  ;;  %v6822_v51 = vld [vmem:[#allocation100_spill] sm:$0xff] }
0x19ee   :  { %v4196_v42 = vpack.c.bf16 %v6798_v56, %v6797_v8  ;;  %v6799_v7 = vld [vmem:[#allocation45_spill] sm:$0xff]  ;;  %v6821_v50 = vld [vmem:[#allocation99_spill] sm:$0xff]  ;;  %v6824_v53 = vld [vmem:[#allocation52_spill] sm:$0xff] }
0x19ef   :  { %v4166_v45 = vpack.c.bf16 %v6800_v6, %v6799_v7  ;;  %v6817_v36 = vld [vmem:[#allocation81_spill] sm:$0xff]  ;;  %v6826_v38 = vld [vmem:[#allocation84_spill] sm:$0xff]  ;;  %v6830_v28 = vld [vmem:[#allocation102_spill] sm:$0xff] }
0x19f0   :  { %4119 = vmatpush3.bf16.msra.mxu1 %v4118_v30  ;;  %4151 = vmatpush3.bf16.msra.mxu0 %v4150_v44  ;;  %v6801_v30 = vld [vmem:[#allocation77_spill] sm:$0xff]  ;;  %v6803_v44 = vld [vmem:[#allocation63_spill] sm:$0xff]  ;;  %v6832_v40 = vld [vmem:[#allocation54_spill] sm:$0xff] }
0x19f1   :  { %4121 = vmatprep.subr.bf16.mxu1 %v4120_v46  ;;  %4153 = vmatprep.subr.bf16.mxu0 %v4152_v24  ;;  %v4198_v9 = vpack.c.bf16 %v6802_v43, %v6801_v30  ;;  %v4168_v26 = vpack.c.bf16 %v6804_v62, %v6803_v44  ;;  %v6805_v46 = vld [vmem:[#allocation95_spill] sm:$0xff]  ;;  %v6829_v29 = vld [vmem:[#allocation101_spill] sm:$0xff]  ;;  %v6834_v58 = vld [vmem:[#allocation86_spill] sm:$0xff]  ;;  %v2767_v30 = vrot.slane %v6085_v60, 2  ;;  %v2771_v43 = vrot.slane %v6094_v41, 1 }
0x19f2   :  { %v4200_v15 = vpack.c.bf16 %v6806_v10, %v6805_v46  ;;  %v6807_v24 = vld [vmem:[#allocation47_spill] sm:$0xff]  ;;  %v6831_v47 = vld [vmem:[#allocation53_spill] sm:$0xff]  ;;  %v6836_v56 = vld [vmem:[#allocation72_spill] sm:$0xff] }
0x19f3   :  { %v4170_v16 = vpack.c.bf16 %v6808_v25, %v6807_v24  ;;  %v6833_v27 = vld [vmem:[#allocation85_spill] sm:$0xff]  ;;  %v6835_v8 = vld [vmem:[#allocation71_spill] sm:$0xff]  ;;  %v6838_v6 = vld [vmem:[#allocation104_spill] sm:$0xff]  ;;  %v2884_v24 = vrot.slane %v6094_v41, 2 }
0x19f4   :  { %4123 = vmatpush3.bf16.msra.mxu1 %v4122_v0  ;;  %4155 = vmatpush3.bf16.msra.mxu0 %v4154_v19  ;;  %v6810_v0 = vld [vmem:[#allocation80_spill] sm:$0xff]  ;;  %v6811_v19 = vld [vmem:[#allocation65_spill] sm:$0xff]  ;;  %v6837_v7 = vld [vmem:[#allocation103_spill] sm:$0xff] }
0x19f5   :  { %4157 = vmatprep.subr.bf16.mxu1 %v4156_v20  ;;  %4189 = vmatprep.subr.bf16.mxu0 %v4188_v4  ;;  %v4202_v1 = vpack.c.bf16 %v6810_v0, %v6809_v17  ;;  %v4172_v2 = vpack.c.bf16 %v6812_v32, %v6811_v19  ;;  %v6814_v20 = vld [vmem:[#allocation98_spill] sm:$0xff]  ;;  %v3472_v4 = vrot.slane %v6174_v63, 6  ;;  %v6823_v63 = vld [vmem:[#allocation51_spill] sm:$0xff]  ;;  %v6840_v44 = vld [vmem:[#allocation56_spill] sm:$0xff]  ;;  %v2775_v19 = vsel %vm1448_vm1, %v2767_v30, %v2771_v43 }
0x19f6   :  { %v4204_v21 = vpack.c.bf16 %v6814_v20, %v6813_v3  ;;  %v4178_v54 = vpack.c.bf16 %v6824_v53, %v6823_v63  ;;  %v6842_v46 = vld [vmem:[#allocation88_spill] sm:$0xff]  ;;  %v6843_v25 = vld [vmem:[#allocation121_spill] sm:$0xff]  ;;  %v2994_v32 = vrot.slane %v6087_v13, 4  ;;  %v3107_v3 = vrot.slane %v6087_v13, 5  ;;  %v6848_v33 = vld [vmem:[#allocation106_spill] sm:$0xff] }
0x19f7   :  { %2692 = vmatmul.mubr.f32.vlgmr.msra.gmra.mrb[14].mxu1 %v2593_v34  ;;  %2762 = vmatmul.mubr.f32.vlgmr.msra.gmra.mrb[16].mxu0 %v2553_v23  ;;  %v6816_v34 = vld [vmem:[#allocation50_spill] sm:$0xff]  ;;  %v4206_v23 = vpack.c.bf16 %v6818_v22, %v6817_v36  ;;  %v6845_v0 = vld [vmem:[#allocation153_spill] sm:$0xff]  ;;  %v3111_v20 = vrot.slane %v6096_v59, 4  ;;  %v6851_v22 = vld [vmem:[#allocation123_spill] sm:$0xff] }
0x19f8   :  { %4159 = vmatpush3.bf16.msra.mxu1 %v4158_v49  ;;  %4191 = vmatpush3.bf16.msra.mxu0 %v4190_v52  ;;  %v4174_v35 = vpack.c.bf16 %v6816_v34, %v6815_v5  ;;  %v4176_v49 = vpack.c.bf16 %v6820_v48, %v6819_v37  ;;  %v4208_v52 = vpack.c.bf16 %v6822_v51, %v6821_v50  ;;  %v6849_v34 = vld [vmem:[#allocation137_spill] sm:$0xff]  ;;  %v6853_v48 = vld [vmem:[#allocation155_spill] sm:$0xff]  ;;  %v6856_v53 = vld [vmem:[#allocation108_spill] sm:$0xff] }
0x19f9   :  { %4161 = vmatprep.subr.bf16.mxu1 %v4160_v55  ;;  %4193 = vmatprep.subr.bf16.mxu0 %v4192_v61  ;;  %v6825_v55 = vld [vmem:[#allocation83_spill] sm:$0xff]  ;;  %v6827_v61 = vld [vmem:[#allocation69_spill] sm:$0xff]  ;;  %v6872_v43 = vld [vmem:[#allocation112_spill] sm:$0xff] }
0x19fa   :  { %2873 = vmatprep.mubr.f32.mxu1 %v2776_v11  ;;  %2986 = vmatprep.mubr.f32.mxu0 %v2889_v57  ;;  %v4210_v39 = vpack.c.bf16 %v6826_v38, %v6825_v55  ;;  %v6828_v11 = vld [vmem:[#allocation70_spill] sm:$0xff]  ;;  %v6855_v63 = vld [vmem:[#allocation107_spill] sm:$0xff]  ;;  %v6858_v38 = vld [vmem:[#allocation140_spill] sm:$0xff] }
0x19fb   :  { %3473 = vrot.lane.b32.xlu0 %v3472_v4, %s4445_s4  ;;  %v4180_v57 = vpack.c.bf16 %v6828_v11, %v6827_v61  ;;  %v6857_v55 = vld [vmem:[#allocation139_spill] sm:$0xff]  ;;  %v6859_v61 = vld [vmem:[#allocation125_spill] sm:$0xff]  ;;  %v6860_v11 = vld [vmem:[#allocation126_spill] sm:$0xff] }
0x19fc   :  { %4163 = vmatpush3.bf16.msra.mxu1 %v4162_v14  ;;  %4195 = vmatpush3.bf16.msra.mxu0 %v4194_v12  ;;  %v4212_v14 = vpack.c.bf16 %v6830_v28, %v6829_v29  ;;  %v4182_v12 = vpack.c.bf16 %v6832_v40, %v6831_v47  ;;  %v6861_v29 = vld [vmem:[#allocation157_spill] sm:$0xff]  ;;  %v6862_v28 = vld [vmem:[#allocation158_spill] sm:$0xff]  ;;  %v6871_v30 = vld [vmem:[#allocation111_spill] sm:$0xff] }
0x19fd   :  { %4165 = vmatprep.subr.bf16.mxu1 %v4164_v31  ;;  %4197 = vmatprep.subr.bf16.mxu0 %v4196_v42  ;;  %v4214_v31 = vpack.c.bf16 %v6834_v58, %v6833_v27  ;;  %v4184_v42 = vpack.c.bf16 %v6836_v56, %v6835_v8  ;;  %v6863_v47 = vld [vmem:[#allocation109_spill] sm:$0xff]  ;;  %v6864_v40 = vld [vmem:[#allocation110_spill] sm:$0xff]  ;;  %v6867_v8 = vld [vmem:[#allocation127_spill] sm:$0xff] }
0x19fe   :  { %v6865_v27 = vld [vmem:[#allocation141_spill] sm:$0xff]  ;;  %v6866_v58 = vld [vmem:[#allocation142_spill] sm:$0xff]  ;;  %v6868_v56 = vld [vmem:[#allocation128_spill] sm:$0xff] }
0x1a00   :  { %4167 = vmatpush3.bf16.msra.mxu1 %v4166_v45  ;;  %4199 = vmatpush3.bf16.msra.mxu0 %v4198_v9  ;;  %v4216_v45 = vpack.c.bf16 %v6838_v6, %v6837_v7  ;;  %v6839_v9 = vld [vmem:[#allocation55_spill] sm:$0xff]  ;;  %v6870_v6 = vld [vmem:[#allocation160_spill] sm:$0xff] }
0x1a01   :  { %4169 = vmatprep.subr.bf16.mxu1 %v4168_v26  ;;  %4201 = vmatprep.subr.bf16.mxu0 %v4200_v15  ;;  %v4186_v62 = vpack.c.bf16 %v6840_v44, %v6839_v9  ;;  %v6841_v26 = vld [vmem:[#allocation87_spill] sm:$0xff]  ;;  %v2880_v15 = vrot.slane %v6085_v60, 3  ;;  %v4234_v9 = vpack.c.bf16 %v6872_v43, %v6871_v30  ;;  %v6909_v43 = vld [vmem:[#allocation217_spill] sm:$0xff] }
0x1a02   :  { %v4218_v10 = vpack.c.bf16 %v6842_v46, %v6841_v26  ;;  %v6869_v7 = vld [vmem:[#allocation159_spill] sm:$0xff]  ;;  %v6875_v46 = vld [vmem:[#allocation129_spill] sm:$0xff] }
0x1a03   :  { %v2888_v5 = vsel %vm1448_vm1, %v2880_v15, %v2884_v24  ;;  %v6873_v44 = vld [vmem:[#allocation143_spill] sm:$0xff]  ;;  %v6877_v24 = vld [vmem:[#allocation161_spill] sm:$0xff] }
0x1a04   :  { %4171 = vmatpush3.bf16.msra.mxu1 %v4170_v16  ;;  %4203 = vmatpush3.bf16.msra.mxu0 %v4202_v1  ;;  %v6844_v16 = vld [vmem:[#allocation122_spill] sm:$0xff] }
0x1a05   :  { %4173 = vmatprep.subr.bf16.mxu1 %v4172_v2  ;;  %4205 = vmatprep.subr.bf16.mxu0 %v4204_v21  ;;  %v4220_v17 = vpack.c.bf16 %v6844_v16, %v6843_v25  ;;  %v6846_v1 = vld [vmem:[#allocation154_spill] sm:$0xff]  ;;  %v2998_v2 = vrot.slane %v6096_v59, 3  ;;  %v6847_v21 = vld [vmem:[#allocation105_spill] sm:$0xff] }
0x1a06   :  { %v4252_v18 = vpack.c.bf16 %v6846_v1, %v6845_v0  ;;  %v4222_v4 = vpack.c.bf16 %v6848_v33, %v6847_v21  ;;  %v6878_v25 = vld [vmem:[#allocation162_spill] sm:$0xff]  ;;  %v6885_v21 = vld [vmem:[#allocation163_spill] sm:$0xff]  ;;  %v6886_v33 = vld [vmem:[#allocation164_spill] sm:$0xff] }
0x1a07   :  { %v3002_v51 = vsel %vm1448_vm1, %v2994_v32, %v2998_v2  ;;  %v4268_v16 = vpack.c.bf16 %v6878_v25, %v6877_v24  ;;  %v6880_v0 = vld [vmem:[#allocation114_spill] sm:$0xff]  ;;  %v6883_v2 = vld [vmem:[#allocation131_spill] sm:$0xff]  ;;  %v6911_v24 = vld [vmem:[#allocation169_spill] sm:$0xff] }
0x1a08   :  { %4175 = vmatpush3.bf16.msra.mxu1 %v4174_v35  ;;  %4207 = vmatpush3.bf16.msra.mxu0 %v4206_v23  ;;  %v6850_v35 = vld [vmem:[#allocation138_spill] sm:$0xff]  ;;  %v6852_v23 = vld [vmem:[#allocation124_spill] sm:$0xff] }
0x1a09   :  { %4177 = vmatprep.subr.bf16.mxu1 %v4176_v49  ;;  %4209 = vmatprep.subr.bf16.mxu0 %v4208_v52  ;;  %v4254_v36 = vpack.c.bf16 %v6850_v35, %v6849_v34  ;;  %v4224_v37 = vpack.c.bf16 %v6852_v23, %v6851_v22  ;;  %v6854_v49 = vld [vmem:[#allocation156_spill] sm:$0xff]  ;;  %v3115_v52 = vsel %vm1448_vm1, %v3107_v3, %v3111_v20  ;;  %v6912_v25 = vld [vmem:[#allocation170_spill] sm:$0xff] }
0x1a0a   :  { %v4256_v50 = vpack.c.bf16 %v6854_v49, %v6853_v48  ;;  %v6884_v3 = vld [vmem:[#allocation132_spill] sm:$0xff]  ;;  %v6892_v48 = vld [vmem:[#allocation134_spill] sm:$0xff] }
0x1a0b   :  { %v4240_v20 = vpack.c.bf16 %v6884_v3, %v6883_v2  ;;  %v6888_v34 = vld [vmem:[#allocation116_spill] sm:$0xff]  ;;  %v6917_v3 = vld [vmem:[#allocation219_spill] sm:$0xff] }
0x1a0c   :  { %4179 = vmatpush3.bf16.msra.mxu1 %v4178_v54  ;;  %4211 = vmatpush3.bf16.msra.mxu0 %v4210_v39  ;;  %v4226_v54 = vpack.c.bf16 %v6856_v53, %v6855_v63  ;;  %v4258_v39 = vpack.c.bf16 %v6858_v38, %v6857_v55  ;;  %v6890_v22 = vld [vmem:[#allocation148_spill] sm:$0xff]  ;;  %v6895_v63 = vld [vmem:[#allocation117_spill] sm:$0xff]  ;;  %v6896_v53 = vld [vmem:[#allocation118_spill] sm:$0xff] }
0x1a0d   :  { %4181 = vmatprep.subr.bf16.mxu1 %v4180_v57  ;;  %4213 = vmatprep.subr.bf16.mxu0 %v4212_v14  ;;  %v4228_v57 = vpack.c.bf16 %v6860_v11, %v6859_v61  ;;  %v4260_v14 = vpack.c.bf16 %v6862_v28, %v6861_v29  ;;  %v6897_v55 = vld [vmem:[#allocation149_spill] sm:$0xff]  ;;  %v6898_v38 = vld [vmem:[#allocation150_spill] sm:$0xff]  ;;  %v6899_v61 = vld [vmem:[#allocation135_spill] sm:$0xff] }
0x1a0e   :  { %v6900_v11 = vld [vmem:[#allocation136_spill] sm:$0xff]  ;;  %v6901_v29 = vld [vmem:[#allocation167_spill] sm:$0xff] }
0x1a0f   :  { %v6902_v28 = vld [vmem:[#allocation168_spill] sm:$0xff] }
0x1a10   :  { %4183 = vmatpush3.bf16.msra.mxu1 %v4182_v12  ;;  %4215 = vmatpush3.bf16.msra.mxu0 %v4214_v31  ;;  %v4230_v12 = vpack.c.bf16 %v6864_v40, %v6863_v47  ;;  %v4262_v31 = vpack.c.bf16 %v6866_v58, %v6865_v27  ;;  %v2993_v47 = vrot.slane %v6085_v60, 4  ;;  %v2997_v40 = vrot.slane %v6094_v41, 3  ;;  %v6904_v27 = vld [vmem:[#allocation120_spill] sm:$0xff] }
0x1a11   :  { %4185 = vmatprep.subr.bf16.mxu1 %v4184_v42  ;;  %4217 = vmatprep.subr.bf16.mxu0 %v4216_v45  ;;  %v4232_v42 = vpack.c.bf16 %v6868_v56, %v6867_v8  ;;  %v4264_v45 = vpack.c.bf16 %v6870_v6, %v6869_v7  ;;  %v6906_v8 = vld [vmem:[#allocation152_spill] sm:$0xff]  ;;  %v3110_v7 = vrot.slane %v6094_v41, 4  ;;  %v6907_v6 = vld [vmem:[#allocation185_spill] sm:$0xff] }
0x1a14   :  { %4187 = vmatpush3.bf16.msra.mxu1 %v4186_v62  ;;  %4219 = vmatpush3.bf16.msra.mxu0 %v4218_v10  ;;  %v6874_v62 = vld [vmem:[#allocation144_spill] sm:$0xff]  ;;  %v6876_v10 = vld [vmem:[#allocation130_spill] sm:$0xff] }
0x1a15   :  { %4221 = vmatprep.subr.bf16.mxu1 %v4220_v17  ;;  %4253 = vmatprep.subr.bf16.mxu0 %v4252_v18  ;;  %v4266_v26 = vpack.c.bf16 %v6874_v62, %v6873_v44  ;;  %v4236_v15 = vpack.c.bf16 %v6876_v10, %v6875_v46  ;;  %v6879_v17 = vld [vmem:[#allocation113_spill] sm:$0xff]  ;;  %v3001_v62 = vsel %vm1448_vm1, %v2993_v47, %v2997_v40  ;;  %v3224_v46 = vrot.slane %v6096_v59, 5  ;;  %v6937_v40 = vld [vmem:[#allocation207_spill] sm:$0xff] }
0x1a16   :  { %v4238_v1 = vpack.c.bf16 %v6880_v0, %v6879_v17  ;;  %v6881_v18 = vld [vmem:[#allocation145_spill] sm:$0xff]  ;;  %v3333_v10 = vrot.slane %v6087_v13, 7 }
0x1a17   :  { %2874 = vmatmul.mubr.f32.vlgmr.msra.gmra.mrb[16].mxu1 %v2775_v19  ;;  %2987 = vmatmul.mubr.f32.vlgmr.msra.gmra.mrb[18].mxu0 %v2888_v5  ;;  %v6882_v19 = vld [vmem:[#allocation146_spill] sm:$0xff]  ;;  %v6887_v5 = vld [vmem:[#allocation115_spill] sm:$0xff]  ;;  %v6913_v0 = vld [vmem:[#allocation201_spill] sm:$0xff] }
0x1a18   :  { %4223 = vmatpush3.bf16.msra.mxu1 %v4222_v4  ;;  %4255 = vmatpush3.bf16.msra.mxu0 %v4254_v36  ;;  %v4270_v32 = vpack.c.bf16 %v6882_v19, %v6881_v18  ;;  %v4272_v4 = vpack.c.bf16 %v6886_v33, %v6885_v21  ;;  %v4242_v35 = vpack.c.bf16 %v6888_v34, %v6887_v5  ;;  %v6889_v36 = vld [vmem:[#allocation147_spill] sm:$0xff] }
0x1a19   :  { %4225 = vmatprep.subr.bf16.mxu1 %v4224_v37  ;;  %4257 = vmatprep.subr.bf16.mxu0 %v4256_v50  ;;  %v4274_v23 = vpack.c.bf16 %v6890_v22, %v6889_v36  ;;  %v6891_v37 = vld [vmem:[#allocation133_spill] sm:$0xff]  ;;  %v6915_v19 = vld [vmem:[#allocation187_spill] sm:$0xff] }
0x1a1a   :  { %3099 = vmatprep.mubr.f32.mxu1 %v3002_v51  ;;  %3212 = vmatprep.mubr.f32.mxu0 %v3115_v52  ;;  %v4244_v49 = vpack.c.bf16 %v6892_v48, %v6891_v37  ;;  %v6893_v50 = vld [vmem:[#allocation165_spill] sm:$0xff]  ;;  %v6894_v51 = vld [vmem:[#allocation166_spill] sm:$0xff]  ;;  %v6919_v33 = vld [vmem:[#allocation171_spill] sm:$0xff] }
0x1a1b   :  { %v4276_v52 = vpack.c.bf16 %v6894_v51, %v6893_v50  ;;  %v6921_v34 = vld [vmem:[#allocation203_spill] sm:$0xff]  ;;  %v6923_v22 = vld [vmem:[#allocation189_spill] sm:$0xff] }
0x1a1c   :  { %4227 = vmatpush3.bf16.msra.mxu1 %v4226_v54  ;;  %4259 = vmatpush3.bf16.msra.mxu0 %v4258_v39  ;;  %v4246_v54 = vpack.c.bf16 %v6896_v53, %v6895_v63  ;;  %v4278_v39 = vpack.c.bf16 %v6898_v38, %v6897_v55  ;;  %v6925_v48 = vld [vmem:[#allocation221_spill] sm:$0xff]  ;;  %v6931_v38 = vld [vmem:[#allocation191_spill] sm:$0xff] }
0x1a1d   :  { %4229 = vmatprep.subr.bf16.mxu1 %v4228_v57  ;;  %4261 = vmatprep.subr.bf16.mxu0 %v4260_v14  ;;  %v4248_v57 = vpack.c.bf16 %v6900_v11, %v6899_v61  ;;  %v4280_v14 = vpack.c.bf16 %v6902_v28, %v6901_v29  ;;  %v6927_v51 = vld [vmem:[#allocation173_spill] sm:$0xff]  ;;  %v6933_v11 = vld [vmem:[#allocation223_spill] sm:$0xff] }
0x1a1e   :  { %v6929_v53 = vld [vmem:[#allocation205_spill] sm:$0xff]  ;;  %v6935_v28 = vld [vmem:[#allocation175_spill] sm:$0xff] }
0x1a20   :  { %4231 = vmatpush3.bf16.msra.mxu1 %v4230_v12  ;;  %4263 = vmatpush3.bf16.msra.mxu0 %v4262_v31  ;;  %v6903_v12 = vld [vmem:[#allocation119_spill] sm:$0xff] }
0x1a21   :  { %4233 = vmatprep.subr.bf16.mxu1 %v4232_v42  ;;  %4265 = vmatprep.subr.bf16.mxu0 %v4264_v45  ;;  %v4250_v58 = vpack.c.bf16 %v6904_v27, %v6903_v12  ;;  %v6905_v31 = vld [vmem:[#allocation151_spill] sm:$0xff]  ;;  %v3106_v42 = vrot.slane %v6085_v60, 5  ;;  %v6908_v45 = vld [vmem:[#allocation186_spill] sm:$0xff]  ;;  %v6938_v12 = vld [vmem:[#allocation208_spill] sm:$0xff] }
0x1a22   :  { %v4282_v56 = vpack.c.bf16 %v6906_v8, %v6905_v31  ;;  %v4284_v30 = vpack.c.bf16 %v6908_v45, %v6907_v6  ;;  %v4330_v27 = vpack.c.bf16 %v6938_v12, %v6937_v40  ;;  %v6940_v31 = vld [vmem:[#allocation194_spill] sm:$0xff]  ;;  %v6943_v6 = vld [vmem:[#allocation177_spill] sm:$0xff] }
0x1a23   :  { %v3114_v17 = vsel %vm1448_vm1, %v3106_v42, %v3110_v7  ;;  %v6942_v42 = vld [vmem:[#allocation226_spill] sm:$0xff] }
0x1a24   :  { %4235 = vmatpush3.bf16.msra.mxu1 %v4234_v9  ;;  %4267 = vmatpush3.bf16.msra.mxu0 %v4266_v26  ;;  %v6910_v9 = vld [vmem:[#allocation218_spill] sm:$0xff]  ;;  %v3220_v26 = vrot.slane %v6087_v13, 6 }
0x1a25   :  { %4237 = vmatprep.subr.bf16.mxu1 %v4236_v15  ;;  %4269 = vmatprep.subr.bf16.mxu0 %v4268_v16  ;;  %v4316_v44 = vpack.c.bf16 %v6910_v9, %v6909_v43  ;;  %v3337_v15 = vrot.slane %v6096_v59, 6  ;;  %v4286_v16 = vpack.c.bf16 %v6912_v25, %v6911_v24  ;;  %v6944_v45 = vld [vmem:[#allocation178_spill] sm:$0xff]  ;;  %v6945_v43 = vld [vmem:[#allocation209_spill] sm:$0xff]  ;;  %v6951_v25 = vld [vmem:[#allocation179_spill] sm:$0xff] }
0x1a26   :  { %v3228_v59 = vsel %vm1448_vm1, %v3220_v26, %v3224_v46  ;;  %v6946_v9 = vld [vmem:[#allocation210_spill] sm:$0xff]  ;;  %v6948_v26 = vld [vmem:[#allocation196_spill] sm:$0xff] }
0x1a27   :  { %v3341_v21 = vsel %vm1448_vm1, %v3333_v10, %v3337_v15  ;;  %v6949_v10 = vld [vmem:[#allocation227_spill] sm:$0xff]  ;;  %v6950_v15 = vld [vmem:[#allocation228_spill] sm:$0xff] }
0x1a28   :  { %4239 = vmatpush3.bf16.msra.mxu1 %v4238_v1  ;;  %4271 = vmatpush3.bf16.msra.mxu0 %v4270_v32  ;;  %v6914_v1 = vld [vmem:[#allocation202_spill] sm:$0xff]  ;;  %v6916_v32 = vld [vmem:[#allocation188_spill] sm:$0xff]  ;;  %v4336_v24 = vpack.c.bf16 %v6950_v15, %v6949_v10 }
0x1a29   :  { %4241 = vmatprep.subr.bf16.mxu1 %v4240_v20  ;;  %4273 = vmatprep.subr.bf16.mxu0 %v4272_v4  ;;  %v4318_v18 = vpack.c.bf16 %v6914_v1, %v6913_v0  ;;  %v4288_v2 = vpack.c.bf16 %v6916_v32, %v6915_v19  ;;  %v6918_v20 = vld [vmem:[#allocation220_spill] sm:$0xff]  ;;  %v6953_v0 = vld [vmem:[#allocation211_spill] sm:$0xff]  ;;  %v6955_v19 = vld [vmem:[#allocation197_spill] sm:$0xff] }
0x1a2a   :  { %v4320_v13 = vpack.c.bf16 %v6918_v20, %v6917_v3  ;;  %v6920_v4 = vld [vmem:[#allocation172_spill] sm:$0xff]  ;;  %v6956_v32 = vld [vmem:[#allocation198_spill] sm:$0xff]  ;;  %v6957_v3 = vld [vmem:[#allocation229_spill] sm:$0xff] }
0x1a2b   :  { %v4290_v5 = vpack.c.bf16 %v6920_v4, %v6919_v33  ;;  %v6954_v1 = vld [vmem:[#allocation212_spill] sm:$0xff]  ;;  %v6958_v20 = vld [vmem:[#allocation230_spill] sm:$0xff]  ;;  %v6961_v4 = vld [vmem:[#allocation213_spill] sm:$0xff] }
0x1a2c   :  { %4243 = vmatpush3.bf16.msra.mxu1 %v4242_v35  ;;  %4275 = vmatpush3.bf16.msra.mxu0 %v4274_v23  ;;  %v6922_v35 = vld [vmem:[#allocation204_spill] sm:$0xff]  ;;  %v6924_v23 = vld [vmem:[#allocation190_spill] sm:$0xff] }
0x1a2d   :  { %4245 = vmatprep.subr.bf16.mxu1 %v4244_v49  ;;  %4277 = vmatprep.subr.bf16.mxu0 %v4276_v52  ;;  %v4322_v36 = vpack.c.bf16 %v6922_v35, %v6921_v34  ;;  %v4292_v37 = vpack.c.bf16 %v6924_v23, %v6923_v22  ;;  %v6926_v49 = vld [vmem:[#allocation222_spill] sm:$0xff]  ;;  %v6963_v35 = vld [vmem:[#allocation199_spill] sm:$0xff] }
0x1a2e   :  { %v4324_v50 = vpack.c.bf16 %v6926_v49, %v6925_v48  ;;  %v6928_v52 = vld [vmem:[#allocation174_spill] sm:$0xff]  ;;  %v6965_v23 = vld [vmem:[#allocation231_spill] sm:$0xff]  ;;  %v3219_v49 = vrot.slane %v6085_v60, 6 }
0x1a2f   :  { %v4294_v63 = vpack.c.bf16 %v6928_v52, %v6927_v51  ;;  %v6967_v51 = vld [vmem:[#allocation183_spill] sm:$0xff]  ;;  %v6968_v52 = vld [vmem:[#allocation184_spill] sm:$0xff] }
0x1a30   :  { %4247 = vmatpush3.bf16.msra.mxu1 %v4246_v54  ;;  %4279 = vmatpush3.bf16.msra.mxu0 %v4278_v39  ;;  %v6930_v54 = vld [vmem:[#allocation206_spill] sm:$0xff]  ;;  %v6932_v39 = vld [vmem:[#allocation192_spill] sm:$0xff] }
0x1a31   :  { %4249 = vmatprep.subr.bf16.mxu1 %v4248_v57  ;;  %4281 = vmatprep.subr.bf16.mxu0 %v4280_v14  ;;  %v4326_v55 = vpack.c.bf16 %v6930_v54, %v6929_v53  ;;  %v4296_v61 = vpack.c.bf16 %v6932_v39, %v6931_v38  ;;  %v6934_v57 = vld [vmem:[#allocation224_spill] sm:$0xff]  ;;  %v6969_v53 = vld [vmem:[#allocation215_spill] sm:$0xff]  ;;  %v3332_v38 = vrot.slane %v6085_v60, 7  ;;  %v3336_v39 = vrot.slane %v6094_v41, 6 }
0x1a32   :  { %v4328_v29 = vpack.c.bf16 %v6934_v57, %v6933_v11  ;;  %v6936_v14 = vld [vmem:[#allocation176_spill] sm:$0xff] }
0x1a33   :  { %v4298_v47 = vpack.c.bf16 %v6936_v14, %v6935_v28  ;;  %v6970_v54 = vld [vmem:[#allocation216_spill] sm:$0xff]  ;;  %v3340_v11 = vsel %vm1448_vm1, %v3332_v38, %v3336_v39 }
0x1a34   :  { %4251 = vmatpush3.bf16.msra.mxu1 %v4250_v58  ;;  %4283 = vmatpush3.bf16.msra.mxu0 %v4282_v56  ;;  %v6939_v58 = vld [vmem:[#allocation193_spill] sm:$0xff] }
0x1a35   :  { %4285 = vmatprep.subr.bf16.mxu1 %v4284_v30  ;;  %4317 = vmatprep.subr.bf16.mxu0 %v4316_v44  ;;  %v4300_v8 = vpack.c.bf16 %v6940_v31, %v6939_v58  ;;  %v6941_v56 = vld [vmem:[#allocation225_spill] sm:$0xff]  ;;  %v4302_v30 = vpack.c.bf16 %v6944_v45, %v6943_v6  ;;  %v4334_v44 = vpack.c.bf16 %v6946_v9, %v6945_v43 }
0x1a36   :  { %v4332_v7 = vpack.c.bf16 %v6942_v42, %v6941_v56 }
0x1a37   :  { %3100 = vmatmul.mubr.f32.vlgmr.msra.gmra.mrb[18].mxu1 %v3001_v62  ;;  %3213 = vmatmul.mubr.f32.vlgmr.msra.gmra.mrb[20].mxu0 %v3114_v17  ;;  %v6947_v62 = vld [vmem:[#allocation195_spill] sm:$0xff] }
0x1a38   :  { %4287 = vmatpush3.bf16.msra.mxu1 %v4286_v16  ;;  %4319 = vmatpush3.bf16.msra.mxu0 %v4318_v18  ;;  %v4304_v46 = vpack.c.bf16 %v6948_v26, %v6947_v62  ;;  %v6952_v16 = vld [vmem:[#allocation180_spill] sm:$0xff]  ;;  %v4338_v18 = vpack.c.bf16 %v6954_v1, %v6953_v0  ;;  %v3551_v26 = vld [vmem:[%s6506_s3 + $0x42] ss:$0 sm:$0xff]  ;;  %v3552_v1 = vld [vmem:[%s6506_s3 + $0x43] ss:$0 sm:$0xff] }
0x1a39   :  { %4289 = vmatprep.subr.bf16.mxu1 %v4288_v2  ;;  %4321 = vmatprep.subr.bf16.mxu0 %v4320_v13  ;;  %v4306_v17 = vpack.c.bf16 %v6952_v16, %v6951_v25  ;;  %v4308_v2 = vpack.c.bf16 %v6956_v32, %v6955_v19  ;;  %v4340_v13 = vpack.c.bf16 %v6958_v20, %v6957_v3  ;;  %v3550_v19 = vld [vmem:[%s6506_s3 + $0x41] ss:$0 sm:$0xff] }
0x1a3a   :  { %3325 = vmatprep.mubr.f32.mxu1 %v3228_v59  ;;  %3438 = vmatprep.mubr.f32.mxu0 %v3341_v21  ;;  %v6959_v59 = vld [vmem:[#allocation181_spill] sm:$0xff]  ;;  %v6960_v21 = vld [vmem:[#allocation182_spill] sm:$0xff] }
0x1a3b   :  { %v4310_v33 = vpack.c.bf16 %v6960_v21, %v6959_v59 }
0x1a3c   :  { %4291 = vmatpush3.bf16.msra.mxu1 %v4290_v5  ;;  %4323 = vmatpush3.bf16.msra.mxu0 %v4322_v36  ;;  %v6962_v5 = vld [vmem:[#allocation214_spill] sm:$0xff]  ;;  %v6964_v36 = vld [vmem:[#allocation200_spill] sm:$0xff] }
0x1a3d   :  { %4293 = vmatprep.subr.bf16.mxu1 %v4292_v37  ;;  %4325 = vmatprep.subr.bf16.mxu0 %v4324_v50  ;;  %v4342_v34 = vpack.c.bf16 %v6962_v5, %v6961_v4  ;;  %v4312_v22 = vpack.c.bf16 %v6964_v36, %v6963_v35  ;;  %v6966_v37 = vld [vmem:[#allocation232_spill] sm:$0xff]  ;;  %v3223_v50 = vrot.slane %v6094_v41, 5  ;;  %v3554_v35 = vld [vmem:[%s6506_s3 + $0x45] ss:$0 sm:$0xff] }
0x1a3e   :  { %v4344_v48 = vpack.c.bf16 %v6966_v37, %v6965_v23 }
0x1a40   :  { %4295 = vmatpush3.bf16.msra.mxu1 %v4294_v63  ;;  %4327 = vmatpush3.bf16.msra.mxu0 %v4326_v55  ;;  %v4314_v63 = vpack.c.bf16 %v6968_v52, %v6967_v51  ;;  %v4346_v55 = vpack.c.bf16 %v6970_v54, %v6969_v53 }
0x1a41   :  { %4297 = vmatprep.subr.bf16.mxu1 %v4296_v61  ;;  %4329 = vmatprep.subr.bf16.mxu0 %v4328_v29  ;;  %v3227_v61 = vsel %vm1448_vm1, %v3219_v49, %v3223_v50 }
0x1a44   :  { %4299 = vmatpush3.bf16.msra.mxu1 %v4298_v47  ;;  %4331 = vmatpush3.bf16.msra.mxu0 %v4330_v27 }
0x1a45   :  { %4301 = vmatprep.subr.bf16.mxu1 %v4300_v8  ;;  %4333 = vmatprep.subr.bf16.mxu0 %v4332_v7 }
0x1a48   :  { %4303 = vmatpush3.bf16.msra.mxu1 %v4302_v30  ;;  %4335 = vmatpush3.bf16.msra.mxu0 %v4334_v44 }
0x1a49   :  { %4305 = vmatprep.subr.bf16.mxu1 %v4304_v46  ;;  %4337 = vmatprep.subr.bf16.mxu0 %v4336_v24 }
0x1a4c   :  { %4307 = vmatpush3.bf16.msra.mxu1 %v4306_v17  ;;  %4339 = vmatpush3.bf16.msra.mxu0 %v4338_v18 }
0x1a4d   :  { %4309 = vmatprep.subr.bf16.mxu1 %v4308_v2  ;;  %4341 = vmatprep.subr.bf16.mxu0 %v4340_v13 }
0x1a50   :  { %4311 = vmatpush3.bf16.msra.mxu1 %v4310_v33  ;;  %4343 = vmatpush3.bf16.msra.mxu0 %v4342_v34  ;;  %v3553_v33 = vld [vmem:[%s6506_s3 + $0x44] ss:$0 sm:$0xff] }
0x1a51   :  { %4313 = vmatprep.subr.bf16.mxu1 %v4312_v22  ;;  %4345 = vmatprep.subr.bf16.mxu0 %v4344_v48 }
0x1a54   :  { %4315 = vmatpush3.bf16.msra.mxu1 %v4314_v63  ;;  %4347 = vmatpush3.bf16.msra.mxu0 %v4346_v55 }
0x1a57   :  { %3326 = vmatmul.mubr.f32.vlgmr.msra.gmra.mrb[20].mxu1 %v3227_v61  ;;  %3439 = vmatmul.mubr.f32.vlgmr.msra.gmra.mrb[22].mxu0 %v3340_v11 }
0x1a69   :  { %v3457_v46 = vpop.permute.xlu0 %3456 }
0x1a6a   :  { %v3463_v0 = vmul.f32 %v3551_v26, %v3457_v46 }
0x1a6c   :  { %v3469_v2 = vadd.f32 %v3552_v1, %v3463_v0 }
0x1a6d   :  { %v3474_v20 = vpop.permute.xlu0 %3473 }
0x1a6e   :  { %v3470_v13 = vmax.f32 %v3469_v2, 0.0 }
0x1aca   :  { %v3631_v57 = vpop.f32.mrb[14].mxu1  ;;  %v3666_v29 = vpop.f32.mrb[16].mxu0 }
0x1acb   :  { %v3632_v28 = vpop.f32.mrb[15].mxu1  ;;  %v3667_v14 = vpop.f32.mrb[17].mxu0 }
0x1acc   :  { %v3633_v47 = vadd.f32 %v3632_v28, %v3631_v57  ;;  %v3668_v40 = vadd.f32 %v3667_v14, %v3666_v29 }
0x1ace   :  { %v2764_v12 = vadd.f32 %v3668_v40, %v3633_v47 }
0x1aea   :  { %v3701_v60 = vpop.f32.mrb[16].mxu1  ;;  %v3736_v27 = vpop.f32.mrb[18].mxu0 }
0x1aeb   :  { %v3702_v41 = vpop.f32.mrb[17].mxu1  ;;  %v3737_v58 = vpop.f32.mrb[19].mxu0 }
0x1aec   :  { %v3703_v31 = vadd.f32 %v3702_v41, %v3701_v60  ;;  %v3738_v8 = vadd.f32 %v3737_v58, %v3736_v27 }
0x1aee   :  { %v2879_v56 = vadd.f32 %v3703_v31, %v2764_v12 }
0x1af0   :  { %v2992_v42 = vadd.f32 %v3738_v8, %v2879_v56 }
0x1b0a   :  { %v3771_v7 = vpop.f32.mrb[18].mxu1  ;;  %v3806_v6 = vpop.f32.mrb[20].mxu0 }
0x1b0b   :  { %v3772_v45 = vpop.f32.mrb[19].mxu1  ;;  %v3807_v30 = vpop.f32.mrb[21].mxu0 }
0x1b0c   :  { %v3773_v43 = vadd.f32 %v3772_v45, %v3771_v7  ;;  %v3808_v9 = vadd.f32 %v3807_v30, %v3806_v6 }
0x1b0e   :  { %v3105_v44 = vadd.f32 %v3773_v43, %v2992_v42 }
0x1b10   :  { %v3218_v62 = vadd.f32 %v3808_v9, %v3105_v44 }
0x1b2a   :  { %v3841_v10 = vpop.f32.mrb[20].mxu1  ;;  %v3876_v15 = vpop.f32.mrb[22].mxu0 }
0x1b2b   :  { %v3842_v24 = vpop.f32.mrb[21].mxu1  ;;  %v3877_v25 = vpop.f32.mrb[23].mxu0 }
0x1b2c   :  { %v3843_v16 = vadd.f32 %v3842_v24, %v3841_v10  ;;  %v3878_v17 = vadd.f32 %v3877_v25, %v3876_v15 }
0x1b2e   :  { %v3331_v18 = vadd.f32 %v3843_v16, %v3218_v62 }
0x1b30   :  { %v3444_v32 = vadd.f32 %v3878_v17, %v3331_v18 }
0x1b32   :  { %v3450_v3 = vadd.f32 %v3550_v19, %v3444_v32 }
0x1b34   :  { %v3451_v59 = vmax.f32 %v3450_v3, 0.0 }
0x1b36   :  { %v3476_v21 = vadd.f32 %v3474_v20, %v3451_v59 }
0x1b38   :  { %v3477_v4 = vadd.f32 %v3476_v21, %v3470_v13 }
0x1b3a   :  { %v3483_v5 = vmul.f32 %v3553_v33, %v3477_v4 }
0x1b3c   :  { %v3485_v34 = vsel %vm3484_vm13, %v3483_v5, 0.0 }
0x1b3d   :  { %3486 = vadd.xlane.f32.xlu1 %v3485_v34 }
0x1bca   :  { %v3487_v36 = vpop.xlane.xlu1 %3486 }
0x1bcb   :  { %v3493_v22 = vadd.f32 %v3554_v35, %v3487_v36 }
0x1bcd   :  { %3495 = vst.msk [vmem:[%s6508_s5] sm:$0x3] %vm3494_vm14, %v3493_v22 }
0x1bce   :  { %3500 = vsyncmov [#allocation4] }
0x1bd1   :  { %s3501_s22 = vpop.sfrf %3500 }
0x1bd2   :  { %p3555_p0 = scmp.ne.s32.totalorder %s3501_s22, 0 }
0x1bd4   :  { %3505 = shalt.err (%p3555_p0)  }

</bundles_post_ra>
